<compile_context>
chip_gen: v7x
topology: tpu7x:2x2x1
jax: 0.10.0
libtpu: 0.0.40
codegen_flags: <defaults>
</compile_context>

<pallas_src>
import functools

import jax
import jax.numpy as jnp
from jax.experimental import pallas as pl
from jax.experimental.pallas import tpu as pltpu

_POOL_KS = (5, 9, 13)
_PAD = max(_POOL_KS) // 2            # 6-row / 6-col halo for the largest pool


# ----------------------------------------------------------------------------
# In-kernel helpers
# ----------------------------------------------------------------------------
def _silu(z):
    # z * sigmoid(z); exp and the approximate reciprocal both run on the EUP.
    return z * pl.reciprocal(1.0 + jnp.exp(-z), approx=True)


def _vert_pool(h, k, th):
    """Vertical max over a centred window of size k (k in {5, 9, 13}).

    h: (th + 12, W, c_) horizontally-pooled slab.  Returns (th, W, c_) where
    out[t] = max(h[t + 6 - k//2 : t + 6 + k//2 + 1])  (prefix-doubling ladder).
    """
    r = k // 2
    b = h[_PAD - r:]                               # left-aligned window starts
    m2 = jnp.maximum(b[:-1], b[1:])                # running max, window 2
    m4 = jnp.maximum(m2[:-2], m2[2:])              # window 4
    if k == 5:
        return jnp.maximum(m4[:th], m4[1:th + 1])      # 4 ∪ (4 shifted 1) = 5
    m8 = jnp.maximum(m4[:-4], m4[4:])              # window 8
    if k == 9:
        return jnp.maximum(m8[:th], m8[1:th + 1])      # 8 ∪ (8 shifted 1) = 9
    return jnp.maximum(m8[:th], m8[5:th + 5])          # 8 ∪ (8 shifted 5) = 13


# ----------------------------------------------------------------------------
# Fused SPP kernel: one (batch, row-tile) output block per grid step.
# ----------------------------------------------------------------------------
def _spp_fused_kernel(xp_ref, xc_ref, xn_ref,
                      w1_ref, b1_ref, w2_ref, b2_ref,
                      o_ref, *, H, tile_h):
    pad = _PAD
    i = pl.program_id(1)

    W = xc_ref.shape[2]
    c_ = w1_ref.shape[1]
    C2 = o_ref.shape[3]
    th = tile_h
    SH = th + 2 * pad                              # slab height incl. halo

    # -- assemble the bf16 input slab: 6 halo rows + tile + 6 halo rows ------
    x_slab = jnp.concatenate(
        [xp_ref[0, 8 - pad:, :, :],        # last 6 rows of the prev 8-row block
         xc_ref[0],                        # (tile_h, W, C1)
         xn_ref[0, :pad, :, :]],           # first 6 rows of the next 8-row block
        axis=0)                            # (SH, W, C1), bf16

    # -- cv1: 1x1 conv == channel matmul (bf16 MXU, f32 accum), BN folded ----
    z1 = jnp.dot(x_slab.reshape(SH * W, -1), w1_ref[...],
                 preferred_element_type=jnp.float32) + b1_ref[...]
    y_slab = _silu(z1).reshape(SH, W, c_)                       # f32

    # -- mask rows outside the image with -inf (MaxPool2d padding semantics) -
    row = i * th - pad + jax.lax.broadcasted_iota(jnp.int32, (SH, 1, 1), 0)
    y_pool = jnp.where((row >= 0) & (row < H), y_slab, -jnp.inf)

    # -- horizontal sliding max: one shared prefix-doubling ladder -----------
    wfill = jnp.full((SH, pad, c_), -jnp.inf, jnp.float32)
    yw = jnp.concatenate([wfill, y_pool, wfill], axis=1)        # (SH, W+12, c_)
    m2 = jnp.maximum(yw[:, :-1], yw[:, 1:])                     # window 2
    m4 = jnp.maximum(m2[:, :-2], m2[:, 2:])                     # window 4
    m8 = jnp.maximum(m4[:, :-4], m4[:, 4:])                     # window 8
    h5 = jnp.maximum(m4[:, 4:W + 4], m4[:, 5:W + 5])            # window 5
    h9 = jnp.maximum(m8[:, 2:W + 2], m8[:, 3:W + 3])            # window 9
    h13 = jnp.maximum(m8[:, 0:W], m8[:, 5:W + 5])               # window 13

    # -- vertical sliding max (prefix doubling per pooled map) ---------------
    p5 = _vert_pool(h5, 5, th)
    p9 = _vert_pool(h9, 9, th)
    p13 = _vert_pool(h13, 13, th)
    y_cur = y_slab[pad:pad + th]                                # (th, W, c_)

    # -- cv2: single K=4*c_ bf16 matmul on concat([y, p5, p9, p13]) + SiLU ---
    bf16 = jnp.bfloat16
    feat = jnp.concatenate(
        [y_cur.astype(bf16), p5.astype(bf16), p9.astype(bf16), p13.astype(bf16)],
        axis=-1).reshape(th * W, 4 * c_)
    z2 = jnp.dot(feat, w2_ref[...],
                 preferred_element_type=jnp.float32) + b2_ref[...]
    o_ref[...] = _silu(z2).reshape(1, th, W, C2).astype(o_ref.dtype)


# ----------------------------------------------------------------------------
# Wrappers
# ----------------------------------------------------------------------------
def _vmem_working_set_bytes(tile_h, W, C1, c_, C2):
    """Rough per-step VMEM estimate: double-buffered blocks + f32 intermediates."""
    sh, wp = tile_h + 2 * _PAD, W + 2 * _PAD
    blocks = 2 * (tile_h * W * C1 * 2 + 2 * 8 * W * C1 * 2 + tile_h * W * C2 * 4)
    weights = (C1 * c_ + 4 * c_ * C2) * 2 + (c_ + C2) * 4
    interm = 6 * sh * wp * c_ * 4 + tile_h * W * (4 * c_ * 2 + 2 * C2 * 4)
    return blocks + weights + interm


def spp_forward_nhwc(x_nhwc, params, *, tile_h=64):
    """x_nhwc: (N, H, W, C1) f32 -> (N, H, W, C2) f32 (channels lane-dense)."""
    N, H, W, C1 = x_nhwc.shape
    w1 = params["w1f"].astype(jnp.bfloat16)      # (C1, c_), BN1 scale folded in
    b1 = params["b1"].astype(jnp.float32)        # (c_,)
    w2 = params["w2f"].astype(jnp.bfloat16)      # (4*c_, C2), BN2 scale folded in
    b2 = params["b2"].astype(jnp.float32)        # (C2,)
    c_ = w1.shape[1]
    C2 = w2.shape[1]

    assert H >= 8, "SPP kernel assumes feature-map height >= 8"

    # Row tile: multiple of 8 (halo blocks are 8 rows), as large as the VMEM
    # budget allows.  36 MiB working set + 48 MiB scoped limit keep us inside
    # v7x's 64 MiB physical VMEM; v5e/v6e (128 MiB) could go larger.
    budget = 36 * 1024 * 1024
    tile_h = max(8, min((tile_h // 8) * 8, (H // 8) * 8))
    while tile_h > 8 and _vmem_working_set_bytes(tile_h, W, C1, c_, C2) > budget:
        tile_h -= 8
    if N == 1 and pl.cdiv(H, tile_h) < 2 and H >= 16:
        tile_h = max(8, ((H // 2) // 8) * 8)     # keep >= 2 row tiles for 2 TCs
    nt = pl.cdiv(H, tile_h)
    rb = tile_h // 8                             # 8-row halo blocks per tile
    nb8 = pl.cdiv(H, 8)

    x_bf16 = x_nhwc.astype(jnp.bfloat16)
    # Whole-array VMEM residents (constant across the grid): single-buffered,
    # fetched once, never re-DMA'd.
    vmem_spec = pl.BlockSpec(memory_space=pltpu.MemorySpace.VMEM)

    return pl.pallas_call(
        functools.partial(_spp_fused_kernel, H=H, tile_h=tile_h),
        out_shape=jax.ShapeDtypeStruct((N, H, W, C2), jnp.float32),
        grid_spec=pltpu.PrefetchScalarGridSpec(
            num_scalar_prefetch=0,
            grid=(N, nt),
            in_specs=[
                # 8-row halo block just above the tile (clamped at the top edge;
                # out-of-image rows are masked to -inf inside the kernel).
                pl.BlockSpec((1, 8, W, C1),
                             lambda n, i: (n, jnp.maximum(i * rb - 1, 0), 0, 0)),
                # the tile itself
                pl.BlockSpec((1, tile_h, W, C1), lambda n, i: (n, i, 0, 0)),
                # 8-row halo block just below the tile (clamped at the bottom)
                pl.BlockSpec((1, 8, W, C1),
                             lambda n, i: (n, jnp.minimum((i + 1) * rb, nb8 - 1),
                                           0, 0)),
                vmem_spec, vmem_spec, vmem_spec, vmem_spec,   # w1, b1, w2, b2
            ],
            out_specs=pl.BlockSpec((1, tile_h, W, C2),
                                   lambda n, i: (n, i, 0, 0)),
        ),
        compiler_params=pltpu.CompilerParams(
            dimension_semantics=("parallel", "parallel"),
            vmem_limit_bytes=48 * 1024 * 1024),
    )(x_bf16, x_bf16, x_bf16, w1, b1.reshape(1, c_), w2, b2.reshape(1, C2))


@functools.partial(jax.jit, static_argnames=("tile_h",))
def spp_forward(x_nchw, params, *, tile_h=64):
    # Public interface matches the PyTorch module (NCHW); the kernel itself is
    # channels-last.  If the surrounding model is already NHWC, call
    # spp_forward_nhwc directly and skip these two transposes.
    x_nhwc = jnp.transpose(x_nchw, (0, 2, 3, 1))
    out = spp_forward_nhwc(x_nhwc, params, tile_h=tile_h)
    return jnp.transpose(out, (0, 3, 1, 2))


# ----------------------------------------------------------------------------
# Deterministic parameter setup (BN folded) + pure-JAX reference
# ----------------------------------------------------------------------------
def _fold_bn(gamma, beta, mean, var, eps=1e-5):
    scale = gamma / jnp.sqrt(var + eps)
    shift = beta - mean * scale
    return scale, shift


def init_spp_params(key, c1, c2):
    c_ = c1 // 2
    cin2 = 4 * c_
    keys = jax.random.split(key, 10)
    # cv1: torch (c_, c1, 1, 1) -> matmul layout (c1, c_)
    w1 = jax.random.normal(keys[0], (c1, c_), jnp.float32) * 0.1
    s1, b1 = _fold_bn(
        gamma=1.0 + 0.1 * jax.random.normal(keys[1], (c_,), jnp.float32),
        beta=0.1 * jax.random.normal(keys[2], (c_,), jnp.float32),
        mean=0.1 * jax.random.normal(keys[3], (c_,), jnp.float32),
        var=jnp.abs(jax.random.normal(keys[4], (c_,), jnp.float32)) + 0.5,
    )
    # cv2: torch (c2, 4*c_, 1, 1) -> matmul layout (4*c_, c2)
    w2 = jax.random.normal(keys[5], (cin2, c2), jnp.float32) * 0.1
    s2, b2 = _fold_bn(
        gamma=1.0 + 0.1 * jax.random.normal(keys[6], (c2,), jnp.float32),
        beta=0.1 * jax.random.normal(keys[7], (c2,), jnp.float32),
        mean=0.1 * jax.random.normal(keys[8], (c2,), jnp.float32),
        var=jnp.abs(jax.random.normal(keys[9], (c2,), jnp.float32)) + 0.5,
    )
    # Fold BN scale into the conv weights; keep the shift as a bias.
    return {"w1f": w1 * s1[None, :], "b1": b1,
            "w2f": w2 * s2[None, :], "b2": b2}


def spp_reference(x_nhwc, params):
    """Pure-JAX SPP with the same precision recipe as the kernel (bf16 matmul
    inputs, f32 accumulation, f32 pooling / SiLU).  Used only for checking."""
    bf16 = jnp.bfloat16
    w1 = params["w1f"].astype(bf16)
    w2 = params["w2f"].astype(bf16)
    y = jnp.einsum("nhwc,cd->nhwd", x_nhwc.astype(bf16), w1,
                   preferred_element_type=jnp.float32) + params["b1"]
    y = y * jax.nn.sigmoid(y)
    pools = [jax.lax.reduce_window(
        y, -jnp.inf, jax.lax.max,
        window_dimensions=(1, k, k, 1), window_strides=(1, 1, 1, 1),
        padding=((0, 0), (k // 2, k // 2), (k // 2, k // 2), (0, 0)))
        for k in _POOL_KS]
    feat = jnp.concatenate([y] + pools, axis=-1).astype(bf16)
    z = jnp.einsum("nhwc,cd->nhwd", feat, w2,
                   preferred_element_type=jnp.float32) + params["b2"]
    return z * jax.nn.sigmoid(z)


if __name__ == "__main__":
    key = jax.random.PRNGKey(0)
    kx, kp = jax.random.split(key)

    N, C1, H, W = 2, 4, 16, 16
    C2 = 8
    x = jax.random.normal(kx, (N, C1, H, W), jnp.float32)
    params = init_spp_params(kp, C1, C2)

    ref = jnp.transpose(
        spp_reference(jnp.transpose(x, (0, 2, 3, 1)), params), (0, 3, 1, 2))

    # Default (large-tile) path: tile_h clamps to H at this toy size (nt = 1).
    out = jax.block_until_ready(spp_forward(x, params, tile_h=64))
    assert out.shape == (N, C2, H, W), out.shape
    assert bool(jnp.isfinite(out).all())
    # Remaining deviation vs the reference comes only from the approximate EUP
    # reciprocal in SiLU and matmul accumulation order.
    err = float(jnp.max(jnp.abs(out - ref)))
    assert err < 1e-2, f"mismatch vs reference (default tiling): {err}"

    # Multi-tile run that exercises the 8-row halo-block exchange path.
    out2 = jax.block_until_ready(spp_forward(x, params, tile_h=8))
    err2 = float(jnp.max(jnp.abs(out2 - ref)))
    assert err2 < 1e-2, f"mismatch vs reference (tile_h=8): {err2}"

    print("KERNEL_OK")
</pallas_src>

<mosaic_0001>
module attributes {stable_mosaic.version = 11 : i64} {
  func.func @_spp_fused_kernel(%arg0: i32, %arg1: i32, %arg2: memref<1x8x16x4xbf16, #tpu.memory_space<vmem>>, %arg3: memref<1x16x16x4xbf16, #tpu.memory_space<vmem>>, %arg4: memref<1x8x16x4xbf16, #tpu.memory_space<vmem>>, %arg5: memref<4x2xbf16, #tpu.memory_space<vmem>>, %arg6: memref<1x2xf32, #tpu.memory_space<vmem>>, %arg7: memref<8x8xbf16, #tpu.memory_space<vmem>>, %arg8: memref<1x8xf32, #tpu.memory_space<vmem>>, %arg9: memref<1x16x16x8xf32, #tpu.memory_space<vmem>>) attributes {dimension_semantics = [#tpu.dimension_semantics<parallel>, #tpu.dimension_semantics<parallel>], iteration_bounds = array<i64: 2, 1>, scalar_prefetch = 0 : i64, scratch_operands = 0 : i64, tpu.core_type = #tpu.core_type<tc>, window_params = [{transform_indices = @transform_0, window_bounds = array<i64: 1, 8, 16, 4>}, {transform_indices = @transform_1, window_bounds = array<i64: 1, 16, 16, 4>}, {transform_indices = @transform_2, window_bounds = array<i64: 1, 8, 16, 4>}, {pipeline_mode = #tpu.pipeline_mode<synchronous>, transform_indices = @transform_3, window_bounds = array<i64: 4, 2>}, {pipeline_mode = #tpu.pipeline_mode<synchronous>, transform_indices = @transform_4, window_bounds = array<i64: 1, 2>}, {pipeline_mode = #tpu.pipeline_mode<synchronous>, transform_indices = @transform_5, window_bounds = array<i64: 8, 8>}, {pipeline_mode = #tpu.pipeline_mode<synchronous>, transform_indices = @transform_6, window_bounds = array<i64: 1, 8>}, {transform_indices = @transform_7, window_bounds = array<i64: 1, 16, 16, 8>}]} {
    %c0 = arith.constant 0 : index
    %c2 = arith.constant 2 : index
    %c0_0 = arith.constant 0 : index
    %c0_1 = arith.constant 0 : index
    %0 = vector.load %arg2[%c0, %c2, %c0_0, %c0_1] : memref<1x8x16x4xbf16, #tpu.memory_space<vmem>>, vector<1x6x16x4xbf16>
    %1 = vector.shape_cast %0 : vector<1x6x16x4xbf16> to vector<6x16x4xbf16>
    %c0_2 = arith.constant 0 : index
    %c0_3 = arith.constant 0 : index
    %c0_4 = arith.constant 0 : index
    %c0_5 = arith.constant 0 : index
    %2 = vector.load %arg3[%c0_2, %c0_3, %c0_4, %c0_5] : memref<1x16x16x4xbf16, #tpu.memory_space<vmem>>, vector<1x16x16x4xbf16>
    %3 = vector.shape_cast %2 : vector<1x16x16x4xbf16> to vector<16x16x4xbf16>
    %c0_6 = arith.constant 0 : index
    %c0_7 = arith.constant 0 : index
    %c0_8 = arith.constant 0 : index
    %c0_9 = arith.constant 0 : index
    %4 = vector.load %arg4[%c0_6, %c0_7, %c0_8, %c0_9] : memref<1x8x16x4xbf16, #tpu.memory_space<vmem>>, vector<1x6x16x4xbf16>
    %5 = vector.shape_cast %4 : vector<1x6x16x4xbf16> to vector<6x16x4xbf16>
    %6 = tpu.concatenate %1, %3, %5 in 0 : vector<6x16x4xbf16>, vector<16x16x4xbf16>, vector<6x16x4xbf16> -> vector<28x16x4xbf16>
    %7 = vector.shape_cast %6 : vector<28x16x4xbf16> to vector<448x4xbf16>
    %c0_10 = arith.constant 0 : index
    %c0_11 = arith.constant 0 : index
    %8 = vector.load %arg5[%c0_10, %c0_11] : memref<4x2xbf16, #tpu.memory_space<vmem>>, vector<4x2xbf16>
    %cst = arith.constant dense<0.000000e+00> : vector<448x2xf32>
    %9 = tpu.matmul %7, %8, %cst {dimension_numbers = #tpu.dot_dimension_numbers<[1], [0], [0], [1], [0, 0, 1, 1], [], []>} : vector<448x4xbf16>, vector<4x2xbf16>, vector<448x2xf32> -> vector<448x2xf32>
    %c0_12 = arith.constant 0 : index
    %c0_13 = arith.constant 0 : index
    %10 = vector.load %arg6[%c0_12, %c0_13] : memref<1x2xf32, #tpu.memory_space<vmem>>, vector<1x2xf32>
    %11 = vector.broadcast %10 : vector<1x2xf32> to vector<448x2xf32>
    %12 = arith.addf %9, %11 : vector<448x2xf32>
    %cst_14 = arith.constant 0.000000e+00 : f32
    %13 = vector.broadcast %cst_14 : f32 to vector<448x2xf32>
    %14 = arith.subf %13, %12 : vector<448x2xf32>
    %15 = math.exp %14 : vector<448x2xf32>
    %cst_15 = arith.constant 1.000000e+00 : f32
    %16 = vector.broadcast %cst_15 : f32 to vector<448x2xf32>
    %17 = arith.addf %16, %15 : vector<448x2xf32>
    %18 = tpu.reciprocal %17 {approx = true} : vector<448x2xf32> -> vector<448x2xf32>
    %19 = arith.mulf %12, %18 : vector<448x2xf32>
    %20 = vector.shape_cast %19 : vector<448x2xf32> to vector<28x16x2xf32>
    %c16_i32 = arith.constant 16 : i32
    %21 = arith.muli %arg1, %c16_i32 : i32
    %c6_i32 = arith.constant 6 : i32
    %22 = arith.subi %21, %c6_i32 : i32
    %23 = tpu.iota {dimensions = array<i32: 0>} : vector<28x1x1xi32>
    %24 = vector.broadcast %22 : i32 to vector<28x1x1xi32>
    %25 = arith.addi %24, %23 : vector<28x1x1xi32>
    %c0_i32 = arith.constant 0 : i32
    %26 = vector.broadcast %c0_i32 : i32 to vector<28x1x1xi32>
    %27 = arith.cmpi sge, %25, %26 : vector<28x1x1xi32>
    %c16_i32_16 = arith.constant 16 : i32
    %28 = vector.broadcast %c16_i32_16 : i32 to vector<28x1x1xi32>
    %29 = arith.cmpi slt, %25, %28 : vector<28x1x1xi32>
    %30 = arith.andi %27, %29 : vector<28x1x1xi1>
    %cst_17 = arith.constant 0xFF800000 : f32
    %31 = vector.shape_cast %30 : vector<28x1x1xi1> to vector<28x1x1xi1>
    %32 = vector.broadcast %31 : vector<28x1x1xi1> to vector<28x16x2xi1>
    %33 = vector.broadcast %cst_17 : f32 to vector<28x16x2xf32>
    %34 = arith.select %32, %20, %33 : vector<28x16x2xi1>, vector<28x16x2xf32>
    %cst_18 = arith.constant 0xFF800000 : f32
    %35 = vector.broadcast %cst_18 : f32 to vector<28x6x2xf32>
    %36 = tpu.concatenate %35, %34, %35 in 1 : vector<28x6x2xf32>, vector<28x16x2xf32>, vector<28x6x2xf32> -> vector<28x28x2xf32>
    %37 = vector.extract_strided_slice %36 {offsets = [0, 0, 0], sizes = [28, 27, 2], strides = [1, 1, 1]} : vector<28x28x2xf32> to vector<28x27x2xf32>
    %38 = vector.extract_strided_slice %36 {offsets = [0, 1, 0], sizes = [28, 27, 2], strides = [1, 1, 1]} : vector<28x28x2xf32> to vector<28x27x2xf32>
    %39 = arith.maximumf %37, %38 : vector<28x27x2xf32>
    %40 = vector.extract_strided_slice %39 {offsets = [0, 0, 0], sizes = [28, 25, 2], strides = [1, 1, 1]} : vector<28x27x2xf32> to vector<28x25x2xf32>
    %41 = vector.extract_strided_slice %39 {offsets = [0, 2, 0], sizes = [28, 25, 2], strides = [1, 1, 1]} : vector<28x27x2xf32> to vector<28x25x2xf32>
    %42 = arith.maximumf %40, %41 : vector<28x25x2xf32>
    %43 = vector.extract_strided_slice %42 {offsets = [0, 0, 0], sizes = [28, 21, 2], strides = [1, 1, 1]} : vector<28x25x2xf32> to vector<28x21x2xf32>
    %44 = vector.extract_strided_slice %42 {offsets = [0, 4, 0], sizes = [28, 21, 2], strides = [1, 1, 1]} : vector<28x25x2xf32> to vector<28x21x2xf32>
    %45 = arith.maximumf %43, %44 : vector<28x21x2xf32>
    %46 = vector.extract_strided_slice %42 {offsets = [0, 4, 0], sizes = [28, 16, 2], strides = [1, 1, 1]} : vector<28x25x2xf32> to vector<28x16x2xf32>
    %47 = vector.extract_strided_slice %42 {offsets = [0, 5, 0], sizes = [28, 16, 2], strides = [1, 1, 1]} : vector<28x25x2xf32> to vector<28x16x2xf32>
    %48 = arith.maximumf %46, %47 : vector<28x16x2xf32>
    %49 = vector.extract_strided_slice %45 {offsets = [0, 2, 0], sizes = [28, 16, 2], strides = [1, 1, 1]} : vector<28x21x2xf32> to vector<28x16x2xf32>
    %50 = vector.extract_strided_slice %45 {offsets = [0, 3, 0], sizes = [28, 16, 2], strides = [1, 1, 1]} : vector<28x21x2xf32> to vector<28x16x2xf32>
    %51 = arith.maximumf %49, %50 : vector<28x16x2xf32>
    %52 = vector.extract_strided_slice %45 {offsets = [0, 0, 0], sizes = [28, 16, 2], strides = [1, 1, 1]} : vector<28x21x2xf32> to vector<28x16x2xf32>
    %53 = vector.extract_strided_slice %45 {offsets = [0, 5, 0], sizes = [28, 16, 2], strides = [1, 1, 1]} : vector<28x21x2xf32> to vector<28x16x2xf32>
    %54 = arith.maximumf %52, %53 : vector<28x16x2xf32>
    %55 = vector.extract_strided_slice %48 {offsets = [4, 0, 0], sizes = [24, 16, 2], strides = [1, 1, 1]} : vector<28x16x2xf32> to vector<24x16x2xf32>
    %56 = vector.extract_strided_slice %55 {offsets = [0, 0, 0], sizes = [23, 16, 2], strides = [1, 1, 1]} : vector<24x16x2xf32> to vector<23x16x2xf32>
    %57 = vector.extract_strided_slice %55 {offsets = [1, 0, 0], sizes = [23, 16, 2], strides = [1, 1, 1]} : vector<24x16x2xf32> to vector<23x16x2xf32>
    %58 = arith.maximumf %56, %57 : vector<23x16x2xf32>
    %59 = vector.extract_strided_slice %58 {offsets = [0, 0, 0], sizes = [21, 16, 2], strides = [1, 1, 1]} : vector<23x16x2xf32> to vector<21x16x2xf32>
    %60 = vector.extract_strided_slice %58 {offsets = [2, 0, 0], sizes = [21, 16, 2], strides = [1, 1, 1]} : vector<23x16x2xf32> to vector<21x16x2xf32>
    %61 = arith.maximumf %59, %60 : vector<21x16x2xf32>
    %62 = vector.extract_strided_slice %61 {offsets = [0, 0, 0], sizes = [16, 16, 2], strides = [1, 1, 1]} : vector<21x16x2xf32> to vector<16x16x2xf32>
    %63 = vector.extract_strided_slice %61 {offsets = [1, 0, 0], sizes = [16, 16, 2], strides = [1, 1, 1]} : vector<21x16x2xf32> to vector<16x16x2xf32>
    %64 = arith.maximumf %62, %63 : vector<16x16x2xf32>
    %65 = vector.extract_strided_slice %51 {offsets = [2, 0, 0], sizes = [26, 16, 2], strides = [1, 1, 1]} : vector<28x16x2xf32> to vector<26x16x2xf32>
    %66 = vector.extract_strided_slice %65 {offsets = [0, 0, 0], sizes = [25, 16, 2], strides = [1, 1, 1]} : vector<26x16x2xf32> to vector<25x16x2xf32>
    %67 = vector.extract_strided_slice %65 {offsets = [1, 0, 0], sizes = [25, 16, 2], strides = [1, 1, 1]} : vector<26x16x2xf32> to vector<25x16x2xf32>
    %68 = arith.maximumf %66, %67 : vector<25x16x2xf32>
    %69 = vector.extract_strided_slice %68 {offsets = [0, 0, 0], sizes = [23, 16, 2], strides = [1, 1, 1]} : vector<25x16x2xf32> to vector<23x16x2xf32>
    %70 = vector.extract_strided_slice %68 {offsets = [2, 0, 0], sizes = [23, 16, 2], strides = [1, 1, 1]} : vector<25x16x2xf32> to vector<23x16x2xf32>
    %71 = arith.maximumf %69, %70 : vector<23x16x2xf32>
    %72 = vector.extract_strided_slice %71 {offsets = [0, 0, 0], sizes = [19, 16, 2], strides = [1, 1, 1]} : vector<23x16x2xf32> to vector<19x16x2xf32>
    %73 = vector.extract_strided_slice %71 {offsets = [4, 0, 0], sizes = [19, 16, 2], strides = [1, 1, 1]} : vector<23x16x2xf32> to vector<19x16x2xf32>
    %74 = arith.maximumf %72, %73 : vector<19x16x2xf32>
    %75 = vector.extract_strided_slice %74 {offsets = [0, 0, 0], sizes = [16, 16, 2], strides = [1, 1, 1]} : vector<19x16x2xf32> to vector<16x16x2xf32>
    %76 = vector.extract_strided_slice %74 {offsets = [1, 0, 0], sizes = [16, 16, 2], strides = [1, 1, 1]} : vector<19x16x2xf32> to vector<16x16x2xf32>
    %77 = arith.maximumf %75, %76 : vector<16x16x2xf32>
    %78 = vector.extract_strided_slice %54 {offsets = [0, 0, 0], sizes = [27, 16, 2], strides = [1, 1, 1]} : vector<28x16x2xf32> to vector<27x16x2xf32>
    %79 = vector.extract_strided_slice %54 {offsets = [1, 0, 0], sizes = [27, 16, 2], strides = [1, 1, 1]} : vector<28x16x2xf32> to vector<27x16x2xf32>
    %80 = arith.maximumf %78, %79 : vector<27x16x2xf32>
    %81 = vector.extract_strided_slice %80 {offsets = [0, 0, 0], sizes = [25, 16, 2], strides = [1, 1, 1]} : vector<27x16x2xf32> to vector<25x16x2xf32>
    %82 = vector.extract_strided_slice %80 {offsets = [2, 0, 0], sizes = [25, 16, 2], strides = [1, 1, 1]} : vector<27x16x2xf32> to vector<25x16x2xf32>
    %83 = arith.maximumf %81, %82 : vector<25x16x2xf32>
    %84 = vector.extract_strided_slice %83 {offsets = [0, 0, 0], sizes = [21, 16, 2], strides = [1, 1, 1]} : vector<25x16x2xf32> to vector<21x16x2xf32>
    %85 = vector.extract_strided_slice %83 {offsets = [4, 0, 0], sizes = [21, 16, 2], strides = [1, 1, 1]} : vector<25x16x2xf32> to vector<21x16x2xf32>
    %86 = arith.maximumf %84, %85 : vector<21x16x2xf32>
    %87 = vector.extract_strided_slice %86 {offsets = [0, 0, 0], sizes = [16, 16, 2], strides = [1, 1, 1]} : vector<21x16x2xf32> to vector<16x16x2xf32>
    %88 = vector.extract_strided_slice %86 {offsets = [5, 0, 0], sizes = [16, 16, 2], strides = [1, 1, 1]} : vector<21x16x2xf32> to vector<16x16x2xf32>
    %89 = arith.maximumf %87, %88 : vector<16x16x2xf32>
    %90 = vector.extract_strided_slice %20 {offsets = [6, 0, 0], sizes = [16, 16, 2], strides = [1, 1, 1]} : vector<28x16x2xf32> to vector<16x16x2xf32>
    %91 = arith.truncf %90 : vector<16x16x2xf32> to vector<16x16x2xbf16>
    %92 = arith.truncf %64 : vector<16x16x2xf32> to vector<16x16x2xbf16>
    %93 = arith.truncf %77 : vector<16x16x2xf32> to vector<16x16x2xbf16>
    %94 = arith.truncf %89 : vector<16x16x2xf32> to vector<16x16x2xbf16>
    %95 = tpu.concatenate %91, %92, %93, %94 in 2 : vector<16x16x2xbf16>, vector<16x16x2xbf16>, vector<16x16x2xbf16>, vector<16x16x2xbf16> -> vector<16x16x8xbf16>
    %96 = vector.shape_cast %95 : vector<16x16x8xbf16> to vector<256x8xbf16>
    %c0_19 = arith.constant 0 : index
    %c0_20 = arith.constant 0 : index
    %97 = vector.load %arg7[%c0_19, %c0_20] : memref<8x8xbf16, #tpu.memory_space<vmem>>, vector<8x8xbf16>
    %cst_21 = arith.constant dense<0.000000e+00> : vector<256x8xf32>
    %98 = tpu.matmul %96, %97, %cst_21 {dimension_numbers = #tpu.dot_dimension_numbers<[1], [0], [0], [1], [0, 0, 1, 1], [], []>} : vector<256x8xbf16>, vector<8x8xbf16>, vector<256x8xf32> -> vector<256x8xf32>
    %c0_22 = arith.constant 0 : index
    %c0_23 = arith.constant 0 : index
    %99 = vector.load %arg8[%c0_22, %c0_23] : memref<1x8xf32, #tpu.memory_space<vmem>>, vector<1x8xf32>
    %100 = vector.broadcast %99 : vector<1x8xf32> to vector<256x8xf32>
    %101 = arith.addf %98, %100 : vector<256x8xf32>
    %cst_24 = arith.constant 0.000000e+00 : f32
    %102 = vector.broadcast %cst_24 : f32 to vector<256x8xf32>
    %103 = arith.subf %102, %101 : vector<256x8xf32>
    %104 = math.exp %103 : vector<256x8xf32>
    %cst_25 = arith.constant 1.000000e+00 : f32
    %105 = vector.broadcast %cst_25 : f32 to vector<256x8xf32>
    %106 = arith.addf %105, %104 : vector<256x8xf32>
    %107 = tpu.reciprocal %106 {approx = true} : vector<256x8xf32> -> vector<256x8xf32>
    %108 = arith.mulf %101, %107 : vector<256x8xf32>
    %109 = vector.shape_cast %108 : vector<256x8xf32> to vector<1x16x16x8xf32>
    %c0_26 = arith.constant 0 : index
    %c0_27 = arith.constant 0 : index
    %c0_28 = arith.constant 0 : index
    %c0_29 = arith.constant 0 : index
    %110 = vector.load %arg9[%c0_26, %c0_27, %c0_28, %c0_29] : memref<1x16x16x8xf32, #tpu.memory_space<vmem>>, vector<1x16x16x8xf32>
    tpu.vector_store %arg9[%c0_26, %c0_27, %c0_28, %c0_29], %109 {strides = array<i32>} : memref<1x16x16x8xf32, #tpu.memory_space<vmem>>, vector<1x16x16x8xf32>,
    return
  }
  func.func @transform_0(%arg0: i32, %arg1: i32) -> (i32, i32, i32, i32) {
    %c2_i32 = arith.constant 2 : i32
    %0 = arith.muli %arg1, %c2_i32 : i32
    %c1_i32 = arith.constant 1 : i32
    %1 = arith.subi %0, %c1_i32 : i32
    %c0_i32 = arith.constant 0 : i32
    %2 = arith.maxsi %1, %c0_i32 : i32
    %c0_i32_0 = arith.constant 0 : i32
    %c0_i32_1 = arith.constant 0 : i32
    %c0_i32_2 = arith.constant 0 : i32
    return %arg0, %2, %c0_i32_0, %c0_i32_1 : i32, i32, i32, i32
  }
  func.func @transform_1(%arg0: i32, %arg1: i32) -> (i32, i32, i32, i32) {
    %c0_i32 = arith.constant 0 : i32
    %c0_i32_0 = arith.constant 0 : i32
    %c0_i32_1 = arith.constant 0 : i32
    return %arg0, %arg1, %c0_i32, %c0_i32_0 : i32, i32, i32, i32
  }
  func.func @transform_2(%arg0: i32, %arg1: i32) -> (i32, i32, i32, i32) {
    %c1_i32 = arith.constant 1 : i32
    %0 = arith.addi %arg1, %c1_i32 : i32
    %c2_i32 = arith.constant 2 : i32
    %1 = arith.muli %0, %c2_i32 : i32
    %c1_i32_0 = arith.constant 1 : i32
    %2 = arith.minsi %1, %c1_i32_0 : i32
    %c0_i32 = arith.constant 0 : i32
    %c0_i32_1 = arith.constant 0 : i32
    %c0_i32_2 = arith.constant 0 : i32
    return %arg0, %2, %c0_i32, %c0_i32_1 : i32, i32, i32, i32
  }
  func.func @transform_3(%arg0: i32, %arg1: i32) -> (i32, i32) {
    %c0_i32 = arith.constant 0 : i32
    %c0_i32_0 = arith.constant 0 : i32
    %c0_i32_1 = arith.constant 0 : i32
    return %c0_i32, %c0_i32_0 : i32, i32
  }
  func.func @transform_4(%arg0: i32, %arg1: i32) -> (i32, i32) {
    %c0_i32 = arith.constant 0 : i32
    %c0_i32_0 = arith.constant 0 : i32
    %c0_i32_1 = arith.constant 0 : i32
    return %c0_i32, %c0_i32_0 : i32, i32
  }
  func.func @transform_5(%arg0: i32, %arg1: i32) -> (i32, i32) {
    %c0_i32 = arith.constant 0 : i32
    %c0_i32_0 = arith.constant 0 : i32
    %c0_i32_1 = arith.constant 0 : i32
    return %c0_i32, %c0_i32_0 : i32, i32
  }
  func.func @transform_6(%arg0: i32, %arg1: i32) -> (i32, i32) {
    %c0_i32 = arith.constant 0 : i32
    %c0_i32_0 = arith.constant 0 : i32
    %c0_i32_1 = arith.constant 0 : i32
    return %c0_i32, %c0_i32_0 : i32, i32
  }
  func.func @transform_7(%arg0: i32, %arg1: i32) -> (i32, i32, i32, i32) {
    %c0_i32 = arith.constant 0 : i32
    %c0_i32_0 = arith.constant 0 : i32
    %c0_i32_1 = arith.constant 0 : i32
    return %arg0, %arg1, %c0_i32, %c0_i32_0 : i32, i32, i32, i32
  }
}

</mosaic_0001>

<bundles_post_ra>
// kernel: spp_forward.1
= control target key start
LH: loop header
LB: loop body
LE: loop exit
PB: predicated region body
PF: predicated region fallthrough
CT: control target
= control target key end

     0   :  { %s6163_s24 = smov 0   ;;  %s6165_s25 = smov 0   ;;  %s9856_s0 = inlined_call_operand.vmem [shape: bf16[2,16,16,4], index: 0, kind: input, shape index: {}, may-alias: {0,1,2}]   ;;  %s9857_s1 = inlined_call_operand.vmem [shape: bf16[2,16,16,4], index: 1, kind: input, shape index: {}, may-alias: {0,1,2}]   ;;  %s9858_s2 = inlined_call_operand.vmem [shape: bf16[2,16,16,4], index: 2, kind: input, shape index: {}, may-alias: {0,1,2}]   ;;  %s9859_s3 = inlined_call_operand.vmem [shape: bf16[4,2], index: 3, kind: input, shape index: {}]   ;;  %s9860_s4 = inlined_call_operand.vmem [shape: f32[1,2], index: 4, kind: input, shape index: {}]   ;;  %s9861_s5 = inlined_call_operand.vmem [shape: bf16[8,8], index: 5, kind: input, shape index: {}]   ;;  %s9862_s6 = inlined_call_operand.vmem [shape: f32[1,8], index: 6, kind: input, shape index: {}]   ;;  %s9863_s7 = inlined_call_operand.vmem [shape: f32[2,16,16,8], index: 7, kind: output, shape index: {}]  }
   0x1   :  { %s6167_s26 = smov 0  }
   0x2 LB: > { %s29_s27 = sadd.s32 1, %s6113_s25  ;;  %p5535_p0 = scmp.ge.s32.totalorder %s6117_s26, 1  ;;  %s6117_s26 = sphi %s6167_s26, %s17_s26   ;;  %s6113_s25 = sphi %s6165_s25, %s10595_s25   ;;  %s6109_s24 = sphi %s6163_s24, %s10594_s24  }
   0x3   : > { %p31_p1 = scmp.ge.s32.totalorder %s29_s27, 2  ;;  %p327_p2 = scmp.lt.s32.totalorder %s6117_s26, 3 }
   0x5   : > { %s10597_s27 = smov (%p31_p1, %s29_s27), 0  ;;  %p328_p3 = pnand %p5535_p0, %p327_p2 }
   0x7   : > { %331 = sbr.rel (%p328_p3) target bundleno = 1123 (0x463), region = 48 }
   0xe   : > { %v515_v0 = vld [vmem:[%s9859_s3] sm:$0x3]  ;;  %vm748_vm0 = vcmask 1041408   ;;  %p402_p4 = scmp.lt.s32.totalorder %s6109_s24, 1  ;;  %vm663_vm1 = vcmask 31744   ;;  %v6119_v63 = vmov -inf  }
   0xf   : > { %5778 = vmatprep.subr.msk.bf16.mxu0 %vm748_vm0, %v515_v0  ;;  %v750_v1 = vsel %vm748_vm0, %v515_v0, 0  ;;  %5779 = vmatprep.subr.msk.bf16.mxu1 %vm748_vm0, %v515_v0  ;;  %v6240_v36 = vld [vmem:[%s9860_s4] ss:$0 sm:$0xff]  ;;  %v6272_v0 = vrot.slane %v6119_v63, 1  ;;  %vm1627_vm2 = vcmask 1045504   ;;  %vm1909_vm3 = vcmask 1046528  }
  0x10   : > { %5685 = vmatpush3.bf16.msra.mxu0 %v750_v1  ;;  %s10599_s24 = smov (!%p402_p4, %s6109_s24), 1  ;;  %5777 = vmatpush3.bf16.msra.mxu1 %v750_v1  ;;  %vm2756_vm4 = vcmask 1043456   ;;  %vm3662_vm5 = vcmask 1042432   ;;  %s6120_s18 = smov 2   ;;  %vm4850_vm6 = vcmask 15360   ;;  %vm4931_vm7 = vcmask 48128  }
  0x11   : > { %s6187_s30 = sshll.u32 %s10599_s24, 7  ;;  %s6121_s19 = smov 4   ;;  %vm4972_vm8 = vcmask 64512  }
  0x12   : > { %s410_s10 = scalar_lea.vmem %s9856_s0, %s6187_s30  ;;  %s6200_s13 = scalar_lea.vmem %s9857_s1, %s6187_s30 }
  0x13   : > { %v5809_v2 = vld [vmem:[%s410_s10 + $0x10] sm:$0xff]   ;;  %v5810_v3 = vld [vmem:[%s410_s10 + $0x18] sm:$0xff]   ;;  %v5811_v4 = vld [vmem:[%s410_s10 + $0x20] sm:$0xff]   ;;  %s6122_s20 = smov 6   ;;  %s5635_s21 = sadd.s32 64, %s6187_s30 }
  0x14   : > { %5686 = vmatprep.mubr.msk.bf16.mxu0 %vm663_vm1, %v5809_v2  ;;  %v5812_v5 = vld [vmem:[%s410_s10 + $0x28] sm:$0xff]   ;;  %v5813_v6 = vld [vmem:[%s410_s10 + $0x30] sm:$0xff]   ;;  %v5814_v7 = vld [vmem:[%s410_s10 + $0x38] sm:$0xff]   ;;  %s8527_s30 = scalar_lea.vmem %s9858_s2, %s5635_s21  ;;  %s5636_s12 = sshll.u32 %s10599_s24, 8 }
  0x15   : > { %5687 = vmatmul.mubr.msk.bf16.vlgmr.msra.gmra.mrb[0].mxu0 %vm663_vm1, %v5810_v3  ;;  %v5815_v8 = vld [vmem:[%s6200_s13] sm:$0xff]   ;;  %v5816_v9 = vld [vmem:[%s6200_s13 + $0x8] sm:$0xff]   ;;  %v5817_v10 = vld [vmem:[%s6200_s13 + $0x10] sm:$0xff]   ;;  %s9685_s15 = scalar_lea.vmem %s9863_s7, %s5636_s12 }
  0x16   : > { %5690 = vmatprep.mubr.msk.bf16.mxu0 %vm663_vm1, %v5811_v4  ;;  %v5818_v11 = vld [vmem:[%s6200_s13 + $0x18] sm:$0xff]   ;;  %v5819_v12 = vld [vmem:[%s6200_s13 + $0x20] sm:$0xff]   ;;  %v5820_v13 = vld [vmem:[%s6200_s13 + $0x28] sm:$0xff]  }
  0x17   : > { %v5821_v14 = vld [vmem:[%s6200_s13 + $0x30] sm:$0xff]   ;;  %v5822_v15 = vld [vmem:[%s6200_s13 + $0x38] sm:$0xff]   ;;  %v5823_v16 = vld [vmem:[%s6200_s13 + $0x40] sm:$0xff]  }
  0x18   : > { %v5824_v17 = vld [vmem:[%s6200_s13 + $0x48] sm:$0xff]   ;;  %v5825_v18 = vld [vmem:[%s6200_s13 + $0x50] sm:$0xff]   ;;  %v5826_v19 = vld [vmem:[%s6200_s13 + $0x58] sm:$0xff]  }
  0x19   : > { %v5827_v20 = vld [vmem:[%s6200_s13 + $0x60] sm:$0xff]   ;;  %v5828_v21 = vld [vmem:[%s6200_s13 + $0x68] sm:$0xff]   ;;  %v5829_v22 = vld [vmem:[%s6200_s13 + $0x70] sm:$0xff]  }
  0x1a   : > { %v5830_v23 = vld [vmem:[%s6200_s13 + $0x78] sm:$0xff]  }
  0x1d   : > { %5691 = vmatmul.mubr.msk.bf16.gmra.mrb[4].mxu0 %vm663_vm1, %v5812_v5  ;;  %v6277_v5 = vrot.slane %v6272_v0, 2 }
  0x1e   : > { %5694 = vmatprep.mubr.msk.bf16.mxu0 %vm663_vm1, %v5813_v6 }
  0x25   : > { %5695 = vmatmul.mubr.msk.bf16.gmra.mrb[8].mxu0 %vm663_vm1, %v5814_v7 }
  0x26   : > { %5698 = vmatprep.mubr.msk.bf16.mxu0 %vm663_vm1, %v5815_v8 }
  0x2d   : > { %5699 = vmatmul.mubr.msk.bf16.gmra.mrb[12].mxu0 %vm663_vm1, %v5816_v9 }
  0x2e   : > { %5702 = vmatprep.mubr.msk.bf16.mxu0 %vm663_vm1, %v5817_v10 }
  0x35   : > { %5703 = vmatmul.mubr.msk.bf16.gmra.mrb[16].mxu0 %vm663_vm1, %v5818_v11 }
  0x36   : > { %5706 = vmatprep.mubr.msk.bf16.mxu0 %vm663_vm1, %v5819_v12 }
  0x3d   : > { %5707 = vmatmul.mubr.msk.bf16.gmra.mrb[20].mxu0 %vm663_vm1, %v5820_v13 }
  0x3e   : > { %5710 = vmatprep.mubr.msk.bf16.mxu0 %vm663_vm1, %v5821_v14 }
  0x45   : > { %5711 = vmatmul.mubr.msk.bf16.gmra.mrb[24].mxu0 %vm663_vm1, %v5822_v15 }
  0x46   : > { %5714 = vmatprep.mubr.msk.bf16.mxu0 %vm663_vm1, %v5823_v16 }
  0x4d   : > { %5715 = vmatmul.mubr.msk.bf16.gmra.mrb[28].mxu0 %vm663_vm1, %v5824_v17 }
  0x4e   : > { %5718 = vmatprep.mubr.msk.bf16.mxu0 %vm663_vm1, %v5825_v18  ;;  %v2589_v18 = vmax.f32 %v6272_v0, %v6277_v5 }
  0x55   : > { %5719 = vmatmul.mubr.msk.bf16.gmra.mrb[32].mxu0 %vm663_vm1, %v5826_v19 }
  0x56   : > { %5722 = vmatprep.mubr.msk.bf16.mxu0 %vm663_vm1, %v5827_v20 }
  0x5d   : > { %5723 = vmatmul.mubr.msk.bf16.gmra.mrb[36].mxu0 %vm663_vm1, %v5828_v21 }
  0x5e   : > { %5726 = vmatprep.mubr.msk.bf16.mxu0 %vm663_vm1, %v5829_v22 }
  0x65   : > { %5727 = vmatmul.mubr.msk.bf16.gmra.mrb[40].mxu0 %vm663_vm1, %v5830_v23 }
  0xe8   : > { %v5688_v24 = vpop.f32.mrb[0].mxu0 }
  0xe9   : > { %v786_v25 = vpop.f32.mrb[1].mxu0 }
  0xea   : > { %v5689_v26 = vpop.f32.mrb[2].mxu0 }
  0xeb   : > { %v789_v27 = vpop.f32.mrb[3].mxu0 }
  0xf0   : > { %v5692_v28 = vpop.f32.mrb[4].mxu0 }
  0xf1   : > { %v802_v29 = vpop.f32.mrb[5].mxu0 }
  0xf2   : > { %v5693_v30 = vpop.f32.mrb[6].mxu0 }
  0xf3   : > { %v805_v31 = vpop.f32.mrb[7].mxu0 }
  0xf8   : > { %v5696_v32 = vpop.f32.mrb[8].mxu0 }
  0xf9   : > { %v818_v33 = vpop.f32.mrb[9].mxu0 }
  0xfa   : > { %v5697_v34 = vpop.f32.mrb[10].mxu0 }
  0xfb   : > { %v821_v35 = vpop.f32.mrb[11].mxu0  ;;  %v6297_v34 = vrot.slane %v6119_v63, 2 }
 0x100   : > { %v5700_v37 = vpop.f32.mrb[12].mxu0 }
 0x101   : > { %v6243_v38 = vadd.f32 %v5700_v37, %v6240_v36  ;;  %v834_v39 = vpop.f32.mrb[13].mxu0  ;;  %v6299_v37 = vrot.slane %v2589_v18, 4 }
 0x102   : > { %v6246_v40 = vadd.f32 %v6240_v36, %v834_v39  ;;  %v5701_v41 = vpop.f32.mrb[14].mxu0 }
 0x103   : > { %v1023_v42 = vsub.f32 0.0, %v6243_v38  ;;  %v6250_v43 = vadd.f32 %v5701_v41, %v6240_v36  ;;  %v837_v44 = vpop.f32.mrb[15].mxu0 }
 0x104   : > { %v1021_v45 = vsub.f32 0.0, %v6246_v40  ;;  %v6254_v46 = vadd.f32 %v6240_v36, %v837_v44 }
 0x105   : > { %v1093_v47 = vmul.f32 1.442695, %v1023_v42  ;;  %v1024_v48 = vsub.f32 0.0, %v6250_v43 }
 0x106   : > { %v1089_v49 = vmul.f32 1.442695, %v1021_v45  ;;  %v1022_v50 = vsub.f32 0.0, %v6254_v46 }
 0x107   : > { %5837 = vpow2.f32 %v1093_v47  ;;  %v1095_v51 = vmul.f32 1.442695, %v1024_v48  ;;  %v6309_v48 = vsel %vm1627_vm2, -inf, %v6297_v34 }
 0x108   : > { %5839 = vpow2.f32 %v1089_v49  ;;  %v1091_v52 = vmul.f32 1.442695, %v1022_v50  ;;  %v5704_v53 = vpop.f32.mrb[16].mxu0 }
 0x109   : > { %5841 = vpow2.f32 %v1095_v51  ;;  %v6259_v54 = vadd.f32 %v5704_v53, %v6240_v36  ;;  %v850_v55 = vpop.f32.mrb[17].mxu0 }
 0x10a   : > { %5843 = vpow2.f32 %v1091_v52  ;;  %v6262_v56 = vadd.f32 %v6240_v36, %v850_v55  ;;  %v5705_v57 = vpop.f32.mrb[18].mxu0 }
 0x10b   : > { %v1027_v58 = vsub.f32 0.0, %v6259_v54  ;;  %v6266_v59 = vadd.f32 %v5705_v57, %v6240_v36  ;;  %v853_v60 = vpop.f32.mrb[19].mxu0 }
 0x10c   : > { %v1025_v61 = vsub.f32 0.0, %v6262_v56  ;;  %v6270_v62 = vadd.f32 %v6240_v36, %v853_v60 }
 0x10d   : > { %v1101_v1 = vmul.f32 1.442695, %v1027_v58  ;;  %v1028_v2 = vsub.f32 0.0, %v6266_v59 }
 0x10e   : > { %v1097_v3 = vmul.f32 1.442695, %v1025_v61  ;;  %v1026_v4 = vsub.f32 0.0, %v6270_v62 }
 0x10f   : > { %5845 = vpow2.f32 %v1101_v1  ;;  %v1103_v6 = vmul.f32 1.442695, %v1028_v2 }
 0x110   : > { %5847 = vpow2.f32 %v1097_v3  ;;  %v1099_v7 = vmul.f32 1.442695, %v1026_v4  ;;  %v5708_v8 = vpop.f32.mrb[20].mxu0 }
 0x111   : > { %v5838_v9 = vpop.eup %5837  ;;  %5849 = vpow2.f32 %v1103_v6  ;;  %v6280_v10 = vadd.f32 %v5708_v8, %v6240_v36  ;;  %v866_v11 = vpop.f32.mrb[21].mxu0  ;;  %v6323_v6 = vsel %vm1627_vm2, %v6297_v34, -inf }
 0x112   : > { %v5840_v12 = vpop.eup %5839  ;;  %v1191_v13 = vadd.f32 1.0, %v5838_v9  ;;  %5851 = vpow2.f32 %v1099_v7  ;;  %v6283_v14 = vadd.f32 %v6240_v36, %v866_v11  ;;  %v5709_v15 = vpop.f32.mrb[22].mxu0 }
 0x113   : > { %v5842_v16 = vpop.eup %5841  ;;  %v1189_v17 = vadd.f32 1.0, %v5840_v12  ;;  %v1031_v19 = vsub.f32 0.0, %v6280_v10  ;;  %v6289_v20 = vadd.f32 %v5709_v15, %v6240_v36  ;;  %v869_v21 = vpop.f32.mrb[23].mxu0 }
 0x114   : > { %v5844_v22 = vpop.eup %5843  ;;  %5853 = vrcp.f32 %v1191_v13  ;;  %v1192_v23 = vadd.f32 1.0, %v5842_v16  ;;  %v1029_v24 = vsub.f32 0.0, %v6283_v14  ;;  %v6293_v25 = vadd.f32 %v6240_v36, %v869_v21 }
 0x115   : > { %5855 = vrcp.f32 %v1189_v17  ;;  %v1190_v26 = vadd.f32 1.0, %v5844_v22  ;;  %v1109_v27 = vmul.f32 1.442695, %v1031_v19  ;;  %v1032_v28 = vsub.f32 0.0, %v6289_v20 }
 0x116   : > { %5857 = vrcp.f32 %v1192_v23  ;;  %v1105_v29 = vmul.f32 1.442695, %v1029_v24  ;;  %v1030_v30 = vsub.f32 0.0, %v6293_v25 }
 0x117   : > { %5859 = vrcp.f32 %v1190_v26  ;;  %v1111_v31 = vmul.f32 1.442695, %v1032_v28 }
 0x118   : > { %5861 = vpow2.f32 %v1109_v27  ;;  %v1107_v32 = vmul.f32 1.442695, %v1030_v30  ;;  %v5712_v33 = vpop.f32.mrb[24].mxu0 }
 0x119   : > { %v5846_v35 = vpop.eup %5845  ;;  %5863 = vpow2.f32 %v1105_v29  ;;  %v6302_v39 = vadd.f32 %v5712_v33, %v6240_v36  ;;  %v882_v41 = vpop.f32.mrb[25].mxu0 }
 0x11a   : > { %v5848_v42 = vpop.eup %5847  ;;  %v1195_v44 = vadd.f32 1.0, %v5846_v35  ;;  %5865 = vpow2.f32 %v1111_v31  ;;  %v6305_v45 = vadd.f32 %v6240_v36, %v882_v41  ;;  %v5713_v47 = vpop.f32.mrb[26].mxu0 }
 0x11b   : > { %v5850_v49 = vpop.eup %5849  ;;  %v1193_v50 = vadd.f32 1.0, %v5848_v42  ;;  %5867 = vpow2.f32 %v1107_v32  ;;  %v1035_v51 = vsub.f32 0.0, %v6302_v39  ;;  %v6313_v52 = vadd.f32 %v5713_v47, %v6240_v36  ;;  %v885_v53 = vpop.f32.mrb[27].mxu0 }
 0x11c   : > { %v5852_v55 = vpop.eup %5851  ;;  %5869 = vrcp.f32 %v1195_v44  ;;  %v1196_v57 = vadd.f32 1.0, %v5850_v49  ;;  %v1033_v58 = vsub.f32 0.0, %v6305_v45  ;;  %v6317_v60 = vadd.f32 %v6240_v36, %v885_v53 }
 0x11d   : > { %5871 = vrcp.f32 %v1193_v50  ;;  %v1194_v61 = vadd.f32 1.0, %v5852_v55  ;;  %v1117_v63 = vmul.f32 1.442695, %v1035_v51  ;;  %v1036_v1 = vsub.f32 0.0, %v6313_v52 }
 0x11e   : > { %v5854_v2 = vpop.eup %5853  ;;  %5873 = vrcp.f32 %v1196_v57  ;;  %v1113_v3 = vmul.f32 1.442695, %v1033_v58  ;;  %v1034_v4 = vsub.f32 0.0, %v6317_v60 }
 0x11f   : > { %v5856_v7 = vpop.eup %5855  ;;  %v6326_v8 = vmul.f32 %v5854_v2, %v6243_v38  ;;  %5875 = vrcp.f32 %v1194_v61  ;;  %v1119_v9 = vmul.f32 1.442695, %v1036_v1 }
 0x120   : > { %v5858_v12 = vpop.eup %5857  ;;  %v6330_v13 = vmul.f32 %v5856_v7, %v6246_v40  ;;  %5877 = vpow2.f32 %v1117_v63  ;;  %v6332_v15 = vmul.f32 1.442695, %v1034_v4  ;;  %v5716_v16 = vpop.f32.mrb[28].mxu0 }
 0x121   : > { %10111 = vst [vmem:[#allocation2_spill] sm:$0xff] %v6326_v8  ;;  %v5860_v18 = vpop.eup %5859  ;;  %v1649_v19 = vrot.slane %v6326_v8, 2  ;;  %v6337_v38 = vmul.f32 %v5858_v12, %v6250_v43  ;;  %5879 = vpow2.f32 %v1113_v3  ;;  %v6340_v21 = vadd.f32 %v5716_v16, %v6240_v36  ;;  %v898_v22 = vpop.f32.mrb[29].mxu0 }
 0x122   : > { %10112 = vst [vmem:[#allocation3_spill] sm:$0xff] %v6330_v13  ;;  %v5862_v23 = vpop.eup %5861  ;;  %v1646_v40 = vrot.slane %v6330_v13, 2  ;;  %v6344_v24 = vmul.f32 %v5860_v18, %v6254_v46  ;;  %5881 = vpow2.f32 %v1119_v9  ;;  %v6347_v26 = vadd.f32 %v6240_v36, %v898_v22  ;;  %v6349_v27 = vpop.f32.mrb[30].mxu0 }
 0x123   : > { %10113 = vst [vmem:[#allocation4_spill] sm:$0xff] %v6337_v38  ;;  %v5864_v28 = vpop.eup %5863  ;;  %v1803_v43 = vsel %vm1627_vm2, -inf, %v1649_v19  ;;  %v1650_v29 = vrot.slane %v6337_v38, 2  ;;  %v1199_v31 = vadd.f32 1.0, %v5862_v23  ;;  %v6355_v32 = vpop.f32.mrb[31].mxu0 }
 0x124   : > { %10114 = vst [vmem:[#allocation5_spill] sm:$0xff] %v6344_v24  ;;  %v6357_v33 = vpop.eup %5865  ;;  %v1953_v46 = vrot.slane %v1803_v43, 1  ;;  %v1802_v35 = vsel %vm1627_vm2, -inf, %v1646_v40  ;;  %v1647_v41 = vrot.slane %v6344_v24, 2  ;;  %v6372_v3 = vadd.f32 1.0, %v5864_v28 }
 0x125   : > { %v6363_v44 = vpop.eup %5867  ;;  %v1947_v47 = vrot.slane %v1802_v35, 1  ;;  %v1651_v49 = vsel %vm1627_vm2, %v1649_v19, %v1650_v29  ;;  %v1831_v50 = vsel %vm1627_vm2, %v1650_v29, -inf  ;;  %5883 = vrcp.f32 %v1199_v31 }
 0x126   : > { %v5870_v51 = vpop.eup %5869  ;;  %v1954_v53 = vrot.slane %v1651_v49, 1  ;;  %v1956_v55 = vrot.slane %v1831_v50, 1  ;;  %v1648_v57 = vsel %vm1627_vm2, %v1646_v40, %v1647_v41  ;;  %v1830_v58 = vsel %vm1627_vm2, %v1647_v41, -inf }
 0x127   : > { %v5872_v61 = vpop.eup %5871  ;;  %v1948_v63 = vrot.slane %v1648_v57, 1  ;;  %v1950_v1 = vrot.slane %v1830_v58, 1  ;;  %v6370_v2 = vmul.f32 %v5870_v51, %v6259_v54  ;;  %5885 = vrcp.f32 %v6372_v3 }
 0x128   : > { %v5874_v4 = vpop.eup %5873  ;;  %v1955_v7 = vsel %vm1909_vm3, %v1953_v46, %v1954_v53  ;;  %v1957_v9 = vsel %vm1909_vm3, %v1954_v53, %v1956_v55  ;;  %v1958_v12 = vsel %vm1909_vm3, %v1956_v55, %v6272_v0  ;;  %v6379_v16 = vmul.f32 %v5872_v61, %v6262_v56  ;;  %v6381_v18 = vpop.f32.mrb[32].mxu0 }
 0x129   : > { %10115 = vst [vmem:[#allocation6_spill] sm:$0xff] %v6370_v2  ;;  %v5876_v19 = vpop.eup %5875  ;;  %v2185_v22 = vmax.f32 %v1803_v43, %v1955_v7  ;;  %v2186_v23 = vmax.f32 %v1651_v49, %v1957_v9  ;;  %v2187_v54 = vmax.f32 %v1831_v50, %v1958_v12  ;;  %v1949_v40 = vsel %vm1909_vm3, %v1947_v47, %v1948_v63  ;;  %v6384_v28 = vpop.f32.mrb[33].mxu0 }
 0x12a   : > { %10116 = vst [vmem:[#allocation7_spill] sm:$0xff] %v6379_v16  ;;  %v6386_v29 = vpop.eup %5877  ;;  %v1951_v31 = vsel %vm1909_vm3, %v1948_v63, %v1950_v1  ;;  %v1952_v46 = vsel %vm1909_vm3, %v1950_v1, %v6272_v0  ;;  %v2182_v41 = vmax.f32 %v1802_v35, %v1949_v40  ;;  %v1655_v56 = vrot.slane %v6370_v2, 2  ;;  %v6392_v51 = vpop.f32.mrb[34].mxu0 }
 0x12b   : > { %v6394_v53 = vpop.eup %5879  ;;  %v2375_v43 = vrot.slane %v2185_v22, 2  ;;  %v2376_v49 = vrot.slane %v2186_v23, 2  ;;  %v2378_v50 = vrot.slane %v2187_v54, 2  ;;  %v2183_v47 = vmax.f32 %v1648_v57, %v1951_v31  ;;  %v6396_v55 = vpop.f32.mrb[35].mxu0 }
 0x12c   : > { %v6398_v61 = vpop.eup %5881  ;;  %v2184_v7 = vmax.f32 %v1830_v58, %v1952_v46  ;;  %v2369_v63 = vrot.slane %v2182_v41, 2  ;;  %v1805_v9 = vsel %vm1627_vm2, -inf, %v1655_v56  ;;  %v9864_v35 = vrot.slane %v6379_v16, 2 }
 0x12d   : > { %v2377_v1 = vsel %vm1627_vm2, %v2375_v43, %v2376_v49  ;;  %v2379_v12 = vsel %vm1627_vm2, %v2376_v49, %v2378_v50  ;;  %v2380_v40 = vsel %vm1627_vm2, %v2378_v50, %v6277_v5  ;;  %v2370_v30 = vrot.slane %v2183_v47, 2 }
 0x12e   : > { %v6406_v42 = vmax.f32 %v2185_v22, %v2377_v1  ;;  %v6408_v57 = vmax.f32 %v2186_v23, %v2379_v12  ;;  %v6410_v31 = vmax.f32 %v2187_v54, %v2380_v40  ;;  %v2372_v58 = vrot.slane %v2184_v7, 2 }
 0x12f   : > { %v5884_v46 = vpop.eup %5883  ;;  %v2371_v11 = vsel %vm1627_vm2, %v2369_v63, %v2370_v30  ;;  %v1965_v17 = vrot.slane %v1805_v9, 1  ;;  %v6416_v43 = vsel %vm1627_vm2, -inf, %v9864_v35  ;;  %v6419_v49 = vmul.f32 %v5874_v4, %v6266_v59 }
 0x130   : > { %10117 = vst [vmem:[#allocation8_spill] sm:$0xff] %v6408_v57  ;;  %10118 = vst [vmem:[#allocation9_spill] sm:$0xff] %v6410_v31  ;;  %v2800_v22 = vrot.slane %v6406_v42, 4  ;;  %v2801_v23 = vrot.slane %v6408_v57, 4  ;;  %v2803_v54 = vrot.slane %v6410_v31, 4  ;;  %v2373_v50 = vsel %vm1627_vm2, %v2370_v30, %v2372_v58  ;;  %v6425_v1 = vpop.f32.mrb[36].mxu0 }
 0x131   : > { %10119 = vst [vmem:[#allocation10_spill] sm:$0xff] %v6419_v49  ;;  %v2374_v63 = vsel %vm1627_vm2, %v2372_v58, %v6277_v5  ;;  %v6429_v12 = vmax.f32 %v2182_v41, %v2371_v11  ;;  %v6431_v40 = vmax.f32 %v2183_v47, %v2373_v50  ;;  %v1959_v59 = vrot.slane %v6416_v43, 1  ;;  %v6434_v4 = vpop.f32.mrb[37].mxu0 }
 0x132   : > { %v6437_v35 = vsel %vm2756_vm4, %v2800_v22, %v2801_v23  ;;  %v2804_v8 = vsel %vm2756_vm4, %v2801_v23, %v2803_v54  ;;  %v2805_v30 = vsel %vm2756_vm4, %v2803_v54, %v6299_v37  ;;  %v6442_v38 = vmax.f32 %v2184_v7, %v2374_v63  ;;  %v6444_v13 = vpop.f32.mrb[38].mxu0 }
 0x133   : > { %10120 = vst [vmem:[#allocation11_spill] sm:$0xff] %v6437_v35  ;;  %v6447_v11 = vmax.f32 %v6408_v57, %v2804_v8  ;;  %v6450_v41 = vmax.f32 %v6410_v31, %v2805_v30  ;;  %v2794_v47 = vrot.slane %v6429_v12, 4  ;;  %v2795_v58 = vrot.slane %v6431_v40, 4  ;;  %v6454_v22 = vpop.f32.mrb[39].mxu0  ;;  %v5886_v35 = vpop.eup %5885 }
 0x134   : > { %v2797_v23 = vrot.slane %v6442_v38, 4  ;;  %v1656_v54 = vrot.slane %v6419_v49, 2  ;;  %v6461_v50 = vmul.f32 %v5876_v19, %v6270_v62  ;;  %v6467_v63 = vmul.f32 %v5884_v46, %v6280_v10 }
 0x135   : > { %10121 = vst [vmem:[#allocation12_spill] sm:$0xff] %v6447_v11  ;;  %10122 = vst [vmem:[#allocation13_spill] sm:$0xff] %v6450_v41  ;;  %v6464_v8 = vsel %vm2756_vm4, %v2794_v47, %v2795_v58  ;;  %v1200_v30 = vadd.f32 1.0, %v6357_v33  ;;  %v10128_v33 = vrot.slane %v6379_v16, 2 }
 0x136   : > { %10123 = vst [vmem:[#allocation14_spill] sm:$0xff] %v6461_v50  ;;  %10124 = vst [vmem:[#allocation15_spill] sm:$0xff] %v6464_v8  ;;  %v2798_v24 = vsel %vm2756_vm4, %v2795_v58, %v2797_v23  ;;  %v2799_v41 = vsel %vm2756_vm4, %v2797_v23, %v6299_v37  ;;  %v1657_v7 = vsel %vm1627_vm2, %v1655_v56, %v1656_v54  ;;  %v1833_v62 = vsel %vm1627_vm2, %v1656_v54, -inf }
 0x137   : > { %10125 = vst [vmem:[#allocation16_spill] sm:$0xff] %v6467_v63  ;;  %v6477_v19 = vmax.f32 %v6431_v40, %v2798_v24  ;;  %v6480_v47 = vmax.f32 %v6442_v38, %v2799_v41  ;;  %v1966_v10 = vrot.slane %v1657_v7, 1  ;;  %v1968_v46 = vrot.slane %v1833_v62, 1 }
 0x138   : > { %v1653_v3 = vrot.slane %v6461_v50, 2  ;;  %5887 = vrcp.f32 %v1200_v30  ;;  %v6486_v23 = vpop.f32.mrb[40].mxu0  ;;  %v1198_v54 = vadd.f32 1.0, %v6363_v44 }
 0x139   : > { %10126 = vst [vmem:[#allocation17_spill] sm:$0xff] %v6477_v19  ;;  %10127 = vst [vmem:[#allocation18_spill] sm:$0xff] %v6480_v47  ;;  %v1967_v56 = vsel %vm1909_vm3, %v1965_v17, %v1966_v10  ;;  %v1969_v24 = vsel %vm1909_vm3, %v1966_v10, %v1968_v46  ;;  %v1970_v41 = vsel %vm1909_vm3, %v1968_v46, %v6272_v0  ;;  %v6493_v2 = vpop.f32.mrb[41].mxu0  ;;  %v10129_v10 = vrot.slane %v6467_v63, 2 }
 0x13a   : > { %v2191_v49 = vmax.f32 %v1805_v9, %v1967_v56  ;;  %v2192_v11 = vmax.f32 %v1657_v7, %v1969_v24  ;;  %v2193_v47 = vmax.f32 %v1833_v62, %v1970_v41  ;;  %v1654_v30 = vsel %vm1627_vm2, %v10128_v33, %v1653_v3  ;;  %v6498_v58 = vpop.f32.mrb[42].mxu0 }
 0x13b   : > { %v1832_v17 = vsel %vm1627_vm2, %v1653_v3, -inf  ;;  %v1960_v50 = vrot.slane %v1654_v30, 1  ;;  %v6504_v46 = vsel %vm1627_vm2, -inf, %v10129_v10  ;;  %5889 = vrcp.f32 %v1198_v54  ;;  %v6506_v44 = vpop.f32.mrb[43].mxu0 }
 0x13c   : > { %v2387_v9 = vrot.slane %v2191_v49, 2  ;;  %v2388_v7 = vrot.slane %v2192_v11, 2  ;;  %v2390_v62 = vrot.slane %v2193_v47, 2  ;;  %v1962_v56 = vrot.slane %v1832_v17, 1 }
 0x13d   : > { %v1961_v24 = vsel %vm1909_vm3, %v1959_v59, %v1960_v50  ;;  %v1977_v33 = vrot.slane %v6504_v46, 1  ;;  %v1203_v41 = vadd.f32 1.0, %v6386_v29  ;;  %v1201_v3 = vadd.f32 1.0, %v6394_v53 }
 0x13e   : > { %v2389_v16 = vsel %vm1627_vm2, %v2387_v9, %v2388_v7  ;;  %v2391_v10 = vsel %vm1627_vm2, %v2388_v7, %v2390_v62  ;;  %v2392_v54 = vsel %vm1627_vm2, %v2390_v62, %v6277_v5  ;;  %v1963_v19 = vsel %vm1909_vm3, %v1960_v50, %v1962_v56 }
 0x13f   : > { %v6517_v8 = vmax.f32 %v2191_v49, %v2389_v16  ;;  %v6519_v31 = vmax.f32 %v2192_v11, %v2391_v10  ;;  %v6521_v59 = vmax.f32 %v2193_v47, %v2392_v54  ;;  %v1964_v29 = vsel %vm1909_vm3, %v1962_v56, %v6272_v0 }
 0x140   : > { %v2188_v53 = vmax.f32 %v6416_v43, %v1961_v24  ;;  %v2189_v9 = vmax.f32 %v1654_v30, %v1963_v19  ;;  %v2190_v57 = vmax.f32 %v1832_v17, %v1964_v29  ;;  %v6527_v7 = vmul.f32 %v5886_v35, %v6283_v14 }
 0x141   : > { %v2812_v62 = vrot.slane %v6517_v8, 4  ;;  %v2813_v50 = vrot.slane %v6519_v31, 4  ;;  %v2815_v16 = vrot.slane %v6521_v59, 4  ;;  %5891 = vrcp.f32 %v1203_v41 }
 0x142   : > { %10130 = vst [vmem:[#allocation19_spill] sm:$0xff] %v6527_v7  ;;  %v5888_v11 = vpop.eup %5887  ;;  %v2381_v47 = vrot.slane %v2188_v53, 2  ;;  %v2382_v10 = vrot.slane %v2189_v9, 2  ;;  %v2384_v54 = vrot.slane %v2190_v57, 2  ;;  %v1658_v56 = vrot.slane %v6527_v7, 2 }
 0x143   : > { %v6535_v43 = vsel %vm2756_vm4, %v2812_v62, %v2813_v50  ;;  %v2816_v14 = vsel %vm2756_vm4, %v2813_v50, %v2815_v16  ;;  %v2817_v35 = vsel %vm2756_vm4, %v2815_v16, %v6299_v37  ;;  %v6541_v19 = vmul.f32 %v5888_v11, %v6289_v20 }
 0x144   : > { %10131 = vst [vmem:[#allocation20_spill] sm:$0xff] %v6535_v43  ;;  %v6544_v30 = vmax.f32 %v6519_v31, %v2816_v14  ;;  %v6547_v17 = vmax.f32 %v6521_v59, %v2817_v35  ;;  %v2383_v24 = vsel %vm1627_vm2, %v2381_v47, %v2382_v10  ;;  %v2385_v29 = vsel %vm1627_vm2, %v2382_v10, %v2384_v54 }
 0x145   : > { %10132 = vst [vmem:[#allocation21_spill] sm:$0xff] %v6541_v19  ;;  %v5890_v62 = vpop.eup %5889  ;;  %v2386_v50 = vsel %vm1627_vm2, %v2384_v54, %v6277_v5  ;;  %v6553_v49 = vmax.f32 %v2188_v53, %v2383_v24  ;;  %v6555_v16 = vmax.f32 %v2189_v9, %v2385_v29  ;;  %v1806_v20 = vsel %vm1627_vm2, -inf, %v1658_v56 }
 0x146   : > { %10133 = vst [vmem:[#allocation22_spill] sm:$0xff] %v6544_v30  ;;  %10134 = vst [vmem:[#allocation23_spill] sm:$0xff] %v6547_v17  ;;  %v6558_v11 = vmax.f32 %v2190_v57, %v2386_v50  ;;  %v1971_v14 = vrot.slane %v1806_v20, 1  ;;  %v1662_v35 = vrot.slane %v6541_v19, 2  ;;  %v6566_v54 = vmul.f32 %v5890_v62, %v6293_v25 }
 0x147   : > { %v2806_v10 = vrot.slane %v6553_v49, 4  ;;  %v2807_v17 = vrot.slane %v6555_v16, 4  ;;  %v10136_v9 = vrot.slane %v6467_v63, 2  ;;  %5893 = vrcp.f32 %v1201_v3 }
 0x148   : > { %10135 = vst [vmem:[#allocation24_spill] sm:$0xff] %v6566_v54  ;;  %v2809_v53 = vrot.slane %v6558_v11, 4  ;;  %v1835_v24 = vsel %vm1627_vm2, %v1662_v35, -inf  ;;  %v1659_v19 = vrot.slane %v6566_v54, 2 }
 0x149   : > { %v1663_v57 = vsel %vm1627_vm2, %v10136_v9, %v1662_v35  ;;  %v6574_v29 = vsel %vm2756_vm4, %v2806_v10, %v2807_v17  ;;  %v1980_v47 = vrot.slane %v1835_v24, 1  ;;  %v1204_v9 = vadd.f32 1.0, %v6398_v61 }
 0x14a   : > { %10137 = vst [vmem:[#allocation25_spill] sm:$0xff] %v6574_v29  ;;  %v1978_v50 = vrot.slane %v1663_v57, 1  ;;  %v2810_v25 = vsel %vm2756_vm4, %v2807_v17, %v2809_v53  ;;  %v2811_v41 = vsel %vm2756_vm4, %v2809_v53, %v6299_v37  ;;  %v1660_v62 = vsel %vm1627_vm2, %v1658_v56, %v1659_v19 }
 0x14b   : > { %v6584_v35 = vmax.f32 %v6555_v16, %v2810_v25  ;;  %v6587_v3 = vmax.f32 %v6558_v11, %v2811_v41  ;;  %v1982_v17 = vsel %vm1909_vm3, %v1980_v47, %v6272_v0  ;;  %v1834_v61 = vsel %vm1627_vm2, %v1659_v19, -inf }
 0x14c   : > { %v1979_v10 = vsel %vm1909_vm3, %v1977_v33, %v1978_v50  ;;  %v1981_v63 = vsel %vm1909_vm3, %v1978_v50, %v1980_v47  ;;  %v2199_v7 = vmax.f32 %v1835_v24, %v1982_v17  ;;  %v1972_v25 = vrot.slane %v1660_v62, 1  ;;  %v5892_v24 = vpop.eup %5891 }
 0x14d   : > { %10138 = vst [vmem:[#allocation26_spill] sm:$0xff] %v6584_v35  ;;  %10139 = vst [vmem:[#allocation27_spill] sm:$0xff] %v6587_v3  ;;  %v2197_v53 = vmax.f32 %v6504_v46, %v1979_v10  ;;  %v2198_v30 = vmax.f32 %v1663_v57, %v1981_v63  ;;  %5895 = vrcp.f32 %v1204_v9  ;;  %v1974_v3 = vrot.slane %v1834_v61, 1 }
 0x14e   : > { %5897 = vpow2.f32 %v6332_v15  ;;  %v2402_v33 = vrot.slane %v2199_v7, 2  ;;  %v1973_v50 = vsel %vm1909_vm3, %v1971_v14, %v1972_v25  ;;  %v1039_v47 = vsub.f32 0.0, %v6340_v21 }
 0x14f   : > { %v2399_v54 = vrot.slane %v2197_v53, 2  ;;  %v2400_v41 = vrot.slane %v2198_v30, 2  ;;  %v1037_v46 = vsub.f32 0.0, %v6347_v26  ;;  %v1975_v56 = vsel %vm1909_vm3, %v1972_v25, %v1974_v3 }
 0x150   : > { %v1976_v19 = vsel %vm1909_vm3, %v1974_v3, %v6272_v0  ;;  %v2194_v57 = vmax.f32 %v1806_v20, %v1973_v50  ;;  %v2404_v15 = vsel %vm1627_vm2, %v2402_v33, %v6277_v5  ;;  %v2195_v14 = vmax.f32 %v1660_v62, %v1975_v56 }
 0x151   : > { %v2401_v63 = vsel %vm1627_vm2, %v2399_v54, %v2400_v41  ;;  %v2403_v9 = vsel %vm1627_vm2, %v2400_v41, %v2402_v33  ;;  %v5894_v17 = vpop.eup %5893  ;;  %v6611_v43 = vmax.f32 %v2199_v7, %v2404_v15  ;;  %v2196_v54 = vmax.f32 %v1834_v61, %v1976_v19 }
 0x152   : > { %v6607_v10 = vmax.f32 %v2197_v53, %v2401_v63  ;;  %v6609_v35 = vmax.f32 %v2198_v30, %v2403_v9  ;;  %v2393_v25 = vrot.slane %v2194_v57, 2  ;;  %v2394_v3 = vrot.slane %v2195_v14, 2 }
 0x153   : > { %10142 = vst [vmem:[#allocation30_spill] sm:$0xff] %v6611_v43  ;;  %v6615_v20 = vmul.f32 %v5892_v24, %v6302_v39  ;;  %v6618_v41 = vmul.f32 %v5894_v17, %v6305_v45  ;;  %v2827_v62 = vrot.slane %v6611_v43, 4  ;;  %v2396_v33 = vrot.slane %v2196_v54, 2 }
 0x154   : > { %10140 = vst [vmem:[#allocation28_spill] sm:$0xff] %v6607_v10  ;;  %10141 = vst [vmem:[#allocation29_spill] sm:$0xff] %v6609_v35  ;;  %v2824_v29 = vrot.slane %v6607_v10, 4  ;;  %v2825_v53 = vrot.slane %v6609_v35, 4  ;;  %v1125_v30 = vmul.f32 1.442695, %v1039_v47  ;;  %v2395_v7 = vsel %vm1627_vm2, %v2393_v25, %v2394_v3 }
 0x155   : > { %10143 = vst [vmem:[#allocation31_spill] sm:$0xff] %v6615_v20  ;;  %10144 = vst [vmem:[#allocation32_spill] sm:$0xff] %v6618_v41  ;;  %v1667_v61 = vrot.slane %v6615_v20, 2  ;;  %v9889_v50 = vrot.slane %v6618_v41, 2  ;;  %v1121_v63 = vmul.f32 1.442695, %v1037_v46  ;;  %v2829_v45 = vsel %vm2756_vm4, %v2827_v62, %v6299_v37 }
 0x156   : > { %v6626_v56 = vsel %vm2756_vm4, %v2824_v29, %v2825_v53  ;;  %v2828_v39 = vsel %vm2756_vm4, %v2825_v53, %v2827_v62  ;;  %v2397_v19 = vsel %vm1627_vm2, %v2394_v3, %v2396_v33  ;;  %v6636_v9 = vmax.f32 %v6611_v43, %v2829_v45 }
 0x157   : > { %10145 = vst [vmem:[#allocation33_spill] sm:$0xff] %v6626_v56  ;;  %v5896_v24 = vpop.eup %5895  ;;  %v6633_v47 = vmax.f32 %v6609_v35, %v2828_v39  ;;  %v2398_v46 = vsel %vm1627_vm2, %v2396_v33, %v6277_v5  ;;  %v6640_v15 = vmax.f32 %v2194_v57, %v2395_v7  ;;  %v6642_v17 = vmax.f32 %v2195_v14, %v2397_v19 }
 0x158   : > { %10147 = vst [vmem:[#allocation35_spill] sm:$0xff] %v6636_v9  ;;  %v5898_v29 = vpop.eup %5897  ;;  %v6644_v25 = vmax.f32 %v2196_v54, %v2398_v46  ;;  %v1809_v53 = vsel %vm1627_vm2, -inf, %v1667_v61  ;;  %v6650_v3 = vsel %vm1627_vm2, -inf, %v9889_v50  ;;  %v6655_v57 = vmul.f32 %v5896_v24, %v6313_v52 }
 0x159   : > { %10146 = vst [vmem:[#allocation34_spill] sm:$0xff] %v6633_v47  ;;  %10148 = vst [vmem:[#allocation36_spill] sm:$0xff] %v6642_v17  ;;  %v2818_v62 = vrot.slane %v6640_v15, 4  ;;  %v1989_v39 = vrot.slane %v1809_v53, 1  ;;  %v2819_v14 = vrot.slane %v6642_v17, 4  ;;  %v1202_v33 = vadd.f32 1.0, %v5898_v29 }
 0x15a   : > { %10149 = vst [vmem:[#allocation37_spill] sm:$0xff] %v6644_v25  ;;  %10150 = vst [vmem:[#allocation38_spill] sm:$0xff] %v6655_v57  ;;  %v2821_v54 = vrot.slane %v6644_v25, 4  ;;  %5899 = vpow2.f32 %v1125_v30  ;;  %v1668_v7 = vrot.slane %v6655_v57, 2  ;;  %v6664_v46 = vadd.f32 %v6349_v27, %v6240_v36 }
 0x15b   : > { %5901 = vpow2.f32 %v1121_v63  ;;  %v6667_v45 = vsel %vm2756_vm4, %v2818_v62, %v2819_v14 }
 0x15c   : > { %10151 = vst [vmem:[#allocation39_spill] sm:$0xff] %v6667_v45  ;;  %v2822_v52 = vsel %vm2756_vm4, %v2819_v14, %v2821_v54  ;;  %v2823_v24 = vsel %vm2756_vm4, %v2821_v54, %v6299_v37  ;;  %5903 = vrcp.f32 %v1202_v33  ;;  %v1669_v63 = vsel %vm1627_vm2, %v1667_v61, %v1668_v7 }
 0x15d   : > { %v6673_v30 = vmax.f32 %v6642_v17, %v2822_v52  ;;  %v6676_v29 = vmax.f32 %v6644_v25, %v2823_v24  ;;  %v1837_v27 = vsel %vm1627_vm2, %v1668_v7, -inf  ;;  %v1990_v19 = vrot.slane %v1669_v63, 1 }
 0x15e   : > { %v1992_v50 = vrot.slane %v1837_v27, 1  ;;  %v1040_v62 = vsub.f32 0.0, %v6664_v46  ;;  %v6683_v14 = vadd.f32 %v6240_v36, %v6355_v32  ;;  %v6687_v54 = vadd.f32 %v6381_v18, %v6240_v36 }
 0x15f   : > { %10152 = vst [vmem:[#allocation40_spill] sm:$0xff] %v6673_v30  ;;  %10153 = vst [vmem:[#allocation41_spill] sm:$0xff] %v6676_v29  ;;  %v6691_v33 = vadd.f32 %v6240_v36, %v6384_v28  ;;  %v6695_v61 = vadd.f32 %v6392_v51, %v6240_v36  ;;  %v6699_v7 = vadd.f32 %v6240_v36, %v6396_v55 }
 0x160   : > { %v1991_v52 = vsel %vm1909_vm3, %v1989_v39, %v1990_v19  ;;  %v1993_v32 = vsel %vm1909_vm3, %v1990_v19, %v1992_v50  ;;  %v1994_v18 = vsel %vm1909_vm3, %v1992_v50, %v6272_v0  ;;  %v1127_v24 = vmul.f32 1.442695, %v1040_v62 }
 0x161   : > { %v2203_v20 = vmax.f32 %v1809_v53, %v1991_v52  ;;  %v2204_v57 = vmax.f32 %v1669_v63, %v1993_v32  ;;  %v2205_v28 = vmax.f32 %v1837_v27, %v1994_v18  ;;  %v1038_v9 = vsub.f32 0.0, %v6683_v14 }
 0x162   : > { %5905 = vpow2.f32 %v1127_v24  ;;  %v1043_v51 = vsub.f32 0.0, %v6687_v54  ;;  %v1041_v47 = vsub.f32 0.0, %v6691_v33  ;;  %v1044_v55 = vsub.f32 0.0, %v6695_v61 }
 0x163   : > { %v2411_v56 = vrot.slane %v2203_v20, 2  ;;  %v2412_v39 = vrot.slane %v2204_v57, 2  ;;  %v2414_v29 = vrot.slane %v2205_v28, 2  ;;  %v1123_v19 = vmul.f32 1.442695, %v1038_v9 }
 0x164   : > { %v5900_v30 = vpop.eup %5899  ;;  %v1133_v45 = vmul.f32 1.442695, %v1043_v51  ;;  %v1129_v50 = vmul.f32 1.442695, %v1041_v47  ;;  %v1135_v62 = vmul.f32 1.442695, %v1044_v55  ;;  %v6711_v53 = vadd.f32 %v6425_v1, %v6240_v36 }
 0x165   : > { %v5902_v63 = vpop.eup %5901  ;;  %v2413_v27 = vsel %vm1627_vm2, %v2411_v56, %v2412_v39  ;;  %v2415_v52 = vsel %vm1627_vm2, %v2412_v39, %v2414_v29  ;;  %v2416_v32 = vsel %vm1627_vm2, %v2414_v29, %v6277_v5  ;;  %v1207_v18 = vadd.f32 1.0, %v5900_v30 }
 0x166   : > { %v5904_v24 = vpop.eup %5903  ;;  %v6717_v43 = vmax.f32 %v2203_v20, %v2413_v27  ;;  %v6719_v9 = vmax.f32 %v2204_v57, %v2415_v52  ;;  %v6721_v47 = vmax.f32 %v2205_v28, %v2416_v32  ;;  %v1205_v51 = vadd.f32 1.0, %v5902_v63 }
 0x167   : > { %v6724_v1 = vmul.f32 %v5904_v24, %v6317_v60  ;;  %5907 = vrcp.f32 %v1207_v18  ;;  %v1042_v56 = vsub.f32 0.0, %v6699_v7  ;;  %v1047_v55 = vsub.f32 0.0, %v6711_v53 }
 0x168   : > { %10154 = vst [vmem:[#allocation42_spill] sm:$0xff] %v6717_v43  ;;  %10155 = vst [vmem:[#allocation43_spill] sm:$0xff] %v6719_v9  ;;  %v9898_v30 = vrot.slane %v6719_v9, 4  ;;  %v2839_v20 = vrot.slane %v6721_v47, 4  ;;  %5909 = vrcp.f32 %v1205_v51  ;;  %v10160_v24 = vrot.slane %v6618_v41, 2 }
 0x169   : > { %10156 = vst [vmem:[#allocation44_spill] sm:$0xff] %v6721_v47  ;;  %10157 = vst [vmem:[#allocation45_spill] sm:$0xff] %v6724_v1  ;;  %v1665_v29 = vrot.slane %v6724_v1, 2  ;;  %v1131_v60 = vmul.f32 1.442695, %v1042_v56  ;;  %5911 = vpow2.f32 %v1123_v19  ;;  %v6752_v19 = vadd.f32 %v6240_v36, %v6434_v4 }
 0x16a   : > { %v2840_v63 = vsel %vm2756_vm4, %v9898_v30, %v2839_v20  ;;  %v2841_v27 = vsel %vm2756_vm4, %v2839_v20, %v6299_v37  ;;  %v1141_v52 = vmul.f32 1.442695, %v1047_v55  ;;  %5913 = vpow2.f32 %v1133_v45 }
 0x16b   : > { %v6741_v32 = vmax.f32 %v6719_v9, %v2840_v63  ;;  %v6744_v18 = vmax.f32 %v6721_v47, %v2841_v27  ;;  %v1666_v51 = vsel %vm1627_vm2, %v10160_v24, %v1665_v29  ;;  %v1836_v56 = vsel %vm1627_vm2, %v1665_v29, -inf }
 0x16c   : > { %v5906_v28 = vpop.eup %5905  ;;  %v1984_v39 = vrot.slane %v1666_v51, 1  ;;  %v1986_v30 = vrot.slane %v1836_v56, 1  ;;  %5915 = vpow2.f32 %v1129_v50  ;;  %v6756_v20 = vadd.f32 %v6444_v13, %v6240_v36 }
 0x16d   : > { %10158 = vst [vmem:[#allocation46_spill] sm:$0xff] %v6741_v32  ;;  %10159 = vst [vmem:[#allocation47_spill] sm:$0xff] %v6744_v18  ;;  %v1208_v55 = vadd.f32 1.0, %v5906_v28  ;;  %v6760_v63 = vadd.f32 %v6240_v36, %v6454_v22  ;;  %v10161_v29 = vrot.slane %v6650_v3, 1  ;;  %5917 = vpow2.f32 %v1135_v62 }
 0x16e   : > { %v1987_v45 = vsel %vm1909_vm3, %v1984_v39, %v1986_v30  ;;  %v1988_v4 = vsel %vm1909_vm3, %v1986_v30, %v6272_v0  ;;  %v1045_v13 = vsub.f32 0.0, %v6752_v19  ;;  %v1048_v22 = vsub.f32 0.0, %v6756_v20 }
 0x16f   : > { %v1985_v27 = vsel %vm1909_vm3, %v10161_v29, %v1984_v39  ;;  %v2201_v28 = vmax.f32 %v1666_v51, %v1987_v45  ;;  %v2202_v24 = vmax.f32 %v1836_v56, %v1988_v4  ;;  %5919 = vrcp.f32 %v1208_v55 }
 0x170   : > { %v2200_v50 = vmax.f32 %v6650_v3, %v1985_v27  ;;  %5921 = vpow2.f32 %v1131_v60  ;;  %v1046_v57 = vsub.f32 0.0, %v6760_v63  ;;  %v1137_v62 = vmul.f32 1.442695, %v1045_v13 }
 0x171   : > { %v5908_v41 = vpop.eup %5907  ;;  %v2406_v1 = vrot.slane %v2201_v28, 2  ;;  %v2408_v39 = vrot.slane %v2202_v24, 2  ;;  %5923 = vpow2.f32 %v1141_v52  ;;  %v1143_v3 = vmul.f32 1.442695, %v1048_v22 }
 0x172   : > { %v2405_v29 = vrot.slane %v2200_v50, 2  ;;  %v6773_v30 = vmul.f32 %v5908_v41, %v6340_v21  ;;  %v1139_v51 = vmul.f32 1.442695, %v1046_v57  ;;  %v5910_v56 = vpop.eup %5909  ;;  %v6781_v45 = vadd.f32 %v6486_v23, %v6240_v36 }
 0x173   : > { %v2409_v55 = vsel %vm1627_vm2, %v2406_v1, %v2408_v39  ;;  %v2410_v27 = vsel %vm1627_vm2, %v2408_v39, %v6277_v5  ;;  %v5912_v4 = vpop.eup %5911  ;;  %v6791_v13 = vmul.f32 %v5910_v56, %v6347_v26  ;;  %5925 = vpow2.f32 %v1137_v62 }
 0x174   : > { %10162 = vst [vmem:[#allocation48_spill] sm:$0xff] %v6773_v30  ;;  %v2407_v60 = vsel %vm1627_vm2, %v2405_v29, %v2406_v1  ;;  %v6785_v21 = vmax.f32 %v2201_v28, %v2409_v55  ;;  %v6787_v41 = vmax.f32 %v2202_v24, %v2410_v27  ;;  %v1673_v57 = vrot.slane %v6773_v30, 2  ;;  %v5914_v29 = vpop.eup %5913 }
 0x175   : > { %v6783_v52 = vmax.f32 %v2200_v50, %v2407_v60  ;;  %10166 = vst [vmem:[#allocation52_spill] sm:$0xff] %v6791_v13  ;;  %v1206_v1 = vadd.f32 1.0, %v5912_v4  ;;  %v1051_v22 = vsub.f32 0.0, %v6781_v45  ;;  %v9906_v60 = vrot.slane %v6791_v13, 2 }
 0x176   : > { %10164 = vst [vmem:[#allocation50_spill] sm:$0xff] %v6785_v21  ;;  %10165 = vst [vmem:[#allocation51_spill] sm:$0xff] %v6787_v41  ;;  %v9902_v23 = vrot.slane %v6785_v21, 4  ;;  %v2833_v50 = vrot.slane %v6787_v41, 4  ;;  %v5916_v24 = vpop.eup %5915  ;;  %v1811_v39 = vsel %vm1627_vm2, -inf, %v1673_v57  ;;  %v1211_v26 = vadd.f32 1.0, %v5914_v29 }
 0x177   : > { %10163 = vst [vmem:[#allocation49_spill] sm:$0xff] %v6783_v52  ;;  %5927 = vrcp.f32 %v1206_v1  ;;  %v5918_v56 = vpop.eup %5917  ;;  %v2001_v27 = vrot.slane %v1811_v39, 1  ;;  %v1209_v4 = vadd.f32 1.0, %v5916_v24  ;;  %v6814_v1 = vsel %vm1627_vm2, -inf, %v9906_v60 }
 0x178   : > { %v2834_v62 = vsel %vm2756_vm4, %v9902_v23, %v2833_v50  ;;  %v2835_v55 = vsel %vm2756_vm4, %v2833_v50, %v6299_v37  ;;  %5929 = vrcp.f32 %v1211_v26  ;;  %v1212_v24 = vadd.f32 1.0, %v5918_v56 }
 0x179   : > { %v5920_v36 = vpop.eup %5919  ;;  %v6806_v28 = vmax.f32 %v6785_v21, %v2834_v62  ;;  %v6809_v18 = vmax.f32 %v6787_v41, %v2835_v55  ;;  %5931 = vrcp.f32 %v1209_v4  ;;  %v1149_v9 = vmul.f32 1.442695, %v1051_v22  ;;  %v6093_v55 = vld [vmem:[%s9860_s4] ss:$0 sm:$0xff] }
 0x17a   : > { %v5922_v29 = vpop.eup %5921  ;;  %v6818_v50 = vmul.f32 %v5920_v36, %v6664_v46  ;;  %5933 = vpow2.f32 %v1143_v3  ;;  %v6824_v60 = vadd.f32 %v6093_v55, %v6493_v2  ;;  %v6831_v3 = vadd.f32 %v6093_v55, %v6498_v58 }
 0x17b   : > { %10167 = vst [vmem:[#allocation53_spill] sm:$0xff] %v6806_v28  ;;  %10168 = vst [vmem:[#allocation54_spill] sm:$0xff] %v6809_v18  ;;  %v5924_v32 = vpop.eup %5923  ;;  %v1210_v62 = vadd.f32 1.0, %v5922_v29  ;;  %5935 = vrcp.f32 %v1212_v24  ;;  %v6834_v22 = vadd.f32 %v6093_v55, %v6506_v44  ;;  %v10170_v4 = vrot.slane %v6297_v34, 1 }
 0x17c   : > { %10169 = vst [vmem:[#allocation55_spill] sm:$0xff] %v6818_v50  ;;  %v1674_v26 = vrot.slane %v6818_v50, 2  ;;  %v1215_v46 = vadd.f32 1.0, %v5924_v32  ;;  %v1049_v36 = vsub.f32 0.0, %v6824_v60  ;;  %v10171_v29 = vrot.slane %v6309_v48, 1 }
 0x17d   : > { %5937 = vrcp.f32 %v1210_v62  ;;  %v5926_v24 = vpop.eup %5925  ;;  %v1052_v44 = vsub.f32 0.0, %v6831_v3 }
 0x17e   : > { %v1675_v56 = vsel %vm1627_vm2, %v1673_v57, %v1674_v26  ;;  %v1839_v2 = vsel %vm1627_vm2, %v1674_v26, -inf  ;;  %5939 = vrcp.f32 %v1215_v46  ;;  %v6843_v32 = vsel %vm1909_vm3, %v10171_v29, %v10170_v4 }
 0x17f   : > { %v2002_v62 = vrot.slane %v1675_v56, 1  ;;  %v2004_v23 = vrot.slane %v1839_v2, 1  ;;  %5941 = vpow2.f32 %v1139_v51  ;;  %v1145_v58 = vmul.f32 1.442695, %v1049_v36 }
 0x180   : > { %v1213_v30 = vadd.f32 1.0, %v5926_v24  ;;  %5943 = vpow2.f32 %v1149_v9  ;;  %v1050_v57 = vsub.f32 0.0, %v6834_v22  ;;  %v1151_v36 = vmul.f32 1.442695, %v1052_v44 }
 0x181   : > { %v5928_v55 = vpop.eup %5927  ;;  %v2003_v26 = vsel %vm1909_vm3, %v2001_v27, %v2002_v62  ;;  %v2005_v46 = vsel %vm1909_vm3, %v2002_v62, %v2004_v23  ;;  %v2006_v4 = vsel %vm1909_vm3, %v2004_v23, %v6272_v0  ;;  %5945 = vpow2.f32 %v1145_v58 }
 0x182   : > { %v2209_v29 = vmax.f32 %v1811_v39, %v2003_v26  ;;  %v2210_v50 = vmax.f32 %v1675_v56, %v2005_v46  ;;  %v2211_v47 = vmax.f32 %v1839_v2, %v2006_v4  ;;  %v6852_v51 = vmul.f32 %v5928_v55, %v6683_v14  ;;  %v5930_v9 = vpop.eup %5929 }
 0x183   : > { %5947 = vrcp.f32 %v1213_v30  ;;  %v6854_v24 = vmul.f32 1.442695, %v1050_v57  ;;  %v5932_v27 = vpop.eup %5931  ;;  %v6863_v14 = vmul.f32 %v5930_v9, %v6687_v54  ;;  %v10175_v55 = vrot.slane %v6791_v13, 2 }
 0x184   : > { %10172 = vst [vmem:[#allocation56_spill] sm:$0xff] %v6852_v51  ;;  %v2423_v18 = vrot.slane %v2209_v29, 2  ;;  %v2424_v62 = vrot.slane %v2210_v50, 2  ;;  %v2426_v28 = vrot.slane %v2211_v47, 2  ;;  %v1671_v23 = vrot.slane %v6852_v51, 2  ;;  %v6858_v58 = vpop.eup %5933 }
 0x185   : > { %10173 = vst [vmem:[#allocation57_spill] sm:$0xff] %v6863_v14  ;;  %v6866_v30 = vmul.f32 %v5932_v27, %v6691_v33  ;;  %5949 = vpow2.f32 %v1151_v36  ;;  %v5936_v56 = vpop.eup %5935 }
 0x186   : > { %v2425_v2 = vsel %vm1627_vm2, %v2423_v18, %v2424_v62  ;;  %v2427_v44 = vsel %vm1627_vm2, %v2424_v62, %v2426_v28  ;;  %v2428_v57 = vsel %vm1627_vm2, %v2426_v28, %v6277_v5  ;;  %v1672_v26 = vsel %vm1627_vm2, %v10175_v55, %v1671_v23 }
 0x187   : > { %10174 = vst [vmem:[#allocation58_spill] sm:$0xff] %v6866_v30  ;;  %v5938_v46 = vpop.eup %5937  ;;  %v6875_v4 = vmax.f32 %v2209_v29, %v2425_v2  ;;  %v6877_v54 = vmax.f32 %v2210_v50, %v2427_v44  ;;  %v6879_v33 = vmax.f32 %v2211_v47, %v2428_v57  ;;  %v1838_v9 = vsel %vm1627_vm2, %v1671_v23, -inf }
 0x188   : > { %v5940_v36 = vpop.eup %5939  ;;  %v1996_v18 = vrot.slane %v1672_v26, 1  ;;  %v1998_v27 = vrot.slane %v1838_v9, 1  ;;  %v1679_v62 = vrot.slane %v6863_v14, 2  ;;  %v1676_v28 = vrot.slane %v6866_v30, 2 }
 0x189   : > { %10176 = vst [vmem:[#allocation59_spill] sm:$0xff] %v6875_v4  ;;  %10177 = vst [vmem:[#allocation60_spill] sm:$0xff] %v6877_v54  ;;  %v6884_v39 = vpop.eup %5941  ;;  %v9931_v29 = vrot.slane %v6877_v54, 4  ;;  %v2851_v50 = vrot.slane %v6879_v33, 4  ;;  %v10179_v23 = vrot.slane %v6814_v1, 1 }
 0x18a   : > { %10178 = vst [vmem:[#allocation61_spill] sm:$0xff] %v6879_v33  ;;  %v6890_v2 = vpop.eup %5943  ;;  %v1999_v57 = vsel %vm1909_vm3, %v1996_v18, %v1998_v27  ;;  %v2000_v43 = vsel %vm1909_vm3, %v1998_v27, %v6272_v0  ;;  %v1813_v13 = vsel %vm1627_vm2, -inf, %v1679_v62  ;;  %v1812_v25 = vsel %vm1627_vm2, -inf, %v1676_v28 }
 0x18b   : > { %v1997_v44 = vsel %vm1909_vm3, %v10179_v23, %v1996_v18  ;;  %v6899_v55 = vpop.eup %5945  ;;  %v2852_v51 = vsel %vm2756_vm4, %v9931_v29, %v2851_v50  ;;  %v2853_v47 = vsel %vm2756_vm4, %v2851_v50, %v6299_v37  ;;  %v2207_v21 = vmax.f32 %v1672_v26, %v1999_v57 }
 0x18c   : > { %v2206_v4 = vmax.f32 %v6814_v1, %v1997_v44  ;;  %v6908_v23 = vmax.f32 %v6877_v54, %v2852_v51  ;;  %v6911_v18 = vmax.f32 %v6879_v33, %v2853_v47  ;;  %v2208_v27 = vmax.f32 %v1838_v9, %v2000_v43 }
 0x18d   : > { %v2013_v41 = vrot.slane %v1813_v13, 1  ;;  %v5948_v52 = vpop.eup %5947  ;;  %v2418_v10 = vrot.slane %v2207_v21, 2  ;;  %v6915_v29 = vmul.f32 %v5936_v56, %v6695_v61  ;;  %v2007_v17 = vrot.slane %v1812_v25, 1 }
 0x18e   : > { %10180 = vst [vmem:[#allocation62_spill] sm:$0xff] %v6908_v23  ;;  %10181 = vst [vmem:[#allocation63_spill] sm:$0xff] %v6911_v18  ;;  %v2417_v35 = vrot.slane %v2206_v4, 2  ;;  %v2420_v50 = vrot.slane %v2208_v27, 2  ;;  %v6918_v1 = vmul.f32 %v5938_v46, %v6699_v7  ;;  %v6921_v51 = vmul.f32 %v5940_v36, %v6711_v53 }
 0x18f   : > { %10182 = vst [vmem:[#allocation64_spill] sm:$0xff] %v6915_v29  ;;  %v6923_v26 = vpop.eup %5949  ;;  %v1680_v9 = vrot.slane %v6915_v29, 2  ;;  %v6930_v61 = vmul.f32 %v5948_v52, %v6752_v19 }
 0x190   : > { %10183 = vst [vmem:[#allocation65_spill] sm:$0xff] %v6918_v1  ;;  %10184 = vst [vmem:[#allocation66_spill] sm:$0xff] %v6921_v51  ;;  %v2419_v43 = vsel %vm1627_vm2, %v2417_v35, %v2418_v10  ;;  %v2421_v56 = vsel %vm1627_vm2, %v2418_v10, %v2420_v50  ;;  %v2422_v7 = vsel %vm1627_vm2, %v2420_v50, %v6277_v5  ;;  %v1677_v53 = vrot.slane %v6918_v1, 2 }
 0x191   : > { %10185 = vst [vmem:[#allocation67_spill] sm:$0xff] %v6930_v61  ;;  %v6935_v46 = vmax.f32 %v2206_v4, %v2419_v43  ;;  %v6938_v36 = vmax.f32 %v2207_v21, %v2421_v56  ;;  %v6940_v35 = vmax.f32 %v2208_v27, %v2422_v7  ;;  %v1681_v44 = vsel %vm1627_vm2, %v1679_v62, %v1680_v9 }
 0x192   : > { %v1841_v57 = vsel %vm1627_vm2, %v1680_v9, -inf  ;;  %v2014_v52 = vrot.slane %v1681_v44, 1  ;;  %v1678_v10 = vsel %vm1627_vm2, %v1676_v28, %v1677_v53  ;;  %v1840_v21 = vsel %vm1627_vm2, %v1677_v53, -inf }
 0x193   : > { %10186 = vst [vmem:[#allocation68_spill] sm:$0xff] %v6935_v46  ;;  %10187 = vst [vmem:[#allocation69_spill] sm:$0xff] %v6938_v36  ;;  %v2016_v47 = vrot.slane %v1841_v57, 1  ;;  %v9940_v50 = vrot.slane %v6938_v36, 4  ;;  %v2845_v4 = vrot.slane %v6940_v35, 4  ;;  %v2008_v56 = vrot.slane %v1678_v10, 1 }
 0x194   : > { %10188 = vst [vmem:[#allocation70_spill] sm:$0xff] %v6940_v35  ;;  %v2015_v27 = vsel %vm1909_vm3, %v2013_v41, %v2014_v52  ;;  %v2010_v18 = vrot.slane %v1840_v21, 1 }
 0x195   : > { %v2017_v62 = vsel %vm1909_vm3, %v2014_v52, %v2016_v47  ;;  %v2018_v9 = vsel %vm1909_vm3, %v2016_v47, %v6272_v0  ;;  %v2846_v28 = vsel %vm2756_vm4, %v9940_v50, %v2845_v4  ;;  %v2847_v7 = vsel %vm2756_vm4, %v2845_v4, %v6299_v37 }
 0x196   : > { %v2215_v19 = vmax.f32 %v1813_v13, %v2015_v27  ;;  %v2216_v14 = vmax.f32 %v1681_v44, %v2017_v62  ;;  %v6960_v43 = vmax.f32 %v6938_v36, %v2846_v28  ;;  %v6963_v41 = vmax.f32 %v6940_v35, %v2847_v7  ;;  %v10297_v35 = vld [vmem:[#allocation49_spill] sm:$0xff] }
 0x197   : > { %v2217_v53 = vmax.f32 %v1841_v57, %v2018_v9  ;;  %v2009_v52 = vsel %vm1909_vm3, %v2007_v17, %v2008_v56  ;;  %v9944_v13 = vrot.slane %v6921_v51, 2  ;;  %v9943_v44 = vrot.slane %v6930_v61, 2 }
 0x198   : > { %10189 = vst [vmem:[#allocation71_spill] sm:$0xff] %v6960_v43  ;;  %10190 = vst [vmem:[#allocation72_spill] sm:$0xff] %v6963_v41  ;;  %v2435_v47 = vrot.slane %v2215_v19, 2  ;;  %v2436_v29 = vrot.slane %v2216_v14, 2  ;;  %v2212_v23 = vmax.f32 %v1812_v25, %v2009_v52  ;;  %v2011_v27 = vsel %vm1909_vm3, %v2008_v56, %v2010_v18 }
 0x199   : > { %v2438_v54 = vrot.slane %v2217_v53, 2  ;;  %v2012_v57 = vsel %vm1909_vm3, %v2010_v18, %v6272_v0  ;;  %v2213_v28 = vmax.f32 %v1678_v10, %v2011_v27  ;;  %v6986_v56 = vsel %vm1627_vm2, -inf, %v9944_v13 }
 0x19a   : > { %v2437_v4 = vsel %vm1627_vm2, %v2435_v47, %v2436_v29  ;;  %v2429_v17 = vrot.slane %v2212_v23, 2  ;;  %v2214_v50 = vmax.f32 %v1840_v21, %v2012_v57  ;;  %v1216_v27 = vadd.f32 1.0, %v6858_v58 }
 0x19b   : > { %v2439_v62 = vsel %vm1627_vm2, %v2436_v29, %v2438_v54  ;;  %v2440_v25 = vsel %vm1627_vm2, %v2438_v54, %v6277_v5  ;;  %v6977_v9 = vmax.f32 %v2215_v19, %v2437_v4  ;;  %v2430_v47 = vrot.slane %v2213_v28, 2 }
 0x19c   : > { %v6979_v7 = vmax.f32 %v2216_v14, %v2439_v62  ;;  %v6981_v52 = vmax.f32 %v2217_v53, %v2440_v25  ;;  %v6993_v54 = vsel %vm1627_vm2, -inf, %v9943_v44  ;;  %v2432_v21 = vrot.slane %v2214_v50, 2 }
 0x19d   : > { %10191 = vst [vmem:[#allocation73_spill] sm:$0xff] %v6977_v9  ;;  %v2431_v53 = vsel %vm1627_vm2, %v2429_v17, %v2430_v47  ;;  %v1214_v57 = vadd.f32 1.0, %v6884_v39  ;;  %5951 = vrcp.f32 %v1216_v27  ;;  %v3134_v46 = vrot.slane %v10297_v35, 1 }
 0x19e   : > { %10192 = vst [vmem:[#allocation74_spill] sm:$0xff] %v6979_v7  ;;  %10193 = vst [vmem:[#allocation75_spill] sm:$0xff] %v6981_v52  ;;  %v9941_v14 = vrot.slane %v6979_v7, 4  ;;  %v2863_v19 = vrot.slane %v6981_v52, 4  ;;  %v2433_v18 = vsel %vm1627_vm2, %v2430_v47, %v2432_v21  ;;  %v2434_v10 = vsel %vm1627_vm2, %v2432_v21, %v6277_v5 }
 0x19f   : > { %v7016_v58 = vmax.f32 %v2212_v23, %v2431_v53  ;;  %v7018_v39 = vmax.f32 %v2213_v28, %v2433_v18  ;;  %v7020_v29 = vmax.f32 %v2214_v50, %v2434_v10  ;;  %v1217_v47 = vadd.f32 1.0, %v6899_v55 }
 0x1a0   : > { %v2864_v62 = vsel %vm2756_vm4, %v9941_v14, %v2863_v19  ;;  %v2865_v25 = vsel %vm2756_vm4, %v2863_v19, %v6299_v37  ;;  %v1219_v19 = vadd.f32 1.0, %v6890_v2  ;;  %5953 = vrcp.f32 %v1214_v57 }
 0x1a1   : > { %v7011_v17 = vmax.f32 %v6979_v7, %v2864_v62  ;;  %v7014_v4 = vmax.f32 %v6981_v52, %v2865_v25  ;;  %10196 = vst [vmem:[#allocation78_spill] sm:$0xff] %v7016_v58  ;;  %10197 = vst [vmem:[#allocation79_spill] sm:$0xff] %v7018_v39  ;;  %v9942_v21 = vrot.slane %v7018_v39, 4  ;;  %v2857_v25 = vrot.slane %v7020_v29, 4 }
 0x1a2   : > { %10198 = vst [vmem:[#allocation80_spill] sm:$0xff] %v7020_v29  ;;  %5955 = vrcp.f32 %v1219_v19  ;;  %v1220_v23 = vadd.f32 1.0, %v6923_v26  ;;  %v10199_v50 = vrot.slane %v6323_v6, 1  ;;  %v10200_v28 = vrot.slane %v6297_v34, 1 }
 0x1a3   : > { %10194 = vst [vmem:[#allocation76_spill] sm:$0xff] %v7011_v17  ;;  %10195 = vst [vmem:[#allocation77_spill] sm:$0xff] %v7014_v4  ;;  %5957 = vrcp.f32 %v1217_v47  ;;  %v2164_v10 = vmax.f32 %v6309_v48, %v6843_v32  ;;  %v2858_v26 = vsel %vm2756_vm4, %v9942_v21, %v2857_v25  ;;  %v2859_v27 = vsel %vm2756_vm4, %v2857_v25, %v6299_v37 }
 0x1a4   : > { %v1914_v2 = vsel %vm1909_vm3, %v10200_v28, %v10199_v50  ;;  %v10201_v55 = vmov %v10199_v50  ;;  %5959 = vrcp.f32 %v1220_v23  ;;  %v7048_v19 = vmax.f32 %v7018_v39, %v2858_v26 }
 0x1a5   : > { %v1916_v18 = vsel %vm1909_vm3, %v10201_v55, %v6272_v0  ;;  %v2165_v53 = vmax.f32 %v6297_v34, %v1914_v2  ;;  %v7051_v47 = vmax.f32 %v7020_v29, %v2859_v27  ;;  %5961 = vpow2.f32 %v6854_v24  ;;  %v10205_v55 = vld [vmem:[#allocation9_spill] sm:$0xff] }
 0x1a6   : > { %v2166_v57 = vmax.f32 %v6323_v6, %v1916_v18  ;;  %10202 = vst [vmem:[#allocation81_spill] sm:$0xff] %v7048_v19  ;;  %v2332_v48 = vrot.slane %v2164_v10, 2  ;;  %v3104_v50 = vrot.slane %v6429_v12, 1  ;;  %v3105_v28 = vrot.slane %v6431_v40, 1  ;;  %v10204_v6 = vld [vmem:[#allocation8_spill] sm:$0xff] }
 0x1a7   : > { %10203 = vst [vmem:[#allocation82_spill] sm:$0xff] %v7051_v47  ;;  %v2333_v34 = vrot.slane %v2165_v53, 2  ;;  %v9946_v25 = vrot.slane %v6442_v38, 1  ;;  %v3109_v23 = vrot.slane %v6406_v42, 1  ;;  %v3110_v2 = vrot.slane %v10204_v6, 1 }
 0x1a8   : > { %v2335_v32 = vrot.slane %v2166_v57, 2  ;;  %v9945_v18 = vrot.slane %v10205_v55, 1  ;;  %v7065_v14 = vsel %vm1909_vm3, %v3104_v50, %v3105_v28  ;;  %v10215_v52 = vrot.slane %v6993_v54, 1 }
 0x1a9   : > { %v2334_v26 = vsel %vm1627_vm2, %v2332_v48, %v2333_v34  ;;  %v7076_v13 = vsel %vm1909_vm3, %v3105_v28, %v9946_v25  ;;  %v5952_v48 = vpop.eup %5951 }
 0x1aa   : > { %v2336_v27 = vsel %vm1627_vm2, %v2333_v34, %v2335_v32  ;;  %v2338_v24 = vsel %vm1627_vm2, %v2335_v32, %v6277_v5  ;;  %v7067_v21 = vmax.f32 %v2164_v10, %v2334_v26  ;;  %v7079_v34 = vsel %vm1909_vm3, %v3109_v23, %v3110_v2 }
 0x1ab   : > { %v7069_v62 = vmax.f32 %v2165_v53, %v2336_v27  ;;  %v7071_v44 = vmax.f32 %v2166_v57, %v2338_v24  ;;  %v7084_v32 = vsel %vm1909_vm3, %v3110_v2, %v9945_v18  ;;  %v5954_v57 = vpop.eup %5953  ;;  %v7089_v50 = vmul.f32 %v5952_v48, %v6756_v20 }
 0x1ac   : > { %v2757_v28 = vrot.slane %v7067_v21, 4  ;;  %v5956_v27 = vpop.eup %5955  ;;  %v7095_v24 = vmul.f32 %v5954_v57, %v6760_v63 }
 0x1ad   : > { %10206 = vst [vmem:[#allocation8_spill] sm:$0xff] %v7089_v50  ;;  %v2758_v26 = vrot.slane %v7069_v62, 4  ;;  %v5958_v10 = vpop.eup %5957  ;;  %v1686_v20 = vrot.slane %v7089_v50, 2  ;;  %v7104_v53 = vmul.f32 %v5956_v27, %v6781_v45  ;;  %v10210_v18 = vrot.slane %v7071_v44, 4 }
 0x1ae   : > { %10207 = vst [vmem:[#allocation9_spill] sm:$0xff] %v7095_v24  ;;  %v5960_v63 = vpop.eup %5959  ;;  %v1683_v57 = vrot.slane %v7095_v24, 2  ;;  %v7113_v25 = vmul.f32 %v5958_v10, %v6824_v60  ;;  %v10211_v45 = vrot.slane %v6921_v51, 2  ;;  %v10213_v24 = vrot.slane %v6930_v61, 2 }
 0x1af   : > { %10208 = vst [vmem:[#allocation83_spill] sm:$0xff] %v7104_v53  ;;  %v7107_v23 = vsel %vm2756_vm4, %v2757_v28, %v2758_v26  ;;  %v7118_v30 = vsel %vm2756_vm4, %v2758_v26, %v10210_v18  ;;  %v7120_v48 = vpop.eup %5961  ;;  %v1843_v27 = vsel %vm1627_vm2, %v1686_v20, -inf  ;;  %v1691_v50 = vrot.slane %v7104_v53, 2 }
 0x1b0   : > { %10209 = vst [vmem:[#allocation84_spill] sm:$0xff] %v7113_v25  ;;  %v1687_v28 = vsel %vm1627_vm2, %v10211_v45, %v1686_v20  ;;  %v7128_v2 = vmul.f32 %v5960_v63, %v6831_v3  ;;  %v2028_v10 = vrot.slane %v1843_v27, 1  ;;  %v1684_v18 = vsel %vm1627_vm2, %v10213_v24, %v1683_v57 }
 0x1b1   : > { %v2026_v60 = vrot.slane %v1687_v28, 1  ;;  %v1842_v26 = vsel %vm1627_vm2, %v1683_v57, -inf  ;;  %v2020_v1 = vrot.slane %v1684_v18, 1  ;;  %v1817_v51 = vsel %vm1627_vm2, -inf, %v1691_v50 }
 0x1b2   : > { %10212 = vst [vmem:[#allocation85_spill] sm:$0xff] %v7128_v2  ;;  %v2022_v4 = vrot.slane %v1842_v26, 1  ;;  %v10214_v20 = vrot.slane %v6986_v56, 1  ;;  %v2030_v63 = vsel %vm1909_vm3, %v2028_v10, %v6272_v0  ;;  %v2037_v61 = vrot.slane %v1817_v51, 1 }
 0x1b3   : > { %v2029_v3 = vsel %vm1909_vm3, %v2026_v60, %v2028_v10  ;;  %v2223_v57 = vmax.f32 %v1843_v27, %v2030_v63  ;;  %v2021_v9 = vsel %vm1909_vm3, %v10215_v52, %v2020_v1  ;;  %v10228_v53 = vrot.slane %v7069_v62, 1 }
 0x1b4   : > { %v2027_v17 = vsel %vm1909_vm3, %v10214_v20, %v2026_v60  ;;  %v2222_v7 = vmax.f32 %v1687_v28, %v2029_v3  ;;  %v2023_v45 = vsel %vm1909_vm3, %v2020_v1, %v2022_v4  ;;  %v2024_v47 = vsel %vm1909_vm3, %v2022_v4, %v6272_v0 }
 0x1b5   : > { %v2221_v24 = vmax.f32 %v6986_v56, %v2027_v17  ;;  %v2218_v20 = vmax.f32 %v6993_v54, %v2021_v9  ;;  %v10216_v60 = vrot.slane %v7113_v25, 2  ;;  %v2450_v17 = vrot.slane %v2223_v57, 2 }
 0x1b6   : > { %v2448_v56 = vrot.slane %v2222_v7, 2  ;;  %v2219_v28 = vmax.f32 %v1684_v18, %v2023_v45  ;;  %v2220_v27 = vmax.f32 %v1842_v26, %v2024_v47  ;;  %v1692_v1 = vrot.slane %v7128_v2, 2 }
 0x1b7   : > { %v7153_v10 = vsel %vm1627_vm2, -inf, %v10216_v60  ;;  %v2447_v19 = vrot.slane %v2221_v24, 2  ;;  %v2441_v3 = vrot.slane %v2218_v20, 2  ;;  %v2452_v9 = vsel %vm1627_vm2, %v2450_v17, %v6277_v5 }
 0x1b8   : > { %v2451_v4 = vsel %vm1627_vm2, %v2448_v56, %v2450_v17  ;;  %v2442_v54 = vrot.slane %v2219_v28, 2  ;;  %v7165_v29 = vmax.f32 %v2223_v57, %v2452_v9  ;;  %v2444_v47 = vrot.slane %v2220_v27, 2 }
 0x1b9   : > { %v2449_v63 = vsel %vm1627_vm2, %v2447_v19, %v2448_v56  ;;  %v7163_v39 = vmax.f32 %v2222_v7, %v2451_v4  ;;  %v1693_v26 = vsel %vm1627_vm2, %v1691_v50, %v1692_v1  ;;  %v1845_v45 = vsel %vm1627_vm2, %v1692_v1, -inf }
 0x1ba   : > { %v7161_v60 = vmax.f32 %v2221_v24, %v2449_v63  ;;  %10219 = vst [vmem:[#allocation88_spill] sm:$0xff] %v7165_v29  ;;  %v2443_v18 = vsel %vm1627_vm2, %v2441_v3, %v2442_v54  ;;  %v2875_v24 = vrot.slane %v7165_v29, 4  ;;  %v2445_v57 = vsel %vm1627_vm2, %v2442_v54, %v2444_v47 }
 0x1bb   : > { %10218 = vst [vmem:[#allocation87_spill] sm:$0xff] %v7163_v39  ;;  %v9967_v17 = vrot.slane %v7163_v39, 4  ;;  %v2446_v3 = vsel %vm1627_vm2, %v2444_v47, %v6277_v5  ;;  %v7179_v63 = vmax.f32 %v2218_v20, %v2443_v18  ;;  %v2038_v50 = vrot.slane %v1693_v26, 1 }
 0x1bc   : > { %10217 = vst [vmem:[#allocation86_spill] sm:$0xff] %v7161_v60  ;;  %v2877_v4 = vsel %vm2756_vm4, %v2875_v24, %v6299_v37  ;;  %v7186_v9 = vmax.f32 %v2219_v28, %v2445_v57  ;;  %v7188_v19 = vmax.f32 %v2220_v27, %v2446_v3  ;;  %v2040_v28 = vrot.slane %v1845_v45, 1 }
 0x1bd   : > { %10220 = vst [vmem:[#allocation89_spill] sm:$0xff] %v7179_v63  ;;  %v2876_v1 = vsel %vm2756_vm4, %v9967_v17, %v2875_v24  ;;  %v7194_v54 = vmax.f32 %v7165_v29, %v2877_v4  ;;  %v2039_v47 = vsel %vm1909_vm3, %v2037_v61, %v2038_v50  ;;  %v1218_v27 = vadd.f32 1.0, %v7120_v48 }
 0x1be   : > { %10221 = vst [vmem:[#allocation90_spill] sm:$0xff] %v7186_v9  ;;  %10222 = vst [vmem:[#allocation91_spill] sm:$0xff] %v7188_v19  ;;  %v7191_v56 = vmax.f32 %v7163_v39, %v2876_v1  ;;  %v9968_v18 = vrot.slane %v7186_v9, 4  ;;  %v2869_v17 = vrot.slane %v7188_v19, 4  ;;  %v2227_v57 = vmax.f32 %v1817_v51, %v2039_v47  ;;  %v10282_v39 = vld [vmem:[#allocation40_spill] sm:$0xff] }
 0x1bf   : > { %10224 = vst [vmem:[#allocation93_spill] sm:$0xff] %v7194_v54  ;;  %v10225_v3 = vrot.slane %v7071_v44, 4  ;;  %v7208_v4 = vmax.f32 %v7067_v21, %v7107_v23  ;;  %v2041_v51 = vsel %vm1909_vm3, %v2038_v50, %v2040_v28  ;;  %v2042_v48 = vsel %vm1909_vm3, %v2040_v28, %v6272_v0 }
 0x1c0   : > { %10223 = vst [vmem:[#allocation92_spill] sm:$0xff] %v7191_v56  ;;  %v2870_v61 = vsel %vm2756_vm4, %v9968_v18, %v2869_v17  ;;  %v2871_v7 = vsel %vm2756_vm4, %v2869_v17, %v6299_v37  ;;  %v2228_v23 = vmax.f32 %v1693_v26, %v2041_v51  ;;  %v2229_v20 = vmax.f32 %v1845_v45, %v2042_v48 }
 0x1c1   : > { %v2763_v1 = vsel %vm2756_vm4, %v10225_v3, %v6299_v37  ;;  %v7219_v47 = vmax.f32 %v7186_v9, %v2870_v61  ;;  %v7222_v3 = vmax.f32 %v7188_v19, %v2871_v7  ;;  %v2459_v24 = vrot.slane %v2227_v57, 2 }
 0x1c2   : > { %5963 = vrcp.f32 %v1218_v27  ;;  %v3011_v18 = vmax.f32 %v7069_v62, %v7118_v30  ;;  %v3012_v17 = vmax.f32 %v7071_v44, %v2763_v1  ;;  %v2460_v52 = vrot.slane %v2228_v23, 2 }
 0x1c3   : > { %10226 = vst [vmem:[#allocation94_spill] sm:$0xff] %v7219_v47  ;;  %10227 = vst [vmem:[#allocation95_spill] sm:$0xff] %v7222_v3  ;;  %v2462_v50 = vrot.slane %v2229_v20, 2  ;;  %v10229_v28 = vrot.slane %v7067_v21, 1  ;;  %v10230_v7 = vrot.slane %v7071_v44, 1  ;;  %v10231_v26 = vmov %v10228_v53 }
 0x1c4   : > { %v10232_v27 = vrot.slane %v6555_v16, 1  ;;  %v10233_v30 = vrot.slane %v6553_v49, 1  ;;  %v3117_v51 = vrot.slane %v6558_v11, 1  ;;  %v10254_v56 = vrot.slane %v6519_v31, 1 }
 0x1c5   : > { %v3096_v61 = vsel %vm1909_vm3, %v10229_v28, %v10228_v53  ;;  %v3098_v45 = vsel %vm1909_vm3, %v10231_v26, %v10230_v7  ;;  %v2461_v53 = vsel %vm1627_vm2, %v2459_v24, %v2460_v52  ;;  %v2463_v28 = vsel %vm1627_vm2, %v2460_v52, %v2462_v50 }
 0x1c6   : > { %v3116_v1 = vsel %vm1909_vm3, %v10233_v30, %v10232_v27  ;;  %v7244_v48 = vmax.f32 %v7067_v21, %v3096_v61  ;;  %v7247_v2 = vmax.f32 %v7069_v62, %v3098_v45  ;;  %v2464_v7 = vsel %vm1627_vm2, %v2462_v50, %v6277_v5 }
 0x1c7   : > { %v10236_v26 = vrot.slane %v7071_v44, 1  ;;  %v7258_v27 = vmax.f32 %v2227_v57, %v2461_v53  ;;  %v7260_v30 = vmax.f32 %v2228_v23, %v2463_v28  ;;  %v7262_v21 = vmax.f32 %v2229_v20, %v2464_v7 }
 0x1c8   : > { %10234 = vst [vmem:[#allocation96_spill] sm:$0xff] %v7244_v48  ;;  %10235 = vst [vmem:[#allocation97_spill] sm:$0xff] %v7247_v2  ;;  %v10241_v62 = vrot.slane %v6555_v16, 1  ;;  %v3260_v52 = vmax.f32 %v6429_v12, %v7065_v14  ;;  %v3261_v50 = vmax.f32 %v6431_v40, %v7076_v13  ;;  %v10242_v61 = vrot.slane %v6442_v38, 1 }
 0x1c9   : > { %v7256_v54 = vmax.f32 %v7071_v44, %v10236_v26  ;;  %10238 = vst [vmem:[#allocation99_spill] sm:$0xff] %v7258_v27  ;;  %10239 = vst [vmem:[#allocation100_spill] sm:$0xff] %v7260_v30  ;;  %v3263_v57 = vmax.f32 %v6406_v42, %v7079_v34  ;;  %v9972_v23 = vrot.slane %v7260_v30, 4  ;;  %v2887_v45 = vrot.slane %v7262_v21, 4 }
 0x1ca   : > { %10240 = vst [vmem:[#allocation101_spill] sm:$0xff] %v7262_v21  ;;  %v3118_v24 = vsel %vm1909_vm3, %v10241_v62, %v3117_v51  ;;  %v3262_v44 = vmax.f32 %v6442_v38, %v10242_v61  ;;  %v3264_v14 = vmax.f32 %v10204_v6, %v7084_v32  ;;  %v10243_v40 = vrot.slane %v10205_v55, 1 }
 0x1cb   : > { %10237 = vst [vmem:[#allocation98_spill] sm:$0xff] %v7256_v54  ;;  %v7286_v38 = vmax.f32 %v6553_v49, %v3116_v1  ;;  %v7289_v34 = vmax.f32 %v6555_v16, %v3118_v24  ;;  %v2888_v28 = vsel %vm2756_vm4, %v9972_v23, %v2887_v45  ;;  %v2889_v7 = vsel %vm2756_vm4, %v2887_v45, %v6299_v37 }
 0x1cc   : > { %v3265_v13 = vmax.f32 %v10205_v55, %v10243_v40  ;;  %v7297_v26 = vmax.f32 %v6558_v11, %v3117_v51  ;;  %v3386_v6 = vrot.slane %v7208_v4, 1  ;;  %v7301_v55 = vmax.f32 %v7260_v30, %v2888_v28  ;;  %v5964_v62 = vpop.eup %5963 }
 0x1cd   : > { %v7304_v32 = vmax.f32 %v7262_v21, %v2889_v7  ;;  %v3387_v16 = vrot.slane %v3011_v18, 1  ;;  %v3389_v1 = vrot.slane %v3012_v17, 1  ;;  %v3663_v24 = vrot.slane %v7208_v4, 5 }
 0x1ce   : > { %10244 = vst [vmem:[#allocation102_spill] sm:$0xff] %v7301_v55  ;;  %v3664_v61 = vrot.slane %v3011_v18, 5  ;;  %v3666_v40 = vrot.slane %v3012_v17, 5  ;;  %v7308_v45 = vmul.f32 %v5964_v62, %v6834_v22  ;;  %v3920_v62 = vmax.f32 %v7256_v54, %v3262_v44 }
 0x1cf   : > { %10245 = vst [vmem:[#allocation103_spill] sm:$0xff] %v7304_v32  ;;  %v3388_v11 = vsel %vm1909_vm3, %v3386_v6, %v3387_v16  ;;  %v3390_v51 = vsel %vm1909_vm3, %v3387_v16, %v3389_v1  ;;  %v7312_v28 = vmax.f32 %v3012_v17, %v3389_v1  ;;  %v3918_v17 = vmax.f32 %v7244_v48, %v3260_v52 }
 0x1d0   : > { %10246 = vst [vmem:[#allocation104_spill] sm:$0xff] %v7308_v45  ;;  %v7315_v7 = vmax.f32 %v7208_v4, %v3388_v11  ;;  %v7317_v20 = vmax.f32 %v3011_v18, %v3390_v51  ;;  %v3665_v23 = vsel %vm3662_vm5, %v3663_v24, %v3664_v61  ;;  %v3667_v53 = vsel %vm3662_vm5, %v3664_v61, %v3666_v40 }
 0x1d1   : > { %10247 = vst [vmem:[#allocation105_spill] sm:$0xff] %v7312_v28  ;;  %v1689_v32 = vrot.slane %v7308_v45, 2  ;;  %v7325_v6 = vmax.f32 %v7208_v4, %v3665_v23  ;;  %v7327_v16 = vmax.f32 %v3011_v18, %v3667_v53  ;;  %v3919_v1 = vmax.f32 %v7247_v2, %v3261_v50 }
 0x1d2   : > { %10248 = vst [vmem:[#allocation106_spill] sm:$0xff] %v7315_v7  ;;  %10249 = vst [vmem:[#allocation107_spill] sm:$0xff] %v7317_v20  ;;  %v3921_v11 = vmax.f32 %v3260_v52, %v3263_v57  ;;  %v10252_v24 = vrot.slane %v7113_v25, 2  ;;  %v3922_v51 = vmax.f32 %v3261_v50, %v3264_v14  ;;  %v3923_v22 = vmax.f32 %v3262_v44, %v3265_v13 }
 0x1d3   : > { %10250 = vst [vmem:[#allocation108_spill] sm:$0xff] %v7325_v6  ;;  %10251 = vst [vmem:[#allocation109_spill] sm:$0xff] %v7327_v16  ;;  %v1844_v40 = vsel %vm1627_vm2, %v1689_v32, -inf  ;;  %v7337_v18 = vmax.f32 %v3263_v57, %v7286_v38  ;;  %v7340_v23 = vmax.f32 %v3264_v14, %v7289_v34  ;;  %v7343_v53 = vmax.f32 %v3265_v13, %v7297_v26 }
 0x1d4   : > { %v1690_v61 = vsel %vm1627_vm2, %v10252_v24, %v1689_v32  ;;  %v2034_v4 = vrot.slane %v1844_v40, 1  ;;  %v3972_v52 = vmax.f32 %v7244_v48, %v3921_v11  ;;  %v3973_v25 = vmax.f32 %v7247_v2, %v3922_v51 }
 0x1d5   : > { %v2032_v45 = vrot.slane %v1690_v61, 1  ;;  %v3974_v24 = vmax.f32 %v7256_v54, %v3923_v22  ;;  %v10253_v50 = vrot.slane %v7153_v10, 1  ;;  %v7355_v14 = vmax.f32 %v3918_v17, %v7337_v18 }
 0x1d6   : > { %v2036_v57 = vsel %vm1909_vm3, %v2034_v4, %v6272_v0  ;;  %v3976_v2 = vmax.f32 %v3919_v1, %v7340_v23  ;;  %v3977_v54 = vmax.f32 %v3920_v62, %v7343_v53  ;;  %v3427_v60 = vrot.slane %v10282_v39, 1 }
 0x1d7   : > { %v2033_v44 = vsel %vm1909_vm3, %v10253_v50, %v2032_v45  ;;  %v2035_v32 = vsel %vm1909_vm3, %v2032_v45, %v2034_v4  ;;  %v2226_v48 = vmax.f32 %v1844_v40, %v2036_v57  ;;  %v4023_v30 = vmax.f32 %v3972_v52, %v7355_v14 }
 0x1d8   : > { %v2224_v13 = vmax.f32 %v7153_v10, %v2033_v44  ;;  %v2225_v55 = vmax.f32 %v1690_v61, %v2035_v32  ;;  %v3119_v50 = vrot.slane %v6517_v8, 1  ;;  %v3122_v45 = vrot.slane %v6521_v59, 1 }
 0x1d9   : > { %v2456_v0 = vrot.slane %v2226_v48, 2  ;;  %v4024_v4 = vmax.f32 %v3973_v25, %v3976_v2  ;;  %v4025_v17 = vmax.f32 %v3974_v24, %v3977_v54  ;;  %v10255_v61 = vmov %v10254_v56 }
 0x1da   : > { %v2453_v21 = vrot.slane %v2224_v13, 2  ;;  %v2454_v27 = vrot.slane %v2225_v55, 2  ;;  %v3121_v10 = vsel %vm1909_vm3, %v3119_v50, %v10254_v56  ;;  %v3123_v1 = vsel %vm1909_vm3, %v10255_v61, %v3122_v45 }
 0x1db   : > { %v3271_v62 = vmax.f32 %v6521_v59, %v3122_v45  ;;  %v2458_v44 = vsel %vm1627_vm2, %v2456_v0, %v6277_v5  ;;  %v4496_v32 = vpack.c.bf16 %v4024_v4, %v4023_v30  ;;  %v4497_v56 = vpack.c.bf16 %v4025_v17, %v4025_v17  ;;  %v10259_v17 = vld [vmem:[#allocation36_spill] sm:$0xff] }
 0x1dc   : > { %v2455_v40 = vsel %vm1627_vm2, %v2453_v21, %v2454_v27  ;;  %v2457_v52 = vsel %vm1627_vm2, %v2454_v27, %v2456_v0  ;;  %v7378_v57 = vmax.f32 %v2226_v48, %v2458_v44  ;;  %v3269_v61 = vmax.f32 %v6517_v8, %v3121_v10  ;;  %v10262_v44 = vld [vmem:[#allocation37_spill] sm:$0xff] }
 0x1dd   : > { %v7374_v25 = vmax.f32 %v2224_v13, %v2455_v40  ;;  %v7376_v24 = vmax.f32 %v2225_v55, %v2457_v52  ;;  %v4609_v50 = vrot.slane %v4496_v32, 2  ;;  %v3270_v59 = vmax.f32 %v6519_v31, %v3123_v1  ;;  %v10264_v27 = vld [vmem:[#allocation29_spill] sm:$0xff] }
 0x1de   : > { %10258 = vst [vmem:[#allocation112_spill] sm:$0xff] %v7378_v57  ;;  %v3929_v21 = vmax.f32 %v7297_v26, %v3271_v62  ;;  %v2881_v5 = vrot.slane %v7378_v57, 4  ;;  %v4610_v55 = vrot.slane %v4497_v56, 2  ;;  %v3927_v48 = vmax.f32 %v7286_v38, %v3269_v61 }
 0x1df   : > { %10256 = vst [vmem:[#allocation110_spill] sm:$0xff] %v7374_v25  ;;  %10257 = vst [vmem:[#allocation111_spill] sm:$0xff] %v7376_v24  ;;  %v9990_v45 = vrot.slane %v7376_v24, 4  ;;  %v3928_v13 = vmax.f32 %v7289_v34, %v3270_v59  ;;  %v3124_v4 = vrot.slane %v6640_v15, 1  ;;  %v3125_v10 = vrot.slane %v10259_v17, 1 }
 0x1e0   : > { %v3980_v0 = vmax.f32 %v3923_v22, %v3929_v21  ;;  %v2883_v26 = vsel %vm2756_vm4, %v2881_v5, %v6299_v37  ;;  %v4611_v38 = vsel %vm1627_vm2, %v4609_v50, %v4610_v55  ;;  %v3978_v34 = vmax.f32 %v3921_v11, %v3927_v48 }
 0x1e1   : > { %v2882_v31 = vsel %vm2756_vm4, %v9990_v45, %v2881_v5  ;;  %v7400_v40 = vmax.f32 %v7378_v57, %v2883_v26  ;;  %4657 = vrot.lane.b32.xlu0 %v4611_v38, %s6120_s18  ;;  %v3979_v22 = vmax.f32 %v3922_v51, %v3928_v13  ;;  %v3126_v37 = vsel %vm1909_vm3, %v3124_v4, %v3125_v10  ;;  %v10263_v5 = vld [vmem:[#allocation28_spill] sm:$0xff]  ;;  %v10265_v26 = vld [vmem:[#allocation30_spill] sm:$0xff] }
 0x1e2   : > { %v7397_v1 = vmax.f32 %v7376_v24, %v2882_v31  ;;  %v4028_v52 = vmax.f32 %v3977_v54, %v3980_v0  ;;  %v3127_v32 = vrot.slane %v10262_v44, 1  ;;  %v4026_v56 = vmax.f32 %v7355_v14, %v3978_v34  ;;  %v10280_v24 = vld [vmem:[#allocation22_spill] sm:$0xff] }
 0x1e3   : > { %10261 = vst [vmem:[#allocation113_spill] sm:$0xff] %v7400_v40  ;;  %v3129_v31 = vrot.slane %v10263_v5, 1  ;;  %v3130_v45 = vrot.slane %v10264_v27, 1  ;;  %v3132_v30 = vrot.slane %v10265_v26, 1  ;;  %v4027_v40 = vmax.f32 %v3976_v2, %v3979_v22 }
 0x1e4   : > { %10260 = vst [vmem:[#allocation36_spill] sm:$0xff] %v7397_v1  ;;  %v4499_v50 = vpack.c.bf16 %v4028_v52, %v4028_v52  ;;  %v3128_v11 = vsel %vm1909_vm3, %v3125_v10, %v3127_v32  ;;  %v3272_v55 = vmax.f32 %v6640_v15, %v3126_v37  ;;  %v3274_v14 = vmax.f32 %v10262_v44, %v3127_v32  ;;  %v10268_v32 = vld [vmem:[#allocation15_spill] sm:$0xff] }
 0x1e5   : > { %v3131_v54 = vsel %vm1909_vm3, %v3129_v31, %v3130_v45  ;;  %v3133_v51 = vsel %vm1909_vm3, %v3130_v45, %v3132_v30  ;;  %v3273_v4 = vmax.f32 %v10259_v17, %v3128_v11  ;;  %v4498_v38 = vpack.c.bf16 %v4027_v40, %v4026_v56 }
 0x1e6   : > { %v4613_v1 = vrot.slane %v4499_v50, 2  ;;  %v7417_v57 = vmax.f32 %v10263_v5, %v3131_v54  ;;  %v7420_v2 = vmax.f32 %v10264_v27, %v3133_v51  ;;  %v7423_v10 = vmax.f32 %v10265_v26, %v3132_v30  ;;  %v10270_v26 = vld [vmem:[#allocation11_spill] sm:$0xff]  ;;  %v10272_v54 = vld [vmem:[#allocation20_spill] sm:$0xff] }
 0x1e7   : > { %v7425_v52 = vmax.f32 %v3269_v61, %v3272_v55  ;;  %v7427_v37 = vmax.f32 %v3270_v59, %v3273_v4  ;;  %v7429_v45 = vmax.f32 %v3271_v62, %v3274_v14  ;;  %v4612_v17 = vrot.slane %v4498_v38, 2  ;;  %v10274_v38 = vld [vmem:[#allocation17_spill] sm:$0xff] }
 0x1e8   : > { %v7432_v44 = vmax.f32 %v3272_v55, %v7417_v57  ;;  %v7435_v40 = vmax.f32 %v3273_v4, %v7420_v2  ;;  %v7439_v27 = vmax.f32 %v6429_v12, %v10268_v32  ;;  %v7442_v30 = vmax.f32 %v3274_v14, %v7423_v10  ;;  %v10271_v55 = vld [vmem:[#allocation25_spill] sm:$0xff]  ;;  %v10273_v14 = vld [vmem:[#allocation39_spill] sm:$0xff]  ;;  %v10275_v32 = vld [vmem:[#allocation18_spill] sm:$0xff] }
 0x1e9   : > { %v3981_v61 = vmax.f32 %v7337_v18, %v7425_v52  ;;  %v3982_v62 = vmax.f32 %v7340_v23, %v7427_v37  ;;  %v3983_v59 = vmax.f32 %v7343_v53, %v7429_v45  ;;  %v4614_v56 = vsel %vm1627_vm2, %v4612_v17, %v4613_v1 }
 0x1ea   : > { %10266 = vst [vmem:[#allocation37_spill] sm:$0xff] %v7432_v44  ;;  %10267 = vst [vmem:[#allocation28_spill] sm:$0xff] %v7435_v40  ;;  %v7452_v31 = vmax.f32 %v3927_v48, %v7432_v44  ;;  %v7455_v12 = vmax.f32 %v3928_v13, %v7435_v40  ;;  %v7459_v50 = vmax.f32 %v6406_v42, %v10270_v26  ;;  %4659 = vrot.lane.b32.xlu0 %v4614_v56, %s6120_s18 }
 0x1eb   : > { %10269 = vst [vmem:[#allocation29_spill] sm:$0xff] %v7442_v30  ;;  %v7463_v18 = vmax.f32 %v3929_v21, %v7442_v30  ;;  %v4029_v23 = vmax.f32 %v3978_v34, %v3981_v61  ;;  %v4030_v11 = vmax.f32 %v3979_v22, %v3982_v62  ;;  %v4031_v53 = vmax.f32 %v3980_v0, %v3983_v59 }
 0x1ec   : > { %v4032_v1 = vmax.f32 %v3981_v61, %v7452_v31  ;;  %v4033_v48 = vmax.f32 %v3982_v62, %v7455_v12  ;;  %v7469_v13 = vmax.f32 %v6553_v49, %v10271_v55  ;;  %v7473_v42 = vmax.f32 %v6517_v8, %v10272_v54 }
 0x1ed   : > { %v4034_v51 = vmax.f32 %v3983_v59, %v7463_v18  ;;  %v4500_v4 = vpack.c.bf16 %v4030_v11, %v4029_v23  ;;  %v4501_v21 = vpack.c.bf16 %v4031_v53, %v4031_v53  ;;  %v7478_v34 = vmax.f32 %v6640_v15, %v10273_v14  ;;  %v10276_v11 = vld [vmem:[#allocation12_spill] sm:$0xff]  ;;  %v10279_v14 = vld [vmem:[#allocation27_spill] sm:$0xff] }
 0x1ee   : > { %v4502_v0 = vpack.c.bf16 %v4033_v48, %v4032_v1  ;;  %v3406_v22 = vrot.slane %v7439_v27, 1  ;;  %v3407_v17 = vrot.slane %v10274_v38, 1  ;;  %v3409_v49 = vrot.slane %v10275_v32, 1  ;;  %v10277_v48 = vld [vmem:[#allocation13_spill] sm:$0xff] }
 0x1ef   : > { %v4503_v61 = vpack.c.bf16 %v4034_v51, %v4034_v51  ;;  %v4615_v62 = vrot.slane %v4500_v4, 2  ;;  %v4616_v56 = vrot.slane %v4501_v21, 2  ;;  %v3411_v8 = vrot.slane %v7459_v50, 1  ;;  %v10278_v4 = vld [vmem:[#allocation26_spill] sm:$0xff] }
 0x1f0   : > { %v4618_v26 = vrot.slane %v4502_v0, 2  ;;  %v3408_v59 = vsel %vm1909_vm3, %v3406_v22, %v3407_v17  ;;  %v3410_v23 = vsel %vm1909_vm3, %v3407_v17, %v3409_v49  ;;  %v3412_v15 = vrot.slane %v10276_v11, 1 }
 0x1f1   : > { %v4619_v53 = vrot.slane %v4503_v61, 2  ;;  %v4617_v1 = vsel %vm1627_vm2, %v4615_v62, %v4616_v56  ;;  %v3414_v55 = vrot.slane %v10277_v48, 1  ;;  %v3416_v54 = vrot.slane %v7469_v13, 1  ;;  %v10281_v56 = vld [vmem:[#allocation23_spill] sm:$0xff] }
 0x1f2   : > { %4661 = vrot.lane.b32.xlu0 %v4617_v1, %s6120_s18  ;;  %v3413_v51 = vsel %vm1909_vm3, %v3411_v8, %v3412_v15  ;;  %v3417_v21 = vrot.slane %v10278_v4, 1  ;;  %v3419_v0 = vrot.slane %v10279_v14, 1  ;;  %v3421_v22 = vrot.slane %v7473_v42, 1 }
 0x1f3   : > { %v4620_v17 = vsel %vm1627_vm2, %v4618_v26, %v4619_v53  ;;  %v3415_v61 = vsel %vm1909_vm3, %v3412_v15, %v3414_v55  ;;  %v3422_v62 = vrot.slane %v10280_v24, 1  ;;  %v3424_v25 = vrot.slane %v10281_v56, 1  ;;  %v10283_v53 = vld [vmem:[#allocation41_spill] sm:$0xff] }
 0x1f4   : > { %4663 = vrot.lane.b32.xlu1 %v4620_v17, %s6120_s18  ;;  %v3418_v1 = vsel %vm1909_vm3, %v3416_v54, %v3417_v21  ;;  %v3420_v8 = vsel %vm1909_vm3, %v3417_v21, %v3419_v0  ;;  %v3426_v29 = vrot.slane %v7478_v34, 1  ;;  %v3429_v15 = vrot.slane %v10283_v53, 1 }
 0x1f5   : > { %v3423_v3 = vsel %vm1909_vm3, %v3421_v22, %v3422_v62  ;;  %v3425_v26 = vsel %vm1909_vm3, %v3422_v62, %v3424_v25  ;;  %v3590_v47 = vmax.f32 %v7439_v27, %v3408_v59  ;;  %v3591_v17 = vmax.f32 %v10274_v38, %v3410_v23 }
 0x1f6   : > { %v3428_v19 = vsel %vm1909_vm3, %v3426_v29, %v3427_v60  ;;  %v3592_v54 = vmax.f32 %v10275_v32, %v3409_v49  ;;  %v3593_v21 = vmax.f32 %v7459_v50, %v3413_v51  ;;  %v3430_v9 = vsel %vm1909_vm3, %v3427_v60, %v3429_v15 }
 0x1f7   : > { %v3594_v63 = vmax.f32 %v10276_v11, %v3415_v61  ;;  %v3595_v22 = vmax.f32 %v10277_v48, %v3414_v55  ;;  %v3596_v62 = vmax.f32 %v7469_v13, %v3418_v1  ;;  %v3597_v58 = vmax.f32 %v10278_v4, %v3420_v8 }
 0x1f8   : > { %v3598_v59 = vmax.f32 %v10279_v14, %v3419_v0  ;;  %v3599_v29 = vmax.f32 %v7473_v42, %v3423_v3  ;;  %v3600_v23 = vmax.f32 %v10280_v24, %v3425_v26  ;;  %v3601_v49 = vmax.f32 %v10281_v56, %v3424_v25 }
 0x1f9   : > { %v7522_v51 = vmax.f32 %v7478_v34, %v3428_v19  ;;  %v7525_v60 = vmax.f32 %v10282_v39, %v3430_v9  ;;  %v7528_v55 = vmax.f32 %v10283_v53, %v3429_v15  ;;  %v7531_v61 = vmax.f32 %v7315_v7, %v3590_v47 }
 0x1fa   : > { %v7534_v0 = vmax.f32 %v7317_v20, %v3591_v17  ;;  %v7537_v3 = vmax.f32 %v7312_v28, %v3592_v54  ;;  %v7539_v1 = vmax.f32 %v3590_v47, %v3593_v21  ;;  %v7541_v25 = vmax.f32 %v3591_v17, %v3594_v63 }
 0x1fb   : > { %v7543_v19 = vmax.f32 %v3592_v54, %v3595_v22  ;;  %v7545_v9 = vmax.f32 %v3593_v21, %v3596_v62  ;;  %v7547_v8 = vmax.f32 %v3594_v63, %v3597_v58  ;;  %v7549_v26 = vmax.f32 %v3595_v22, %v3598_v59 }
 0x1fc   : > { %10284 = vst [vmem:[#allocation30_spill] sm:$0xff] %v7534_v0  ;;  %10285 = vst [vmem:[#allocation15_spill] sm:$0xff] %v7537_v3  ;;  %v7551_v15 = vmax.f32 %v3596_v62, %v3599_v29  ;;  %v7553_v33 = vmax.f32 %v3597_v58, %v3600_v23  ;;  %v7555_v41 = vmax.f32 %v3598_v59, %v3601_v49 }
 0x1fd   : > { %10286 = vst [vmem:[#allocation11_spill] sm:$0xff] %v7547_v8  ;;  %10287 = vst [vmem:[#allocation25_spill] sm:$0xff] %v7549_v26  ;;  %v7558_v43 = vmax.f32 %v3599_v29, %v7522_v51  ;;  %v7561_v47 = vmax.f32 %v3600_v23, %v7525_v60  ;;  %v7564_v17 = vmax.f32 %v3601_v49, %v7528_v55 }
 0x1fe   : > { %v4143_v63 = vmax.f32 %v7315_v7, %v7531_v61  ;;  %v4144_v54 = vmax.f32 %v7317_v20, %v7534_v0  ;;  %v4145_v58 = vmax.f32 %v7312_v28, %v7537_v3  ;;  %v7574_v21 = vmax.f32 %v7539_v1, %v7551_v15  ;;  %v10298_v3 = vld [vmem:[#allocation51_spill] sm:$0xff] }
 0x1ff   : > { %10288 = vst [vmem:[#allocation20_spill] sm:$0xff] %v7558_v43  ;;  %10289 = vst [vmem:[#allocation39_spill] sm:$0xff] %v7561_v47  ;;  %v7578_v22 = vmax.f32 %v7541_v25, %v7553_v33  ;;  %v7582_v62 = vmax.f32 %v7543_v19, %v7555_v41  ;;  %v7586_v59 = vmax.f32 %v7545_v9, %v7558_v43  ;;  %v3137_v0 = vrot.slane %v10298_v3, 1 }
 0x200   : > { %10290 = vst [vmem:[#allocation17_spill] sm:$0xff] %v7564_v17  ;;  %10291 = vst [vmem:[#allocation18_spill] sm:$0xff] %v7574_v21  ;;  %v7590_v29 = vmax.f32 %v7547_v8, %v7561_v47  ;;  %v7594_v23 = vmax.f32 %v7549_v26, %v7564_v17  ;;  %v4203_v49 = vmax.f32 %v7315_v7, %v7574_v21  ;;  %v10299_v21 = vld [vmem:[#allocation50_spill] sm:$0xff] }
 0x201   : > { %10292 = vst [vmem:[#allocation12_spill] sm:$0xff] %v7578_v22  ;;  %10293 = vst [vmem:[#allocation13_spill] sm:$0xff] %v7582_v62  ;;  %v4204_v36 = vmax.f32 %v7317_v20, %v7578_v22  ;;  %v4205_v43 = vmax.f32 %v7312_v28, %v7582_v62  ;;  %v7605_v47 = vmax.f32 %v4143_v63, %v7586_v59  ;;  %v10300_v26 = vrot.slane %v10299_v21, 1  ;;  %v10302_v62 = vld [vmem:[#allocation33_spill] sm:$0xff] }
 0x202   : > { %10294 = vst [vmem:[#allocation26_spill] sm:$0xff] %v7586_v59  ;;  %10295 = vst [vmem:[#allocation27_spill] sm:$0xff] %v7590_v29  ;;  %v7608_v8 = vmax.f32 %v4144_v54, %v7590_v29  ;;  %v7611_v17 = vmax.f32 %v4145_v58, %v7594_v23  ;;  %v7620_v30 = vmax.f32 %v10298_v3, %v3137_v0 }
 0x203   : > { %10296 = vst [vmem:[#allocation22_spill] sm:$0xff] %v7594_v23  ;;  %v3136_v22 = vsel %vm1909_vm3, %v3134_v46, %v10300_v26  ;;  %v10301_v40 = vmov %v10300_v26  ;;  %v7624_v63 = vmax.f32 %v10263_v5, %v10302_v62  ;;  %v4254_v54 = vmax.f32 %v4203_v49, %v7605_v47  ;;  %v10303_v5 = vld [vmem:[#allocation34_spill] sm:$0xff] }
 0x204   : > { %v3138_v44 = vsel %vm1909_vm3, %v10301_v40, %v3137_v0  ;;  %v4255_v58 = vmax.f32 %v4204_v36, %v7608_v8  ;;  %v4256_v23 = vmax.f32 %v4205_v43, %v7611_v17  ;;  %v7630_v29 = vmax.f32 %v10297_v35, %v3136_v22  ;;  %v10304_v43 = vld [vmem:[#allocation35_spill] sm:$0xff] }
 0x205   : > { %v7633_v46 = vmax.f32 %v10299_v21, %v3138_v44  ;;  %v7637_v40 = vmax.f32 %v7423_v10, %v7620_v30  ;;  %v3431_v0 = vrot.slane %v7624_v63, 1  ;;  %v3432_v3 = vrot.slane %v10303_v5, 1 }
 0x206   : > { %v4528_v26 = vpack.c.bf16 %v4255_v58, %v4254_v54  ;;  %v4529_v62 = vpack.c.bf16 %v4256_v23, %v4256_v23  ;;  %v7643_v36 = vmax.f32 %v7417_v57, %v7630_v29  ;;  %v3434_v22 = vrot.slane %v10304_v43, 1 }
 0x207   : > { %v7648_v44 = vmax.f32 %v7420_v2, %v7633_v46  ;;  %v7652_v10 = vmax.f32 %v7429_v45, %v7637_v40  ;;  %v3433_v49 = vsel %vm1909_vm3, %v3431_v0, %v3432_v3  ;;  %v4146_v54 = vmax.f32 %v7315_v7, %v7539_v1 }
 0x208   : > { %v4722_v23 = vrot.slane %v4528_v26, 1  ;;  %v4723_v58 = vrot.slane %v4529_v62, 1  ;;  %v7659_v57 = vmax.f32 %v7425_v52, %v7643_v36  ;;  %v3435_v59 = vsel %vm1909_vm3, %v3432_v3, %v3434_v22 }
 0x209   : > { %v7664_v2 = vmax.f32 %v7427_v37, %v7648_v44  ;;  %v4037_v45 = vmax.f32 %v7463_v18, %v7652_v10  ;;  %v7669_v0 = vmax.f32 %v7624_v63, %v3433_v49  ;;  %v7672_v1 = vmax.f32 %v10303_v5, %v3435_v59 }
 0x20a   : > { %v4724_v26 = vsel %vm1909_vm3, %v4722_v23, %v4723_v58  ;;  %v4035_v52 = vmax.f32 %v7452_v31, %v7659_v57  ;;  %v7678_v3 = vmax.f32 %v10304_v43, %v3434_v22  ;;  %v4147_v37 = vmax.f32 %v7317_v20, %v7541_v25 }
 0x20b   : > { %4770 = vrot.lane.b32.xlu1 %v4724_v26, %s6121_s19  ;;  %v4036_v18 = vmax.f32 %v7455_v12, %v7664_v2  ;;  %v4505_v62 = vpack.c.bf16 %v4037_v45, %v4037_v45  ;;  %v7687_v59 = vmax.f32 %v7522_v51, %v7669_v0  ;;  %v7691_v31 = vmax.f32 %v7525_v60, %v7672_v1 }
 0x20c   : > { %v7695_v22 = vmax.f32 %v7528_v55, %v7678_v3  ;;  %v4148_v25 = vmax.f32 %v7312_v28, %v7543_v19  ;;  %v10305_v49 = vrot.slane %v10299_v21, 4  ;;  %v10306_v12 = vrot.slane %v10297_v35, 4  ;;  %v10310_v28 = vld [vmem:[#allocation53_spill] sm:$0xff] }
 0x20d   : > { %v3693_v51 = vrot.slane %v7439_v27, 5  ;;  %v4504_v58 = vpack.c.bf16 %v4036_v18, %v4035_v52  ;;  %v4622_v45 = vrot.slane %v4505_v62, 2  ;;  %v7707_v60 = vmax.f32 %v7551_v15, %v7687_v59 }
 0x20e   : > { %v2832_v23 = vsel %vm2756_vm4, %v10306_v12, %v10305_v49  ;;  %v7711_v55 = vmax.f32 %v7553_v33, %v7691_v31  ;;  %v7715_v19 = vmax.f32 %v7555_v41, %v7695_v22  ;;  %v3694_v26 = vrot.slane %v10274_v38, 5 }
 0x20f   : > { %10307 = vst [vmem:[#allocation23_spill] sm:$0xff] %v7707_v60  ;;  %v7718_v21 = vmax.f32 %v10297_v35, %v2832_v23  ;;  %v3696_v52 = vrot.slane %v10275_v32, 5  ;;  %v4621_v18 = vrot.slane %v4504_v58, 2  ;;  %v7723_v62 = vmax.f32 %v4146_v54, %v7707_v60 }
 0x210   : > { %10308 = vst [vmem:[#allocation40_spill] sm:$0xff] %v7711_v55  ;;  %10309 = vst [vmem:[#allocation41_spill] sm:$0xff] %v7715_v19  ;;  %v7726_v15 = vmax.f32 %v4147_v37, %v7711_v55  ;;  %v3698_v33 = vrot.slane %v7459_v50, 5  ;;  %v7730_v49 = vmax.f32 %v4148_v25, %v7715_v19  ;;  %v3695_v41 = vsel %vm3662_vm5, %v3693_v51, %v3694_v26 }
 0x211   : > { %v3697_v35 = vsel %vm3662_vm5, %v3694_v26, %v3696_v52  ;;  %v3699_v12 = vrot.slane %v10276_v11, 5  ;;  %v4623_v32 = vsel %vm1627_vm2, %v4621_v18, %v4622_v45  ;;  %v4257_v54 = vmax.f32 %v7605_v47, %v7723_v62 }
 0x212   : > { %v4258_v37 = vmax.f32 %v7608_v8, %v7726_v15  ;;  %v3701_v23 = vrot.slane %v10277_v48, 5  ;;  %4665 = vrot.lane.b32.xlu0 %v4623_v32, %s6120_s18  ;;  %v4259_v25 = vmax.f32 %v7611_v17, %v7730_v49  ;;  %v3703_v58 = vrot.slane %v7469_v13, 5 }
 0x213   : > { %v3700_v51 = vsel %vm3662_vm5, %v3698_v33, %v3699_v12  ;;  %v3704_v26 = vrot.slane %v10278_v4, 5  ;;  %v3706_v47 = vrot.slane %v10279_v14, 5  ;;  %v3708_v8 = vrot.slane %v7473_v42, 5 }
 0x214   : > { %v4530_v45 = vpack.c.bf16 %v4258_v37, %v4257_v54  ;;  %v3702_v52 = vsel %vm3662_vm5, %v3699_v12, %v3701_v23  ;;  %v4531_v18 = vpack.c.bf16 %v4259_v25, %v4259_v25  ;;  %v3709_v32 = vrot.slane %v10280_v24, 5 }
 0x215   : > { %v3705_v48 = vsel %vm3662_vm5, %v3703_v58, %v3704_v26  ;;  %v3711_v17 = vrot.slane %v10281_v56, 5  ;;  %v3707_v33 = vsel %vm3662_vm5, %v3704_v26, %v3706_v47  ;;  %v3713_v7 = vrot.slane %v7478_v34, 5 }
 0x216   : > { %v4725_v20 = vrot.slane %v4530_v45, 1  ;;  %v3714_v54 = vrot.slane %v10282_v39, 5  ;;  %v4726_v37 = vrot.slane %v4531_v18, 1  ;;  %v3710_v12 = vsel %vm3662_vm5, %v3708_v8, %v3709_v32 }
 0x217   : > { %v3712_v14 = vsel %vm3662_vm5, %v3709_v32, %v3711_v17  ;;  %v3716_v23 = vrot.slane %v10283_v53, 5  ;;  %v3718_v58 = vrot.slane %v7624_v63, 5  ;;  %v3719_v56 = vrot.slane %v10303_v5, 5  ;;  %v10311_v32 = vld [vmem:[#allocation54_spill] sm:$0xff] }
 0x218   : > { %v3715_v25 = vsel %vm3662_vm5, %v3713_v7, %v3714_v54  ;;  %v3721_v45 = vrot.slane %v10304_v43, 5  ;;  %v4727_v26 = vsel %vm1909_vm3, %v4725_v20, %v4726_v37  ;;  %v3723_v18 = vrot.slane %v7718_v21, 5 }
 0x219   : > { %v3717_v47 = vsel %vm3662_vm5, %v3714_v54, %v3716_v23  ;;  %v3724_v8 = vrot.slane %v10310_v28, 5  ;;  %4772 = vrot.lane.b32.xlu1 %v4727_v26, %s6121_s19  ;;  %v3720_v53 = vsel %vm3662_vm5, %v3718_v58, %v3719_v56  ;;  %v3726_v17 = vrot.slane %v10311_v32, 5 }
 0x21a   : > { %v3722_v7 = vsel %vm3662_vm5, %v3719_v56, %v3721_v45  ;;  %v3871_v55 = vmax.f32 %v7439_v27, %v3695_v41  ;;  %v3872_v20 = vmax.f32 %v10274_v38, %v3697_v35  ;;  %v3873_v54 = vmax.f32 %v7459_v50, %v3700_v51  ;;  %v10318_v45 = vld [vmem:[#allocation42_spill] sm:$0xff] }
 0x21b   : > { %v3725_v43 = vsel %vm3662_vm5, %v3723_v18, %v3724_v8  ;;  %v3874_v37 = vmax.f32 %v10276_v11, %v3702_v52  ;;  %v3727_v23 = vsel %vm3662_vm5, %v3724_v8, %v3726_v17  ;;  %v7778_v26 = vmax.f32 %v7469_v13, %v3705_v48  ;;  %v10319_v18 = vld [vmem:[#allocation44_spill] sm:$0xff] }
 0x21c   : > { %v7781_v58 = vmax.f32 %v10278_v4, %v3707_v33  ;;  %v7784_v56 = vmax.f32 %v7473_v42, %v3710_v12  ;;  %v7787_v27 = vmax.f32 %v10280_v24, %v3712_v14  ;;  %v7790_v38 = vmax.f32 %v7478_v34, %v3715_v25 }
 0x21d   : > { %v7793_v50 = vmax.f32 %v10282_v39, %v3717_v47  ;;  %v7796_v11 = vmax.f32 %v7624_v63, %v3720_v53  ;;  %v7799_v13 = vmax.f32 %v10303_v5, %v3722_v7  ;;  %v7802_v4 = vmax.f32 %v7718_v21, %v3725_v43 }
 0x21e   : > { %v7805_v42 = vmax.f32 %v10310_v28, %v3727_v23  ;;  %v7808_v24 = vmax.f32 %v7325_v6, %v3871_v55  ;;  %v7811_v34 = vmax.f32 %v7327_v16, %v3872_v20  ;;  %v7813_v39 = vmax.f32 %v3871_v55, %v3873_v54 }
 0x21f   : > { %v7815_v41 = vmax.f32 %v3872_v20, %v3874_v37  ;;  %v7818_v63 = vmax.f32 %v3873_v54, %v7778_v26  ;;  %v7821_v5 = vmax.f32 %v3874_v37, %v7781_v58  ;;  %v7825_v35 = vmax.f32 %v7784_v56, %v7790_v38  ;;  %v10322_v54 = vld [vmem:[#allocation43_spill] sm:$0xff] }
 0x220   : > { %10312 = vst [vmem:[#allocation49_spill] sm:$0xff] %v7808_v24  ;;  %10313 = vst [vmem:[#allocation51_spill] sm:$0xff] %v7811_v34  ;;  %v7829_v51 = vmax.f32 %v7787_v27, %v7793_v50  ;;  %v7833_v55 = vmax.f32 %v7796_v11, %v7802_v4  ;;  %v7837_v52 = vmax.f32 %v7799_v13, %v7805_v42  ;;  %v3139_v47 = vrot.slane %v10318_v45, 1 }
 0x221   : > { %v7841_v48 = vmax.f32 %v7325_v6, %v7813_v39  ;;  %v7845_v33 = vmax.f32 %v7327_v16, %v7815_v41  ;;  %v7849_v12 = vmax.f32 %v7808_v24, %v7818_v63  ;;  %v7853_v14 = vmax.f32 %v7811_v34, %v7821_v5 }
 0x222   : > { %10314 = vst [vmem:[#allocation50_spill] sm:$0xff] %v7837_v52  ;;  %v7857_v25 = vmax.f32 %v7825_v35, %v7833_v55  ;;  %v3142_v8 = vrot.slane %v10319_v18, 1  ;;  %v7863_v53 = vmax.f32 %v7829_v51, %v7837_v52  ;;  %v3436_v43 = vrot.slane %v7718_v21, 1 }
 0x223   : > { %10315 = vst [vmem:[#allocation33_spill] sm:$0xff] %v7841_v48  ;;  %10316 = vst [vmem:[#allocation34_spill] sm:$0xff] %v7845_v33  ;;  %v4406_v7 = vmax.f32 %v7325_v6, %v7841_v48  ;;  %v4407_v17 = vmax.f32 %v7327_v16, %v7845_v33  ;;  %v10323_v37 = vrot.slane %v10322_v54, 1  ;;  %v3437_v24 = vrot.slane %v10310_v28, 1 }
 0x224   : > { %10317 = vst [vmem:[#allocation35_spill] sm:$0xff] %v7857_v25  ;;  %10320 = vst [vmem:[#allocation53_spill] sm:$0xff] %v7863_v53  ;;  %v7872_v20 = vmax.f32 %v7849_v12, %v7857_v25  ;;  %v7881_v34 = vmax.f32 %v10319_v18, %v3142_v8  ;;  %v7885_v33 = vmax.f32 %v7853_v14, %v7863_v53  ;;  %v3439_v18 = vrot.slane %v10311_v32, 1 }
 0x225   : > { %v3141_v23 = vsel %vm1909_vm3, %v3139_v47, %v10323_v37  ;;  %v10324_v60 = vmov %v10323_v37 }
 0x226   : > { %10321 = vst [vmem:[#allocation54_spill] sm:$0xff] %v7872_v20  ;;  %v3143_v19 = vsel %vm1909_vm3, %v10324_v60, %v3142_v8  ;;  %10325 = vst [vmem:[#allocation42_spill] sm:$0xff] %v7885_v33  ;;  %v7888_v48 = vmax.f32 %v10318_v45, %v3141_v23  ;;  %v4448_v47 = vmax.f32 %v4406_v7, %v7872_v20 }
 0x227   : > { %v7891_v25 = vmax.f32 %v10322_v54, %v3143_v19  ;;  %v7897_v60 = vmax.f32 %v7620_v30, %v7881_v34  ;;  %v4149_v8 = vmax.f32 %v7531_v61, %v7545_v9  ;;  %v4449_v37 = vmax.f32 %v4407_v17, %v7885_v33  ;;  %v10329_v30 = vld [vmem:[#allocation29_spill] sm:$0xff] }
 0x228   : > { %v7905_v23 = vmax.f32 %v7630_v29, %v7888_v48  ;;  %v3438_v7 = vsel %vm1909_vm3, %v3436_v43, %v3437_v24  ;;  %v3440_v53 = vsel %vm1909_vm3, %v3437_v24, %v3439_v18  ;;  %v7921_v9 = vmax.f32 %v10311_v32, %v3439_v18  ;;  %v10330_v17 = vld [vmem:[#allocation37_spill] sm:$0xff]  ;;  %v10335_v18 = vld [vmem:[#allocation30_spill] sm:$0xff] }
 0x229   : > { %10326 = vst [vmem:[#allocation44_spill] sm:$0xff] %v7897_v60  ;;  %v7909_v19 = vmax.f32 %v7633_v46, %v7891_v25  ;;  %v7914_v20 = vmax.f32 %v10329_v30, %v7897_v60  ;;  %v7918_v61 = vmax.f32 %v7718_v21, %v3438_v7  ;;  %v4560_v29 = vpack.c.bf16 %v4449_v37, %v4448_v47  ;;  %v10331_v46 = vld [vmem:[#allocation28_spill] sm:$0xff]  ;;  %v10334_v47 = vld [vmem:[#allocation11_spill] sm:$0xff] }
 0x22a   : > { %10327 = vst [vmem:[#allocation43_spill] sm:$0xff] %v7905_v23  ;;  %v7925_v33 = vmax.f32 %v10330_v17, %v7905_v23  ;;  %v7932_v30 = vmax.f32 %v10310_v28, %v3440_v53  ;;  %v7942_v32 = vmax.f32 %v7678_v3, %v7921_v9  ;;  %v4150_v37 = vmax.f32 %v10335_v18, %v10334_v47  ;;  %v10336_v53 = vld [vmem:[#allocation25_spill] sm:$0xff]  ;;  %v10337_v7 = vld [vmem:[#allocation15_spill] sm:$0xff] }
 0x22b   : > { %10328 = vst [vmem:[#allocation114_spill] sm:$0xff] %v7909_v19  ;;  %v7929_v43 = vmax.f32 %v10331_v46, %v7909_v19  ;;  %v4040_v24 = vmax.f32 %v7652_v10, %v7914_v20  ;;  %v7938_v21 = vmax.f32 %v7669_v0, %v7918_v61  ;;  %4818 = vrot.lane.b32.xlu0 %v4560_v29, %s6122_s20  ;;  %v10338_v46 = vld [vmem:[#allocation20_spill] sm:$0xff]  ;;  %v10339_v29 = vld [vmem:[#allocation17_spill] sm:$0xff]  ;;  %v10342_v23 = vld [vmem:[#allocation39_spill] sm:$0xff] }
 0x22c   : > { %10333 = vst [vmem:[#allocation37_spill] sm:$0xff] %v7942_v32  ;;  %v4038_v28 = vmax.f32 %v7659_v57, %v7925_v33  ;;  %v7953_v0 = vmax.f32 %v7672_v1, %v7932_v30  ;;  %v4151_v3 = vmax.f32 %v10337_v7, %v10336_v53  ;;  %v7963_v18 = vmax.f32 %v10339_v29, %v7942_v32  ;;  %v10343_v53 = vld [vmem:[#allocation46_spill] sm:$0xff] }
 0x22d   : > { %10332 = vst [vmem:[#allocation29_spill] sm:$0xff] %v7938_v21  ;;  %v4039_v10 = vmax.f32 %v7664_v2, %v7929_v43  ;;  %v4507_v17 = vpack.c.bf16 %v4040_v24, %v4040_v24  ;;  %v7959_v47 = vmax.f32 %v10338_v46, %v7938_v21  ;;  %v10340_v57 = vrot.slane %v10322_v54, 4  ;;  %v10344_v54 = vld [vmem:[#allocation47_spill] sm:$0xff] }
 0x22e   : > { %v10341_v2 = vrot.slane %v10318_v45, 4  ;;  %v7972_v60 = vmax.f32 %v10342_v23, %v7953_v0  ;;  %v3729_v7 = vrot.slane %v10343_v53, 5  ;;  %v7980_v29 = vmax.f32 %v4151_v3, %v7963_v18 }
 0x22f   : > { %v4506_v1 = vpack.c.bf16 %v4039_v10, %v4038_v28  ;;  %v4625_v46 = vrot.slane %v4507_v17, 2  ;;  %v7977_v21 = vmax.f32 %v4149_v8, %v7959_v47  ;;  %v3731_v32 = vrot.slane %v10344_v54, 5 }
 0x230   : > { %v2838_v19 = vsel %vm2756_vm4, %v10341_v2, %v10340_v57  ;;  %v7984_v28 = vmax.f32 %v4150_v37, %v7972_v60  ;;  %v7988_v23 = vmax.f32 %v7778_v26, %v7784_v56  ;;  %v4262_v8 = vmax.f32 %v7730_v49, %v7980_v29 }
 0x231   : > { %v3049_v24 = vmax.f32 %v10318_v45, %v2838_v19  ;;  %v4624_v52 = vrot.slane %v4506_v1, 2  ;;  %v4260_v45 = vmax.f32 %v7723_v62, %v7977_v21  ;;  %v3732_v19 = vsel %vm3662_vm5, %v3729_v7, %v3731_v32 }
 0x232   : > { %v7997_v3 = vmax.f32 %v7781_v58, %v7787_v27  ;;  %v4261_v17 = vmax.f32 %v7726_v15, %v7984_v28  ;;  %v8004_v56 = vmax.f32 %v10343_v53, %v3732_v19  ;;  %v4533_v62 = vpack.c.bf16 %v4262_v8, %v4262_v8  ;;  %v10350_v8 = vld [vmem:[#allocation69_spill] sm:$0xff] }
 0x233   : > { %v3728_v10 = vrot.slane %v3049_v24, 5  ;;  %v4626_v37 = vsel %vm1627_vm2, %v4624_v52, %v4625_v46  ;;  %v8011_v32 = vmax.f32 %v7790_v38, %v7796_v11  ;;  %v8015_v58 = vmax.f32 %v7793_v50, %v7799_v13 }
 0x234   : > { %4667 = vrot.lane.b32.xlu1 %v4626_v37, %s6120_s18  ;;  %v4532_v27 = vpack.c.bf16 %v4261_v17, %v4260_v45  ;;  %v8019_v15 = vmax.f32 %v7805_v42, %v8004_v56  ;;  %v8023_v52 = vmax.f32 %v7813_v39, %v7988_v23  ;;  %v8027_v57 = vmax.f32 %v7815_v41, %v7997_v3  ;;  %v10346_v39 = vld [vmem:[#allocation68_spill] sm:$0xff]  ;;  %v10347_v41 = vld [vmem:[#allocation70_spill] sm:$0xff] }
 0x235   : > { %v3730_v26 = vsel %vm3662_vm5, %v3728_v10, %v3729_v7  ;;  %v4729_v2 = vrot.slane %v4533_v62, 1  ;;  %v4408_v50 = vmax.f32 %v7325_v6, %v7849_v12  ;;  %v4409_v11 = vmax.f32 %v7327_v16, %v7853_v14 }
 0x236   : > { %v8007_v49 = vmax.f32 %v3049_v24, %v3730_v26  ;;  %v4728_v13 = vrot.slane %v4532_v27, 1  ;;  %v8039_v42 = vmax.f32 %v8015_v58, %v8019_v15  ;;  %v3144_v1 = vrot.slane %v10346_v39, 1 }
 0x237   : > { %v3147_v7 = vrot.slane %v10347_v41, 1  ;;  %v3442_v10 = vrot.slane %v10343_v53, 1  ;;  %v3444_v12 = vrot.slane %v10344_v54, 1  ;;  %v10351_v19 = vrot.slane %v10350_v8, 1 }
 0x238   : > { %v8031_v38 = vmax.f32 %v7802_v4, %v8007_v49  ;;  %10345 = vst [vmem:[#allocation28_spill] sm:$0xff] %v8039_v42  ;;  %v3441_v4 = vrot.slane %v3049_v24, 1  ;;  %v4730_v14 = vsel %vm1909_vm3, %v4728_v13, %v4729_v2  ;;  %v8052_v45 = vmax.f32 %v8027_v57, %v8039_v42 }
 0x239   : > { %v3146_v37 = vsel %vm1909_vm3, %v3144_v1, %v10351_v19  ;;  %v10352_v17 = vmov %v10351_v19  ;;  %4774 = vrot.lane.b32.xlu0 %v4730_v14, %s6121_s19  ;;  %v8072_v13 = vmax.f32 %v10347_v41, %v3147_v7  ;;  %v8078_v14 = vmax.f32 %v10344_v54, %v3444_v12 }
 0x23a   : > { %v8045_v46 = vmax.f32 %v8011_v32, %v8031_v38  ;;  %10349 = vst [vmem:[#allocation30_spill] sm:$0xff] %v8052_v45  ;;  %v3148_v26 = vsel %vm1909_vm3, %v10352_v17, %v3147_v7  ;;  %v8066_v27 = vmax.f32 %v10346_v39, %v3146_v37  ;;  %v4451_v1 = vmax.f32 %v4409_v11, %v8052_v45 }
 0x23b   : > { %v8069_v2 = vmax.f32 %v10350_v8, %v3148_v26  ;;  %v3443_v19 = vsel %vm1909_vm3, %v3441_v4, %v3442_v10  ;;  %v3445_v17 = vsel %vm1909_vm3, %v3442_v10, %v3444_v12  ;;  %v8091_v11 = vmax.f32 %v7881_v34, %v8072_v13  ;;  %v10357_v12 = vld [vmem:[#allocation71_spill] sm:$0xff] }
 0x23c   : > { %10348 = vst [vmem:[#allocation11_spill] sm:$0xff] %v8045_v46  ;;  %v8063_v62 = vmax.f32 %v8023_v52, %v8045_v46  ;;  %v8083_v37 = vmax.f32 %v7888_v48, %v8066_v27  ;;  %v8093_v41 = vmax.f32 %v3049_v24, %v3443_v19  ;;  %v8096_v7 = vmax.f32 %v10343_v53, %v3445_v17  ;;  %v10361_v17 = vld [vmem:[#allocation72_spill] sm:$0xff] }
 0x23d   : > { %v8087_v26 = vmax.f32 %v7891_v25, %v8069_v2  ;;  %v8100_v54 = vmax.f32 %v7921_v9, %v8078_v14  ;;  %v10354_v48 = vrot.slane %v10350_v8, 4  ;;  %v8117_v53 = vmax.f32 %v7637_v40, %v8091_v11 }
 0x23e   : > { %10353 = vst [vmem:[#allocation25_spill] sm:$0xff] %v8063_v62  ;;  %v4450_v46 = vmax.f32 %v4408_v50, %v8063_v62  ;;  %v10355_v50 = vrot.slane %v10346_v39, 4  ;;  %v8109_v34 = vmax.f32 %v7643_v36, %v8083_v37  ;;  %v8121_v9 = vmax.f32 %v7918_v61, %v8093_v41 }
 0x23f   : > { %v8113_v24 = vmax.f32 %v7648_v44, %v8087_v26  ;;  %v8125_v10 = vmax.f32 %v7932_v30, %v8096_v7  ;;  %v8129_v36 = vmax.f32 %v7695_v22, %v8100_v54  ;;  %v4043_v61 = vmax.f32 %v7914_v20, %v8117_v53 }
 0x240   : > { %v2844_v25 = vsel %vm2756_vm4, %v10355_v50, %v10354_v48  ;;  %v4561_v4 = vpack.c.bf16 %v4451_v1, %v4450_v46  ;;  %v4041_v40 = vmax.f32 %v7925_v33, %v8109_v34  ;;  %v3734_v30 = vrot.slane %v10357_v12, 5 }
 0x241   : > { %10356 = vst [vmem:[#allocation15_spill] sm:$0xff] %v8129_v36  ;;  %v3052_v46 = vmax.f32 %v10346_v39, %v2844_v25  ;;  %v4042_v44 = vmax.f32 %v7929_v43, %v8113_v24  ;;  %v8142_v8 = vmax.f32 %v7687_v59, %v8121_v9  ;;  %v8146_v22 = vmax.f32 %v7691_v31, %v8125_v10  ;;  %v10360_v39 = vld [vmem:[#allocation13_spill] sm:$0xff]  ;;  %v10362_v59 = vld [vmem:[#allocation18_spill] sm:$0xff]  ;;  %v10363_v31 = vld [vmem:[#allocation12_spill] sm:$0xff] }
 0x242   : > { %4820 = vrot.lane.b32.xlu1 %v4561_v4, %s6122_s20  ;;  %v8150_v1 = vmax.f32 %v10360_v39, %v8129_v36  ;;  %v4509_v43 = vpack.c.bf16 %v4043_v61, %v4043_v61  ;;  %v3736_v48 = vrot.slane %v10361_v17, 5  ;;  %v8155_v20 = vmax.f32 %v7818_v63, %v7825_v35 }
 0x243   : > { %10358 = vst [vmem:[#allocation20_spill] sm:$0xff] %v8142_v8  ;;  %10359 = vst [vmem:[#allocation17_spill] sm:$0xff] %v8146_v22  ;;  %v3733_v33 = vrot.slane %v3052_v46, 5  ;;  %v4508_v19 = vpack.c.bf16 %v4042_v44, %v4041_v40  ;;  %v8159_v50 = vmax.f32 %v10362_v59, %v8142_v8  ;;  %v8163_v25 = vmax.f32 %v10363_v31, %v8146_v22 }
 0x244   : > { %v4265_v4 = vmax.f32 %v7980_v29, %v8150_v1  ;;  %v4628_v61 = vrot.slane %v4509_v43, 2  ;;  %v3737_v39 = vsel %vm3662_vm5, %v3734_v30, %v3736_v48  ;;  %v4411_v48 = vmax.f32 %v7327_v16, %v8027_v57 }
 0x245   : > { %v3735_v40 = vsel %vm3662_vm5, %v3733_v33, %v3734_v30  ;;  %v4627_v44 = vrot.slane %v4508_v19, 2  ;;  %v4263_v63 = vmax.f32 %v7977_v21, %v8159_v50  ;;  %v4264_v35 = vmax.f32 %v7984_v28, %v8163_v25 }
 0x246   : > { %v8169_v62 = vmax.f32 %v3052_v46, %v3735_v40  ;;  %v4535_v59 = vpack.c.bf16 %v4265_v4, %v4265_v4  ;;  %v8176_v31 = vmax.f32 %v10357_v12, %v3737_v39  ;;  %v8185_v30 = vmax.f32 %v7821_v5, %v7829_v51  ;;  %v10365_v5 = vld [vmem:[#allocation59_spill] sm:$0xff]  ;;  %v10366_v4 = vld [vmem:[#allocation61_spill] sm:$0xff] }
 0x247   : > { %v4629_v29 = vsel %vm1627_vm2, %v4627_v44, %v4628_v61  ;;  %v4410_v21 = vmax.f32 %v7325_v6, %v8023_v52  ;;  %v4534_v28 = vpack.c.bf16 %v4264_v35, %v4263_v63  ;;  %v3149_v51 = vrot.slane %v10365_v5, 1  ;;  %v10367_v61 = vld [vmem:[#allocation50_spill] sm:$0xff] }
 0x248   : > { %v8181_v33 = vmax.f32 %v8007_v49, %v8169_v62  ;;  %4669 = vrot.lane.b32.xlu0 %v4629_v29, %s6120_s18  ;;  %v4732_v19 = vrot.slane %v4535_v59, 1  ;;  %v8192_v43 = vmax.f32 %v8004_v56, %v8176_v31  ;;  %v3152_v40 = vrot.slane %v10366_v4, 1 }
 0x249   : > { %v3446_v52 = vrot.slane %v3052_v46, 1  ;;  %v4731_v44 = vrot.slane %v4534_v28, 1  ;;  %v3447_v56 = vrot.slane %v10357_v12, 1  ;;  %v3449_v63 = vrot.slane %v10361_v17, 1 }
 0x24a   : > { %v8198_v49 = vmax.f32 %v7833_v55, %v8181_v33  ;;  %v8204_v39 = vmax.f32 %v10367_v61, %v8192_v43  ;;  %v10370_v55 = vld [vmem:[#allocation60_spill] sm:$0xff]  ;;  %v8219_v45 = vmax.f32 %v10366_v4, %v3152_v40 }
 0x24b   : > { %v10371_v35 = vrot.slane %v10370_v55, 1  ;;  %v4733_v61 = vsel %vm1909_vm3, %v4731_v44, %v4732_v19  ;;  %v3448_v19 = vsel %vm1909_vm3, %v3446_v52, %v3447_v56 }
 0x24c   : > { %10364 = vst [vmem:[#allocation39_spill] sm:$0xff] %v8198_v49  ;;  %10368 = vst [vmem:[#allocation46_spill] sm:$0xff] %v8204_v39  ;;  %v8210_v57 = vmax.f32 %v8155_v20, %v8198_v49  ;;  %v8224_v36 = vmax.f32 %v8185_v30, %v8204_v39  ;;  %4776 = vrot.lane.b32.xlu1 %v4733_v61, %s6121_s19  ;;  %v8236_v4 = vmax.f32 %v8072_v13, %v8219_v45 }
 0x24d   : > { %v3151_v59 = vsel %vm1909_vm3, %v3149_v51, %v10371_v35  ;;  %v10372_v29 = vmov %v10371_v35 }
 0x24e   : > { %10369 = vst [vmem:[#allocation47_spill] sm:$0xff] %v8210_v57  ;;  %v3153_v28 = vsel %vm1909_vm3, %v10372_v29, %v3152_v40  ;;  %10373 = vst [vmem:[#allocation68_spill] sm:$0xff] %v8224_v36  ;;  %v8227_v49 = vmax.f32 %v10365_v5, %v3151_v59  ;;  %v4452_v51 = vmax.f32 %v4410_v21, %v8210_v57  ;;  %v10374_v21 = vld [vmem:[#allocation44_spill] sm:$0xff] }
 0x24f   : > { %v8230_v22 = vmax.f32 %v10370_v55, %v3153_v28  ;;  %v3450_v40 = vsel %vm1909_vm3, %v3447_v56, %v3449_v63  ;;  %v4453_v44 = vmax.f32 %v4411_v48, %v8224_v36  ;;  %v8249_v29 = vmax.f32 %v3052_v46, %v3448_v19  ;;  %v10377_v46 = vld [vmem:[#allocation43_spill] sm:$0xff]  ;;  %v10378_v19 = vld [vmem:[#allocation114_spill] sm:$0xff]  ;;  %v10385_v36 = vld [vmem:[#allocation49_spill] sm:$0xff] }
 0x250   : > { %v8243_v35 = vmax.f32 %v8066_v27, %v8227_v49  ;;  %v8253_v13 = vmax.f32 %v10374_v21, %v8236_v4  ;;  %v8256_v52 = vmax.f32 %v10357_v12, %v3450_v40  ;;  %v8259_v56 = vmax.f32 %v10361_v17, %v3449_v63 }
 0x251   : > { %v8247_v59 = vmax.f32 %v8069_v2, %v8230_v22  ;;  %v10375_v48 = vrot.slane %v10370_v55, 4  ;;  %v10376_v27 = vrot.slane %v10365_v5, 4  ;;  %v4562_v2 = vpack.c.bf16 %v4453_v44, %v4452_v51 }
 0x252   : > { %v8268_v61 = vmax.f32 %v10377_v46, %v8243_v35  ;;  %v8276_v12 = vmax.f32 %v8093_v41, %v8249_v29  ;;  %v4046_v17 = vmax.f32 %v8117_v53, %v8253_v13  ;;  %v8282_v63 = vmax.f32 %v8096_v7, %v8256_v52  ;;  %v10379_v53 = vld [vmem:[#allocation29_spill] sm:$0xff]  ;;  %v10381_v7 = vld [vmem:[#allocation62_spill] sm:$0xff] }
 0x253   : > { %v2850_v28 = vsel %vm2756_vm4, %v10376_v27, %v10375_v48  ;;  %v8272_v21 = vmax.f32 %v10378_v19, %v8247_v59  ;;  %v8286_v55 = vmax.f32 %v8078_v14, %v8259_v56  ;;  %4822 = vrot.lane.b32.xlu0 %v4562_v2, %s6122_s20  ;;  %v3739_v48 = vrot.slane %v10381_v7, 5  ;;  %v10384_v19 = vld [vmem:[#allocation63_spill] sm:$0xff] }
 0x254   : > { %v8289_v51 = vmax.f32 %v10365_v5, %v2850_v28  ;;  %v4044_v41 = vmax.f32 %v8109_v34, %v8268_v61  ;;  %v8298_v44 = vmax.f32 %v10379_v53, %v8276_v12  ;;  %v4511_v27 = vpack.c.bf16 %v4046_v17, %v4046_v17  ;;  %v10382_v5 = vld [vmem:[#allocation37_spill] sm:$0xff] }
 0x255   : > { %v4045_v40 = vmax.f32 %v8113_v24, %v8272_v21  ;;  %v8303_v14 = vmax.f32 %v7953_v0, %v8282_v63  ;;  %v8307_v28 = vmax.f32 %v10382_v5, %v8286_v55  ;;  %v10383_v24 = vld [vmem:[#allocation26_spill] sm:$0xff]  ;;  %v3741_v53 = vrot.slane %v10384_v19, 5  ;;  %v10386_v0 = vld [vmem:[#allocation27_spill] sm:$0xff] }
 0x256   : > { %10380 = vst [vmem:[#allocation70_spill] sm:$0xff] %v8298_v44  ;;  %v3738_v34 = vrot.slane %v8289_v51, 5  ;;  %v8312_v46 = vmax.f32 %v10383_v24, %v8298_v44  ;;  %v4362_v17 = vmax.f32 %v7325_v6, %v10385_v36  ;;  %v4631_v57 = vrot.slane %v4511_v27, 2  ;;  %v10387_v5 = vld [vmem:[#allocation22_spill] sm:$0xff] }
 0x257   : > { %v4510_v2 = vpack.c.bf16 %v4045_v40, %v4044_v41  ;;  %v8319_v39 = vmax.f32 %v10386_v0, %v8303_v14  ;;  %v8323_v8 = vmax.f32 %v10387_v5, %v8307_v28  ;;  %v3742_v44 = vsel %vm3662_vm5, %v3739_v48, %v3741_v53  ;;  %v10388_v5 = vld [vmem:[#allocation51_spill] sm:$0xff] }
 0x258   : > { %v3740_v41 = vsel %vm3662_vm5, %v3738_v34, %v3739_v48  ;;  %v4266_v24 = vmax.f32 %v8159_v50, %v8312_v46  ;;  %v8337_v0 = vmax.f32 %v10381_v7, %v3742_v44  ;;  %v4363_v34 = vmax.f32 %v7327_v16, %v10388_v5 }
 0x259   : > { %v4630_v40 = vrot.slane %v4510_v2, 2  ;;  %v8330_v42 = vmax.f32 %v8289_v51, %v3740_v41  ;;  %v4267_v36 = vmax.f32 %v8163_v25, %v8319_v39  ;;  %v4268_v27 = vmax.f32 %v8150_v1, %v8323_v8 }
 0x25a   : > { %v8348_v48 = vmax.f32 %v7988_v23, %v8011_v32  ;;  %v8352_v25 = vmax.f32 %v7997_v3, %v8015_v58  ;;  %v8357_v53 = vmax.f32 %v8176_v31, %v8337_v0  ;;  %v4413_v23 = vmax.f32 %v4363_v34, %v8185_v30  ;;  %v10389_v32 = vld [vmem:[#allocation78_spill] sm:$0xff]  ;;  %v10390_v3 = vld [vmem:[#allocation80_spill] sm:$0xff] }
 0x25b   : > { %v4632_v2 = vsel %vm1627_vm2, %v4630_v40, %v4631_v57  ;;  %v8344_v50 = vmax.f32 %v8169_v62, %v8330_v42  ;;  %v4536_v1 = vpack.c.bf16 %v4267_v36, %v4266_v24  ;;  %v4537_v44 = vpack.c.bf16 %v4268_v27, %v4268_v27 }
 0x25c   : > { %4671 = vrot.lane.b32.xlu1 %v4632_v2, %s6120_s18  ;;  %v4412_v57 = vmax.f32 %v4362_v17, %v8155_v20  ;;  %v3154_v41 = vrot.slane %v10389_v32, 1  ;;  %v3157_v58 = vrot.slane %v10390_v3, 1  ;;  %v8369_v24 = vmax.f32 %v8019_v15, %v8357_v53 }
 0x25d   : > { %v8362_v62 = vmax.f32 %v8031_v38, %v8344_v50  ;;  %v4734_v40 = vrot.slane %v4536_v1, 1  ;;  %v4735_v5 = vrot.slane %v4537_v44, 1  ;;  %v3451_v31 = vrot.slane %v8289_v51, 1  ;;  %v10393_v38 = vld [vmem:[#allocation79_spill] sm:$0xff] }
 0x25e   : > { %10391 = vst [vmem:[#allocation69_spill] sm:$0xff] %v8369_v24  ;;  %v10394_v17 = vrot.slane %v10393_v38, 1  ;;  %v8383_v34 = vmax.f32 %v10390_v3, %v3157_v58  ;;  %v8388_v2 = vmax.f32 %v8352_v25, %v8369_v24 }
 0x25f   : > { %v8374_v20 = vmax.f32 %v8348_v48, %v8362_v62  ;;  %v4736_v15 = vsel %vm1909_vm3, %v4734_v40, %v4735_v5  ;;  %v3454_v40 = vrot.slane %v10384_v19, 1 }
 0x260   : > { %v3156_v30 = vsel %vm1909_vm3, %v3154_v41, %v10394_v17  ;;  %v10395_v36 = vmov %v10394_v17  ;;  %10396 = vst [vmem:[#allocation13_spill] sm:$0xff] %v8388_v2  ;;  %4778 = vrot.lane.b32.xlu0 %v4736_v15, %s6121_s19  ;;  %v8400_v3 = vmax.f32 %v8219_v45, %v8383_v34  ;;  %v4455_v5 = vmax.f32 %v4413_v23, %v8388_v2 }
 0x261   : > { %10392 = vst [vmem:[#allocation71_spill] sm:$0xff] %v8374_v20  ;;  %v3158_v27 = vsel %vm1909_vm3, %v10395_v36, %v3157_v58  ;;  %v8391_v1 = vmax.f32 %v10389_v32, %v3156_v30  ;;  %v4454_v41 = vmax.f32 %v4412_v57, %v8374_v20  ;;  %v3452_v58 = vrot.slane %v10381_v7, 1 }
 0x262   : > { %v8394_v44 = vmax.f32 %v10393_v38, %v3158_v27  ;;  %v10397_v57 = vrot.slane %v10393_v38, 4  ;;  %v10398_v36 = vrot.slane %v10389_v32, 4  ;;  %v8420_v27 = vmax.f32 %v8091_v11, %v8400_v3 }
 0x263   : > { %v8407_v17 = vmax.f32 %v8227_v49, %v8391_v1  ;;  %v3453_v23 = vsel %vm1909_vm3, %v3451_v31, %v3452_v58  ;;  %v3455_v15 = vsel %vm1909_vm3, %v3452_v58, %v3454_v40  ;;  %v8425_v49 = vmax.f32 %v10384_v19, %v3454_v40 }
 0x264   : > { %v8411_v30 = vmax.f32 %v8230_v22, %v8394_v44  ;;  %v2856_v45 = vsel %vm2756_vm4, %v10398_v36, %v10397_v57  ;;  %v4563_v16 = vpack.c.bf16 %v4455_v5, %v4454_v41  ;;  %v8436_v57 = vmax.f32 %v8289_v51, %v3453_v23  ;;  %v10403_v5 = vld [vmem:[#allocation33_spill] sm:$0xff] }
 0x265   : > { %v8429_v22 = vmax.f32 %v8083_v37, %v8407_v17  ;;  %v4049_v11 = vmax.f32 %v8253_v13, %v8420_v27  ;;  %v8441_v31 = vmax.f32 %v10381_v7, %v3455_v15  ;;  %v8445_v19 = vmax.f32 %v8259_v56, %v8425_v49  ;;  %v10399_v7 = vld [vmem:[#allocation81_spill] sm:$0xff] }
 0x266   : > { %v8433_v38 = vmax.f32 %v8087_v26, %v8411_v30  ;;  %v8448_v37 = vmax.f32 %v10389_v32, %v2856_v45  ;;  %4824 = vrot.lane.b32.xlu1 %v4563_v16, %s6122_s20  ;;  %v8457_v13 = vmax.f32 %v8249_v29, %v8436_v57  ;;  %v3744_v41 = vrot.slane %v10399_v7, 5  ;;  %v10402_v29 = vld [vmem:[#allocation82_spill] sm:$0xff] }
 0x267   : > { %v4047_v26 = vmax.f32 %v8268_v61, %v8429_v22  ;;  %v4513_v58 = vpack.c.bf16 %v4049_v11, %v4049_v11  ;;  %v8462_v56 = vmax.f32 %v8256_v52, %v8441_v31  ;;  %v8466_v16 = vmax.f32 %v8100_v54, %v8445_v19  ;;  %v10405_v54 = vld [vmem:[#allocation41_spill] sm:$0xff] }
 0x268   : > { %v4048_v51 = vmax.f32 %v8272_v21, %v8433_v38  ;;  %v3743_v61 = vrot.slane %v8448_v37, 5  ;;  %v8471_v21 = vmax.f32 %v8121_v9, %v8457_v13  ;;  %v3746_v40 = vrot.slane %v10402_v29, 5  ;;  %v10406_v9 = vld [vmem:[#allocation23_spill] sm:$0xff] }
 0x269   : > { %10400 = vst [vmem:[#allocation72_spill] sm:$0xff] %v8466_v16  ;;  %v4414_v36 = vmax.f32 %v10403_v5, %v8348_v48  ;;  %v4634_v45 = vrot.slane %v4513_v58, 2  ;;  %v8478_v52 = vmax.f32 %v8125_v10, %v8462_v56  ;;  %v8482_v23 = vmax.f32 %v10405_v54, %v8466_v16  ;;  %v10407_v58 = vld [vmem:[#allocation40_spill] sm:$0xff]  ;;  %v10415_v16 = vld [vmem:[#allocation35_spill] sm:$0xff] }
 0x26a   : > { %v4512_v32 = vpack.c.bf16 %v4048_v51, %v4047_v26  ;;  %10401 = vst [vmem:[#allocation18_spill] sm:$0xff] %v8471_v21  ;;  %v3745_v15 = vsel %vm3662_vm5, %v3743_v61, %v3744_v41  ;;  %v8487_v26 = vmax.f32 %v10406_v9, %v8471_v21  ;;  %v3747_v51 = vsel %vm3662_vm5, %v3744_v41, %v3746_v40  ;;  %v10408_v61 = vld [vmem:[#allocation34_spill] sm:$0xff] }
 0x26b   : > { %10404 = vst [vmem:[#allocation12_spill] sm:$0xff] %v8478_v52  ;;  %v8491_v48 = vmax.f32 %v8448_v37, %v3745_v15  ;;  %v8495_v10 = vmax.f32 %v10407_v58, %v8478_v52  ;;  %v4271_v5 = vmax.f32 %v8323_v8, %v8482_v23  ;;  %v8500_v54 = vmax.f32 %v10399_v7, %v3747_v51  ;;  %v10409_v15 = vld [vmem:[#allocation73_spill] sm:$0xff]  ;;  %v4964_v8 = vld [vmem:[%s9861_s5] sm:$0xf] }
 0x26c   : > { %v4633_v11 = vrot.slane %v4512_v32, 2  ;;  %v4415_v32 = vmax.f32 %v10408_v61, %v8352_v25  ;;  %v4269_v41 = vmax.f32 %v8312_v46, %v8487_v26  ;;  %v3159_v58 = vrot.slane %v10409_v15, 1  ;;  %5780 = vmatprep.subr.msk.bf16.mxu1 %vm2756_vm4, %v4964_v8  ;;  %v5831_v52 = vld [vmem:[%s8527_s30] sm:$0xff]  }
 0x26d   : > { %v8509_v40 = vmax.f32 %v8330_v42, %v8491_v48  ;;  %v4270_v25 = vmax.f32 %v8319_v39, %v8495_v10  ;;  %v8521_v46 = vmax.f32 %v8337_v0, %v8500_v54  ;;  %v10412_v39 = vld [vmem:[#allocation74_spill] sm:$0xff]  ;;  %v3456_v61 = vrot.slane %v8448_v37, 1  ;;  %5730 = vmatprep.mubr.msk.bf16.mxu1 %vm663_vm1, %v5831_v52 }
 0x26e   : > { %v4635_v9 = vsel %vm1627_vm2, %v4633_v11, %v4634_v45  ;;  %v4539_v45 = vpack.c.bf16 %v4271_v5, %v4271_v5  ;;  %v10410_v11 = vld [vmem:[#allocation75_spill] sm:$0xff]  ;;  %v10413_v5 = vrot.slane %v10412_v39, 1 }
 0x26f   : > { %4673 = vrot.lane.b32.xlu0 %v4635_v9, %s6120_s18  ;;  %v3162_v42 = vrot.slane %v10410_v11, 1  ;;  %v8532_v51 = vmax.f32 %v8181_v33, %v8509_v40  ;;  %v3457_v9 = vrot.slane %v10399_v7, 1  ;;  %v4538_v6 = vpack.c.bf16 %v4270_v25, %v4269_v41 }
 0x270   : > { %v3161_v0 = vsel %vm1909_vm3, %v3159_v58, %v10413_v5  ;;  %v4738_v20 = vrot.slane %v4539_v45, 1  ;;  %v8541_v2 = vmax.f32 %v8192_v43, %v8521_v46  ;;  %v10414_v8 = vmov %v10413_v5  ;;  %v5832_v43 = vld [vmem:[%s8527_s30 + $0x8] sm:$0xff]   ;;  %v10416_v45 = vld [vmem:[#allocation53_spill] sm:$0xff] }
 0x271   : > { %10411 = vst [vmem:[#allocation59_spill] sm:$0xff] %v8532_v51  ;;  %v3163_v33 = vsel %vm1909_vm3, %v10414_v8, %v3162_v42  ;;  %v8549_v21 = vmax.f32 %v10415_v16, %v8532_v51  ;;  %v8552_v58 = vmax.f32 %v10409_v15, %v3161_v0  ;;  %v8558_v41 = vmax.f32 %v10410_v11, %v3162_v42  ;;  %v5833_v0 = vld [vmem:[%s8527_s30 + $0x10] sm:$0xff]  }
 0x272   : > { %v8555_v5 = vmax.f32 %v10412_v39, %v3163_v33  ;;  %v4737_v25 = vrot.slane %v4538_v6, 1  ;;  %v8563_v24 = vmax.f32 %v10416_v45, %v8541_v2  ;;  %v3458_v8 = vsel %vm1909_vm3, %v3456_v61, %v3457_v9  ;;  %5731 = vmatmul.mubr.msk.bf16.vlgmr.msra.gmra.mrb[0].mxu1 %vm663_vm1, %v5832_v43 }
 0x273   : > { %v3459_v16 = vrot.slane %v10402_v29, 1  ;;  %v4456_v51 = vmax.f32 %v4414_v36, %v8549_v21  ;;  %v8572_v33 = vmax.f32 %v8391_v1, %v8552_v58  ;;  %v8580_v11 = vmax.f32 %v8383_v34, %v8558_v41  ;;  %5734 = vmatprep.mubr.msk.bf16.mxu1 %vm663_vm1, %v5833_v0  ;;  %v10423_v0 = vld [vmem:[#allocation77_spill] sm:$0xff] }
 0x274   : > { %10417 = vst [vmem:[#allocation61_spill] sm:$0xff] %v8563_v24  ;;  %v8576_v6 = vmax.f32 %v8394_v44, %v8555_v5  ;;  %v4739_v42 = vsel %vm1909_vm3, %v4737_v25, %v4738_v20  ;;  %v4457_v52 = vmax.f32 %v4415_v32, %v8563_v24  ;;  %v8587_v1 = vmax.f32 %v8448_v37, %v3458_v8  ;;  %v10421_v25 = vld [vmem:[#allocation76_spill] sm:$0xff]  ;;  %v10446_v24 = vld [vmem:[#allocation17_spill] sm:$0xff] }
 0x275   : > { %v3460_v36 = vsel %vm1909_vm3, %v3457_v9, %v3459_v16  ;;  %4780 = vrot.lane.b32.xlu1 %v4739_v42, %s6121_s19  ;;  %v8593_v34 = vmax.f32 %v8243_v35, %v8572_v33  ;;  %v8601_v20 = vmax.f32 %v8236_v4, %v8580_v11  ;;  %v8607_v61 = vmax.f32 %v10402_v29, %v3459_v16 }
 0x276   : > { %v8597_v44 = vmax.f32 %v8247_v59, %v8576_v6  ;;  %v8604_v37 = vmax.f32 %v10399_v7, %v3460_v36  ;;  %v4564_v32 = vpack.c.bf16 %v4457_v52, %v4456_v51  ;;  %v8611_v35 = vmax.f32 %v8436_v57, %v8587_v1  ;;  %v5834_v57 = vld [vmem:[%s8527_s30 + $0x18] sm:$0xff]  }
 0x277   : > { %v10418_v9 = vrot.slane %v10412_v39, 4  ;;  %v10419_v59 = vrot.slane %v10409_v15, 4  ;;  %v4050_v4 = vmax.f32 %v8429_v22, %v8593_v34  ;;  %v4052_v29 = vmax.f32 %v8420_v27, %v8601_v20  ;;  %v5835_v27 = vld [vmem:[%s8527_s30 + $0x20] sm:$0xff]   ;;  %v10425_v52 = vld [vmem:[#allocation89_spill] sm:$0xff] }
 0x278   : > { %v4051_v7 = vmax.f32 %v8433_v38, %v8597_v44  ;;  %v8626_v51 = vmax.f32 %v8441_v31, %v8604_v37  ;;  %4826 = vrot.lane.b32.xlu0 %v4564_v32, %s6122_s20  ;;  %v8632_v39 = vmax.f32 %v8425_v49, %v8607_v61  ;;  %v8636_v22 = vmax.f32 %v8276_v12, %v8611_v35 }
 0x279   : > { %v2862_v43 = vsel %vm2756_vm4, %v10419_v59, %v10418_v9  ;;  %v3749_v45 = vrot.slane %v10421_v25, 5  ;;  %v4515_v16 = vpack.c.bf16 %v4052_v29, %v4052_v29  ;;  %v3751_v42 = vrot.slane %v10423_v0, 5 }
 0x27a   : > { %10420 = vst [vmem:[#allocation50_spill] sm:$0xff] %v8636_v22  ;;  %v3061_v38 = vmax.f32 %v10409_v15, %v2862_v43  ;;  %v4514_v8 = vpack.c.bf16 %v4051_v7, %v4050_v4  ;;  %v8643_v31 = vmax.f32 %v8282_v63, %v8626_v51  ;;  %v8648_v49 = vmax.f32 %v8286_v55, %v8632_v39 }
 0x27b   : > { %v8652_v12 = vmax.f32 %v7959_v47, %v8636_v22  ;;  %v3164_v36 = vrot.slane %v10425_v52, 1  ;;  %v4637_v9 = vrot.slane %v4515_v16, 2  ;;  %v3752_v63 = vsel %vm3662_vm5, %v3749_v45, %v3751_v42  ;;  %5735 = vmatmul.mubr.msk.bf16.gmra.mrb[4].mxu1 %vm663_vm1, %v5834_v57 }
 0x27c   : > { %10422 = vst [vmem:[#allocation60_spill] sm:$0xff] %v8643_v31  ;;  %10424 = vst [vmem:[#allocation44_spill] sm:$0xff] %v8648_v49  ;;  %v3748_v15 = vrot.slane %v3061_v38, 5  ;;  %v4636_v32 = vrot.slane %v4514_v8, 2  ;;  %v8657_v59 = vmax.f32 %v7972_v60, %v8643_v31  ;;  %v8663_v55 = vmax.f32 %v7963_v18, %v8648_v49  ;;  %5738 = vmatprep.mubr.msk.bf16.mxu1 %vm663_vm1, %v5835_v27  ;;  %v10426_v18 = vld [vmem:[#allocation90_spill] sm:$0xff]  ;;  %v10428_v27 = vld [vmem:[#allocation91_spill] sm:$0xff] }
 0x27d   : > { %v4272_v47 = vmax.f32 %v8487_v26, %v8652_v12  ;;  %v8669_v4 = vmax.f32 %v10421_v25, %v3752_v63  ;;  %v10427_v57 = vrot.slane %v10426_v18, 1  ;;  %v3167_v16 = vrot.slane %v10428_v27, 1  ;;  %v10448_v49 = vld [vmem:[#allocation88_spill] sm:$0xff] }
 0x27e   : > { %v3750_v43 = vsel %vm3662_vm5, %v3748_v15, %v3749_v45  ;;  %v4638_v60 = vsel %vm1627_vm2, %v4636_v32, %v4637_v9  ;;  %v4273_v7 = vmax.f32 %v8495_v10, %v8657_v59  ;;  %v4274_v26 = vmax.f32 %v8482_v23, %v8663_v55  ;;  %v5836_v9 = vld [vmem:[%s8527_s30 + $0x28] sm:$0xff]  }
 0x27f   : > { %v8675_v29 = vmax.f32 %v3061_v38, %v3750_v43  ;;  %v3166_v8 = vsel %vm1909_vm3, %v3164_v36, %v10427_v57  ;;  %4675 = vrot.lane.b32.xlu1 %v4638_v60, %s6120_s18  ;;  %v8685_v45 = vmax.f32 %v8500_v54, %v8669_v4  ;;  %v3461_v36 = vrot.slane %v3061_v38, 1 }
 0x280   : > { %v8689_v42 = vmax.f32 %v10425_v52, %v3166_v8  ;;  %v4540_v10 = vpack.c.bf16 %v4273_v7, %v4272_v47  ;;  %v3462_v32 = vrot.slane %v10421_v25, 1  ;;  %v4541_v63 = vpack.c.bf16 %v4274_v26, %v4274_v26  ;;  %v10430_v8 = vld [vmem:[#allocation28_spill] sm:$0xff] }
 0x281   : > { %v8693_v15 = vmax.f32 %v8491_v48, %v8675_v29  ;;  %v8699_v23 = vmax.f32 %v8357_v53, %v8685_v45  ;;  %v10429_v54 = vmov %v10427_v57  ;;  %v8705_v60 = vmax.f32 %v10428_v27, %v3167_v16 }
 0x282   : > { %v3168_v43 = vsel %vm1909_vm3, %v10429_v54, %v3167_v16  ;;  %v4740_v47 = vrot.slane %v4540_v10, 1  ;;  %v8716_v57 = vmax.f32 %v8552_v58, %v8689_v42  ;;  %v4741_v53 = vrot.slane %v4541_v63, 1 }
 0x283   : > { %v8709_v48 = vmax.f32 %v8344_v50, %v8693_v15  ;;  %v8712_v7 = vmax.f32 %v10426_v18, %v3168_v43  ;;  %v8720_v26 = vmax.f32 %v10430_v8, %v8699_v23  ;;  %v8724_v27 = vmax.f32 %v8558_v41, %v8705_v60  ;;  %v10432_v50 = vld [vmem:[#allocation11_spill] sm:$0xff]  ;;  %5739 = vmatmul.mubr.msk.bf16.gmra.mrb[8].mxu1 %vm663_vm1, %v5836_v9 }
 0x284   : > { %v3463_v16 = vsel %vm1909_vm3, %v3461_v36, %v3462_v32  ;;  %v8737_v58 = vmax.f32 %v8407_v17, %v8716_v57  ;;  %v3464_v63 = vrot.slane %v10423_v0, 1  ;;  %v4742_v41 = vsel %vm1909_vm3, %v4740_v47, %v4741_v53  ;;  %v10433_v36 = vld [vmem:[#allocation42_spill] sm:$0xff] }
 0x285   : > { %10431 = vst [vmem:[#allocation43_spill] sm:$0xff] %v8720_v26  ;;  %v8729_v10 = vmax.f32 %v10432_v50, %v8709_v48  ;;  %v8733_v54 = vmax.f32 %v8555_v5, %v8712_v7  ;;  %v4459_v43 = vmax.f32 %v10433_v36, %v8720_v26  ;;  %v8746_v8 = vmax.f32 %v8400_v3, %v8724_v27  ;;  %v10434_v17 = vld [vmem:[#allocation54_spill] sm:$0xff]  ;;  %v10447_v26 = vld [vmem:[#allocation15_spill] sm:$0xff] }
 0x286   : > { %v8748_v50 = vmax.f32 %v3061_v38, %v3463_v16  ;;  %4782 = vrot.lane.b32.xlu0 %v4742_v41, %s6121_s19  ;;  %v4053_v9 = vmax.f32 %v8593_v34, %v8737_v58  ;;  %v3465_v47 = vsel %vm1909_vm3, %v3462_v32, %v3464_v63  ;;  %v8766_v53 = vmax.f32 %v10423_v0, %v3464_v63  ;;  %v10437_v36 = vld [vmem:[#allocation94_spill] sm:$0xff] }
 0x287   : > { %v4458_v5 = vmax.f32 %v10434_v17, %v8729_v10  ;;  %v8755_v31 = vmax.f32 %v8411_v30, %v8733_v54  ;;  %v4055_v3 = vmax.f32 %v8601_v20, %v8746_v8  ;;  %v8763_v38 = vmax.f32 %v10421_v25, %v3465_v47  ;;  %v10440_v47 = vld [vmem:[#allocation86_spill] sm:$0xff] }
 0x288   : > { %v8770_v16 = vmax.f32 %v8587_v1, %v8748_v50  ;;  %v10435_v34 = vrot.slane %v10426_v18, 4  ;;  %v10436_v32 = vrot.slane %v10425_v52, 4  ;;  %v3754_v25 = vrot.slane %v10437_v36, 5 }
 0x289   : > { %v4565_v30 = vpack.c.bf16 %v4459_v43, %v4458_v5  ;;  %v4054_v41 = vmax.f32 %v8597_v44, %v8755_v31  ;;  %v4517_v17 = vpack.c.bf16 %v4055_v3, %v4055_v3  ;;  %v8782_v0 = vmax.f32 %v8604_v37, %v8763_v38  ;;  %v10439_v43 = vld [vmem:[#allocation95_spill] sm:$0xff] }
 0x28a   : > { %v2868_v20 = vsel %vm2756_vm4, %v10436_v32, %v10435_v34  ;;  %v8786_v1 = vmax.f32 %v8607_v61, %v8766_v53  ;;  %v8790_v44 = vmax.f32 %v8457_v13, %v8770_v16  ;;  %v3756_v5 = vrot.slane %v10439_v43, 5  ;;  %v10443_v13 = vld [vmem:[#allocation20_spill] sm:$0xff] }
 0x28b   : > { %4828 = vrot.lane.b32.xlu1 %v4565_v30, %s6122_s20  ;;  %v4516_v18 = vpack.c.bf16 %v4054_v41, %v4053_v9  ;;  %v3064_v63 = vmax.f32 %v10425_v52, %v2868_v20  ;;  %v3169_v3 = vrot.slane %v10440_v47, 1  ;;  %v4640_v34 = vrot.slane %v4517_v17, 2  ;;  %v10444_v41 = vld [vmem:[#allocation87_spill] sm:$0xff] }
 0x28c   : > { %10438 = vst [vmem:[#allocation114_spill] sm:$0xff] %v8790_v44  ;;  %v8798_v37 = vmax.f32 %v8462_v56, %v8782_v0  ;;  %v8802_v61 = vmax.f32 %v8445_v19, %v8786_v1  ;;  %v8806_v32 = vmax.f32 %v10443_v13, %v8790_v44  ;;  %v3757_v52 = vsel %vm3662_vm5, %v3754_v25, %v3756_v5 }
 0x28d   : > { %v4639_v9 = vrot.slane %v4516_v18, 2  ;;  %v3753_v30 = vrot.slane %v3064_v63, 5  ;;  %v10445_v20 = vrot.slane %v10444_v41, 1  ;;  %v8823_v18 = vmax.f32 %v10437_v36, %v3757_v52 }
 0x28e   : > { %10441 = vst [vmem:[#allocation29_spill] sm:$0xff] %v8798_v37  ;;  %10442 = vst [vmem:[#allocation62_spill] sm:$0xff] %v8802_v61  ;;  %v8814_v56 = vmax.f32 %v10446_v24, %v8798_v37  ;;  %v8818_v19 = vmax.f32 %v10447_v26, %v8802_v61  ;;  %v4275_v13 = vmax.f32 %v8652_v12, %v8806_v32 }
 0x28f   : > { %v3171_v17 = vsel %vm1909_vm3, %v3169_v3, %v10445_v20  ;;  %v4641_v5 = vsel %vm1627_vm2, %v4639_v9, %v4640_v34  ;;  %v3755_v44 = vsel %vm3662_vm5, %v3753_v30, %v3754_v25  ;;  %v3172_v3 = vrot.slane %v10448_v49, 1 }
 0x290   : > { %v8829_v20 = vmax.f32 %v10440_v47, %v3171_v17  ;;  %4677 = vrot.lane.b32.xlu0 %v4641_v5, %s6120_s18  ;;  %v4276_v24 = vmax.f32 %v8657_v59, %v8814_v56  ;;  %v4277_v12 = vmax.f32 %v8663_v55, %v8818_v19  ;;  %v8836_v26 = vmax.f32 %v3064_v63, %v3755_v44 }
 0x291   : > { %v8840_v34 = vmax.f32 %v8669_v4, %v8823_v18  ;;  %v10449_v25 = vrot.slane %v10444_v41, 1  ;;  %v8846_v30 = vmax.f32 %v10448_v49, %v3172_v3  ;;  %v3466_v59 = vrot.slane %v3064_v63, 1 }
 0x292   : > { %v8850_v52 = vmax.f32 %v8689_v42, %v8829_v20  ;;  %v4542_v17 = vpack.c.bf16 %v4276_v24, %v4275_v13  ;;  %v4543_v55 = vpack.c.bf16 %v4277_v12, %v4277_v12  ;;  %v8854_v44 = vmax.f32 %v8675_v29, %v8836_v26 }
 0x293   : > { %v3173_v9 = vsel %vm1909_vm3, %v10449_v25, %v3172_v3  ;;  %v8858_v4 = vmax.f32 %v8521_v46, %v8840_v34  ;;  %v8865_v49 = vmax.f32 %v8705_v60, %v8846_v30  ;;  %v3467_v13 = vrot.slane %v10437_v36, 1  ;;  %v10450_v46 = vld [vmem:[#allocation46_spill] sm:$0xff] }
 0x294   : > { %v8861_v5 = vmax.f32 %v10444_v41, %v3173_v9  ;;  %v8869_v42 = vmax.f32 %v8572_v33, %v8850_v52  ;;  %v4743_v3 = vrot.slane %v4542_v17, 1  ;;  %v4744_v29 = vrot.slane %v4543_v55, 1  ;;  %v10452_v17 = vld [vmem:[#allocation39_spill] sm:$0xff] }
 0x295   : > { %v8874_v24 = vmax.f32 %v8509_v40, %v8854_v44  ;;  %v8878_v12 = vmax.f32 %v10450_v46, %v8858_v4  ;;  %v8886_v33 = vmax.f32 %v8580_v11, %v8865_v49  ;;  %v3468_v9 = vsel %vm1909_vm3, %v3466_v59, %v3467_v13  ;;  %v10454_v46 = vld [vmem:[#allocation30_spill] sm:$0xff] }
 0x296   : > { %v8882_v60 = vmax.f32 %v8712_v7, %v8861_v5  ;;  %v4056_v25 = vmax.f32 %v8737_v58, %v8869_v42  ;;  %v4745_v40 = vsel %vm1909_vm3, %v4743_v3, %v4744_v29  ;;  %v3469_v7 = vrot.slane %v10439_v43, 1 }
 0x297   : > { %10451 = vst [vmem:[#allocation37_spill] sm:$0xff] %v8878_v12  ;;  %v8894_v55 = vmax.f32 %v10452_v17, %v8874_v24  ;;  %v4461_v37 = vmax.f32 %v10454_v46, %v8878_v12  ;;  %4784 = vrot.lane.b32.xlu1 %v4745_v40, %s6121_s19  ;;  %v4058_v58 = vmax.f32 %v8746_v8, %v8886_v33  ;;  %v10455_v3 = vrot.slane %v10444_v41, 4  ;;  %v10457_v46 = vld [vmem:[#allocation25_spill] sm:$0xff] }
 0x298   : > { %v8902_v11 = vmax.f32 %v8576_v6, %v8882_v60  ;;  %v8906_v59 = vmax.f32 %v3064_v63, %v3468_v9  ;;  %v10456_v29 = vrot.slane %v10440_v47, 4  ;;  %v3470_v40 = vsel %vm1909_vm3, %v3467_v13, %v3469_v7 }
 0x299   : > { %10453 = vst [vmem:[#allocation26_spill] sm:$0xff] %v8894_v55  ;;  %v4460_v61 = vmax.f32 %v10457_v46, %v8894_v55  ;;  %v8917_v12 = vmax.f32 %v10439_v43, %v3469_v7  ;;  %v4519_v63 = vpack.c.bf16 %v4058_v58, %v4058_v58  ;;  %v8925_v41 = vmax.f32 %v10437_v36, %v3470_v40  ;;  %v10466_v55 = vld [vmem:[#allocation112_spill] sm:$0xff] }
 0x29a   : > { %v2874_v17 = vsel %vm2756_vm4, %v10456_v29, %v10455_v3  ;;  %v4057_v8 = vmax.f32 %v8755_v31, %v8902_v11  ;;  %v8929_v9 = vmax.f32 %v8748_v50, %v8906_v59 }
 0x29b   : > { %v8920_v6 = vmax.f32 %v10440_v47, %v2874_v17  ;;  %v4566_v3 = vpack.c.bf16 %v4461_v37, %v4460_v61  ;;  %v8933_v13 = vmax.f32 %v8766_v53, %v8917_v12  ;;  %v10458_v47 = vld [vmem:[#allocation92_spill] sm:$0xff]  ;;  %v4643_v17 = vrot.slane %v4519_v63, 2  ;;  %v10460_v37 = vld [vmem:[#allocation93_spill] sm:$0xff] }
 0x29c   : > { %v3759_v7 = vrot.slane %v10458_v47, 5  ;;  %v4518_v29 = vpack.c.bf16 %v4057_v8, %v4056_v25  ;;  %v8939_v31 = vmax.f32 %v8763_v38, %v8925_v41  ;;  %v8943_v36 = vmax.f32 %v8611_v35, %v8929_v9  ;;  %v10461_v25 = vld [vmem:[#allocation110_spill] sm:$0xff] }
 0x29d   : > { %v3758_v43 = vrot.slane %v8920_v6, 5  ;;  %4830 = vrot.lane.b32.xlu0 %v4566_v3, %s6122_s20  ;;  %v8948_v50 = vmax.f32 %v8632_v39, %v8933_v13  ;;  %v3761_v61 = vrot.slane %v10460_v37, 5  ;;  %v3174_v58 = vrot.slane %v10461_v25, 1  ;;  %v10463_v35 = vld [vmem:[#allocation70_spill] sm:$0xff]  ;;  %v10464_v3 = vld [vmem:[#allocation111_spill] sm:$0xff] }
 0x29e   : > { %10459 = vst [vmem:[#allocation63_spill] sm:$0xff] %v8943_v36  ;;  %v4642_v46 = vrot.slane %v4518_v29, 2  ;;  %v8955_v38 = vmax.f32 %v8626_v51, %v8939_v31  ;;  %v8959_v40 = vmax.f32 %v10463_v35, %v8943_v36  ;;  %v3177_v51 = vrot.slane %v10466_v55, 1  ;;  %v10503_v36 = vld [vmem:[#allocation108_spill] sm:$0xff] }
 0x29f   : > { %v3760_v53 = vsel %vm3662_vm5, %v3758_v43, %v3759_v7  ;;  %v8966_v39 = vmax.f32 %v8307_v28, %v8948_v50  ;;  %v3762_v63 = vsel %vm3662_vm5, %v3759_v7, %v3761_v61  ;;  %v10465_v43 = vrot.slane %v10464_v3, 1 }
 0x2a0   : > { %10462 = vst [vmem:[#allocation49_spill] sm:$0xff] %v8955_v38  ;;  %v8962_v8 = vmax.f32 %v8920_v6, %v3760_v53  ;;  %v4644_v22 = vsel %vm1627_vm2, %v4642_v46, %v4643_v17  ;;  %v8976_v35 = vmax.f32 %v8303_v14, %v8955_v38  ;;  %v4278_v53 = vmax.f32 %v8806_v32, %v8959_v40 }
 0x2a1   : > { %v3176_v29 = vsel %vm1909_vm3, %v3174_v58, %v10465_v43  ;;  %v8981_v28 = vmax.f32 %v10458_v47, %v3762_v63  ;;  %4679 = vrot.lane.b32.xlu1 %v4644_v22, %s6120_s18  ;;  %v4280_v7 = vmax.f32 %v8818_v19, %v8966_v39  ;;  %v10467_v17 = vmov %v10465_v43 }
 0x2a2   : > { %v8988_v61 = vmax.f32 %v8836_v26, %v8962_v8  ;;  %v3178_v14 = vsel %vm1909_vm3, %v10467_v17, %v3177_v51  ;;  %v8994_v58 = vmax.f32 %v10461_v25, %v3176_v29  ;;  %v4279_v32 = vmax.f32 %v8814_v56, %v8976_v35  ;;  %v10471_v17 = vld [vmem:[#allocation69_spill] sm:$0xff] }
 0x2a3   : > { %v9000_v22 = vmax.f32 %v8823_v18, %v8981_v28  ;;  %v9003_v19 = vmax.f32 %v10464_v3, %v3178_v14  ;;  %v9006_v26 = vmax.f32 %v10466_v55, %v3177_v51  ;;  %v4545_v46 = vpack.c.bf16 %v4280_v7, %v4280_v7 }
 0x2a4   : > { %v9010_v63 = vmax.f32 %v8693_v15, %v8988_v61  ;;  %v9014_v43 = vmax.f32 %v8829_v20, %v8994_v58  ;;  %v3471_v56 = vrot.slane %v8920_v6, 1  ;;  %v4544_v29 = vpack.c.bf16 %v4279_v32, %v4278_v53 }
 0x2a5   : > { %v9019_v18 = vmax.f32 %v8685_v45, %v9000_v22  ;;  %v9023_v55 = vmax.f32 %v8861_v5, %v9003_v19  ;;  %v9027_v51 = vmax.f32 %v8846_v30, %v9006_v26  ;;  %v4747_v15 = vrot.slane %v4545_v46, 1 }
 0x2a6   : > { %10468 = vst [vmem:[#allocation27_spill] sm:$0xff] %v9014_v43  ;;  %v9031_v20 = vmax.f32 %v8362_v62, %v9010_v63  ;;  %v9035_v53 = vmax.f32 %v8716_v57, %v9014_v43  ;;  %v3472_v45 = vrot.slane %v10458_v47, 1  ;;  %v4746_v7 = vrot.slane %v4544_v29, 1  ;;  %v10472_v62 = vld [vmem:[#allocation47_spill] sm:$0xff]  ;;  %v10473_v43 = vld [vmem:[#allocation68_spill] sm:$0xff] }
 0x2a7   : > { %10469 = vst [vmem:[#allocation22_spill] sm:$0xff] %v9023_v55  ;;  %10470 = vst [vmem:[#allocation51_spill] sm:$0xff] %v9027_v51  ;;  %v9040_v5 = vmax.f32 %v10471_v17, %v9019_v18  ;;  %v9044_v30 = vmax.f32 %v8733_v54, %v9023_v55  ;;  %v9048_v14 = vmax.f32 %v8724_v27, %v9027_v51  ;;  %v3474_v29 = vrot.slane %v10460_v37, 1 }
 0x2a8   : > { %v4462_v32 = vmax.f32 %v10472_v62, %v9031_v20  ;;  %v4059_v57 = vmax.f32 %v8869_v42, %v9035_v53  ;;  %v3473_v46 = vsel %vm1909_vm3, %v3471_v56, %v3472_v45  ;;  %v4748_v17 = vsel %vm1909_vm3, %v4746_v7, %v4747_v15 }
 0x2a9   : > { %v4463_v54 = vmax.f32 %v10473_v43, %v9040_v5  ;;  %v4060_v55 = vmax.f32 %v8902_v11, %v9044_v30  ;;  %v4061_v27 = vmax.f32 %v8886_v33, %v9048_v14  ;;  %4786 = vrot.lane.b32.xlu0 %v4748_v17, %s6121_s19  ;;  %v3475_v62 = vsel %vm1909_vm3, %v3472_v45, %v3474_v29  ;;  %v10480_v17 = vld [vmem:[#allocation99_spill] sm:$0xff] }
 0x2aa   : > { %v9066_v42 = vmax.f32 %v8920_v6, %v3473_v46  ;;  %v9069_v56 = vmax.f32 %v10460_v37, %v3474_v29  ;;  %v10474_v15 = vrot.slane %v10464_v3, 4  ;;  %v10475_v43 = vrot.slane %v10461_v25, 4  ;;  %v10476_v3 = vld [vmem:[#allocation36_spill] sm:$0xff] }
 0x2ab   : > { %v4567_v11 = vpack.c.bf16 %v4463_v54, %v4462_v32  ;;  %v4520_v51 = vpack.c.bf16 %v4060_v55, %v4059_v57  ;;  %v4521_v38 = vpack.c.bf16 %v4061_v27, %v4061_v27  ;;  %v9077_v33 = vmax.f32 %v10458_v47, %v3475_v62  ;;  %v10477_v57 = vld [vmem:[#allocation113_spill] sm:$0xff] }
 0x2ac   : > { %v2880_v7 = vsel %vm2756_vm4, %v10475_v43, %v10474_v15  ;;  %v9081_v45 = vmax.f32 %v8906_v59, %v9066_v42  ;;  %v9085_v6 = vmax.f32 %v8917_v12, %v9069_v56  ;;  %v3764_v46 = vrot.slane %v10476_v3, 5  ;;  %v10482_v27 = vld [vmem:[#allocation101_spill] sm:$0xff]  ;;  %v10484_v15 = vld [vmem:[#allocation72_spill] sm:$0xff] }
 0x2ad   : > { %v9088_v37 = vmax.f32 %v10461_v25, %v2880_v7  ;;  %4832 = vrot.lane.b32.xlu1 %v4567_v11, %s6122_s20  ;;  %v4645_v55 = vrot.slane %v4520_v51, 2  ;;  %v4646_v32 = vrot.slane %v4521_v38, 2  ;;  %v9094_v47 = vmax.f32 %v8925_v41, %v9077_v33 }
 0x2ae   : > { %v3766_v59 = vrot.slane %v10477_v57, 5  ;;  %v9099_v29 = vmax.f32 %v8770_v16, %v9081_v45  ;;  %v9103_v12 = vmax.f32 %v8786_v1, %v9085_v6  ;;  %v3179_v54 = vrot.slane %v10480_v17, 1  ;;  %v10483_v16 = vld [vmem:[#allocation18_spill] sm:$0xff] }
 0x2af   : > { %v3763_v25 = vrot.slane %v9088_v37, 5  ;;  %v4647_v38 = vsel %vm1627_vm2, %v4645_v55, %v4646_v32  ;;  %v9110_v41 = vmax.f32 %v8782_v0, %v9094_v47  ;;  %v3182_v62 = vrot.slane %v10482_v27, 1  ;;  %v10485_v0 = vld [vmem:[#allocation12_spill] sm:$0xff] }
 0x2b0   : > { %10478 = vst [vmem:[#allocation78_spill] sm:$0xff] %v9099_v29  ;;  %10479 = vst [vmem:[#allocation80_spill] sm:$0xff] %v9103_v12  ;;  %v3767_v51 = vsel %vm3662_vm5, %v3764_v46, %v3766_v59  ;;  %4681 = vrot.lane.b32.xlu0 %v4647_v38, %s6120_s18  ;;  %v9117_v1 = vmax.f32 %v10483_v16, %v9099_v29  ;;  %v9121_v43 = vmax.f32 %v10484_v15, %v9103_v12  ;;  %v10486_v59 = vld [vmem:[#allocation100_spill] sm:$0xff] }
 0x2b1   : > { %10481 = vst [vmem:[#allocation79_spill] sm:$0xff] %v9110_v41  ;;  %v3765_v7 = vsel %vm3662_vm5, %v3763_v25, %v3764_v46  ;;  %v9125_v11 = vmax.f32 %v10476_v3, %v3767_v51  ;;  %v9129_v55 = vmax.f32 %v10485_v0, %v9110_v41  ;;  %v10487_v38 = vrot.slane %v10486_v59, 1 }
 0x2b2   : > { %v3899_v32 = vmax.f32 %v9088_v37, %v3765_v7  ;;  %v4281_v46 = vmax.f32 %v8959_v40, %v9117_v1  ;;  %v4283_v25 = vmax.f32 %v8966_v39, %v9121_v43  ;;  %v9156_v40 = vmax.f32 %v10482_v27, %v3182_v62 }
 0x2b3   : > { %v3181_v16 = vsel %vm1909_vm3, %v3179_v54, %v10487_v38  ;;  %v10488_v29 = vmov %v10487_v38  ;;  %v9144_v51 = vmax.f32 %v8981_v28, %v9125_v11  ;;  %v4282_v54 = vmax.f32 %v8976_v35, %v9129_v55 }
 0x2b4   : > { %v3183_v15 = vsel %vm1909_vm3, %v10488_v29, %v3182_v62  ;;  %v9147_v7 = vmax.f32 %v10480_v17, %v3181_v16  ;;  %v4340_v0 = vmax.f32 %v8962_v8, %v3899_v32  ;;  %v4547_v38 = vpack.c.bf16 %v4283_v25, %v4283_v25 }
 0x2b5   : > { %v9153_v29 = vmax.f32 %v10486_v59, %v3183_v15  ;;  %v9160_v39 = vmax.f32 %v8840_v34, %v9144_v51  ;;  %v10490_v16 = vrot.slane %v10486_v59, 4  ;;  %v10491_v35 = vrot.slane %v10480_v17, 4 }
 0x2b6   : > { %v9164_v28 = vmax.f32 %v8994_v58, %v9147_v7  ;;  %v4546_v15 = vpack.c.bf16 %v4282_v54, %v4281_v46  ;;  %v9172_v12 = vmax.f32 %v8854_v44, %v4340_v0  ;;  %v9180_v34 = vmax.f32 %v9006_v26, %v9156_v40  ;;  %v10498_v54 = vld [vmem:[#allocation13_spill] sm:$0xff] }
 0x2b7   : > { %v2886_v8 = vsel %vm2756_vm4, %v10491_v35, %v10490_v16  ;;  %v9176_v27 = vmax.f32 %v9003_v19, %v9153_v29  ;;  %v4750_v58 = vrot.slane %v4547_v38, 1  ;;  %v9184_v62 = vmax.f32 %v8541_v2, %v9160_v39  ;;  %v10495_v19 = vld [vmem:[#allocation59_spill] sm:$0xff]  ;;  %v10499_v16 = vld [vmem:[#allocation102_spill] sm:$0xff] }
 0x2b8   : > { %10489 = vst [vmem:[#allocation81_spill] sm:$0xff] %v9164_v28  ;;  %10493 = vst [vmem:[#allocation33_spill] sm:$0xff] %v9180_v34  ;;  %v9188_v59 = vmax.f32 %v8850_v52, %v9164_v28  ;;  %v9191_v44 = vmax.f32 %v10480_v17, %v2886_v8  ;;  %v4749_v46 = vrot.slane %v4546_v15, 1  ;;  %v9195_v25 = vmax.f32 %v10495_v19, %v9172_v12  ;;  %v10500_v15 = vld [vmem:[#allocation71_spill] sm:$0xff] }
 0x2b9   : > { %10492 = vst [vmem:[#allocation82_spill] sm:$0xff] %v9176_v27  ;;  %v9199_v26 = vmax.f32 %v8882_v60, %v9176_v27  ;;  %v9203_v2 = vmax.f32 %v8865_v49, %v9180_v34  ;;  %v4465_v52 = vmax.f32 %v10498_v54, %v9184_v62  ;;  %v3769_v35 = vrot.slane %v10499_v16, 5  ;;  %v9218_v34 = vpop.permute.xlu0 %4657  ;;  %v10502_v54 = vld [vmem:[#allocation103_spill] sm:$0xff] }
 0x2ba   : > { %10494 = vst [vmem:[#allocation41_spill] sm:$0xff] %v9188_v59  ;;  %v4062_v17 = vmax.f32 %v9035_v53, %v9188_v59  ;;  %v3768_v38 = vrot.slane %v9191_v44, 5  ;;  %v4751_v8 = vsel %vm1909_vm3, %v4749_v46, %v4750_v58  ;;  %v4464_v60 = vmax.f32 %v10500_v15, %v9195_v25  ;;  %10501 = vst [vmem:[#allocation34_spill] sm:$0xff] %v9218_v34 }
 0x2bb   : > { %10496 = vst [vmem:[#allocation23_spill] sm:$0xff] %v9199_v26  ;;  %10497 = vst [vmem:[#allocation40_spill] sm:$0xff] %v9203_v2  ;;  %v4063_v19 = vmax.f32 %v9044_v30, %v9199_v26  ;;  %v4064_v49 = vmax.f32 %v9048_v14, %v9203_v2  ;;  %4788 = vrot.lane.b32.xlu1 %v4751_v8, %s6121_s19  ;;  %v3771_v27 = vrot.slane %v10502_v54, 5  ;;  %v3476_v28 = vrot.slane %v9088_v37, 1 }
 0x2bc   : > { %v3770_v53 = vsel %vm3662_vm5, %v3768_v38, %v3769_v35  ;;  %v3477_v58 = vrot.slane %v10476_v3, 1  ;;  %v4568_v46 = vpack.c.bf16 %v4465_v52, %v4464_v60  ;;  %v3479_v34 = vrot.slane %v10477_v57, 1 }
 0x2bd   : > { %v4522_v15 = vpack.c.bf16 %v4063_v19, %v4062_v17  ;;  %v4523_v41 = vpack.c.bf16 %v4064_v49, %v4064_v49  ;;  %v3901_v30 = vmax.f32 %v9191_v44, %v3770_v53  ;;  %v3772_v26 = vsel %vm3662_vm5, %v3769_v35, %v3771_v27  ;;  %v10504_v35 = vld [vmem:[#allocation109_spill] sm:$0xff] }
 0x2be   : > { %v3478_v14 = vsel %vm1909_vm3, %v3476_v28, %v3477_v58  ;;  %4834 = vrot.lane.b32.xlu0 %v4568_v46, %s6122_s20  ;;  %v3902_v59 = vmax.f32 %v10499_v16, %v3772_v26  ;;  %v3480_v60 = vsel %vm1909_vm3, %v3477_v58, %v3479_v34  ;;  %v9238_v28 = vmax.f32 %v10477_v57, %v3479_v34  ;;  %v9245_v26 = vpop.permute.xlu0 %4659  ;;  %v10507_v58 = vld [vmem:[#allocation44_spill] sm:$0xff] }
 0x2bf   : > { %v4648_v38 = vrot.slane %v4522_v15, 2  ;;  %v4649_v2 = vrot.slane %v4523_v41, 2  ;;  %v4344_v52 = vmax.f32 %v3901_v30, %v10503_v36  ;;  %v4342_v17 = vmax.f32 %v3899_v32, %v3901_v30  ;;  %10505 = vst [vmem:[#allocation73_spill] sm:$0xff] %v9245_v26  ;;  %v10509_v15 = vld [vmem:[#allocation61_spill] sm:$0xff] }
 0x2c0   : > { %v9235_v19 = vmax.f32 %v9088_v37, %v3478_v14  ;;  %v4345_v49 = vmax.f32 %v3902_v59, %v10504_v35  ;;  %v4343_v41 = vmax.f32 %v9125_v11, %v3902_v59  ;;  %v9250_v37 = vmax.f32 %v10476_v3, %v3480_v60  ;;  %v9320_v14 = vpop.permute.xlu1 %4663 }
 0x2c1   : > { %v4650_v27 = vsel %vm1627_vm2, %v4648_v38, %v4649_v2  ;;  %v9242_v53 = vmax.f32 %v4340_v0, %v4344_v52  ;;  %v4392_v32 = vmax.f32 %v8988_v61, %v4342_v17  ;;  %v9258_v34 = vmax.f32 %v9069_v56, %v9238_v28  ;;  %v10506_v2 = vld [vmem:[#allocation50_spill] sm:$0xff]  ;;  %10510 = vst [vmem:[#allocation75_spill] sm:$0xff] %v9320_v14 }
 0x2c2   : > { %4683 = vrot.lane.b32.xlu1 %v4650_v27, %s6120_s18  ;;  %v9254_v57 = vmax.f32 %v9066_v42, %v9235_v19  ;;  %v9261_v0 = vmax.f32 %v9144_v51, %v4345_v49  ;;  %v4393_v61 = vmax.f32 %v9000_v22, %v4343_v41  ;;  %v9269_v3 = vmax.f32 %v4342_v17, %v10503_v36  ;;  %v9322_v38 = vpop.permute.xlu0 %4661  ;;  %v10512_v17 = vld [vmem:[#allocation60_spill] sm:$0xff] }
 0x2c3   : > { %v9265_v11 = vmax.f32 %v8874_v24, %v9242_v53  ;;  %v9272_v59 = vmax.f32 %v8709_v48, %v4392_v32  ;;  %v9276_v42 = vmax.f32 %v9077_v33, %v9250_v37  ;;  %v9284_v24 = vmax.f32 %v8933_v13, %v9258_v34  ;;  %10511 = vst [vmem:[#allocation74_spill] sm:$0xff] %v9322_v38 }
 0x2c4   : > { %v9280_v56 = vmax.f32 %v8929_v9, %v9254_v57  ;;  %v9288_v22 = vmax.f32 %v8858_v4, %v9261_v0  ;;  %v9293_v51 = vmax.f32 %v8699_v23, %v4393_v61  ;;  %v9296_v33 = vmax.f32 %v4343_v41, %v10504_v35  ;;  %v10508_v23 = vld [vmem:[#allocation43_spill] sm:$0xff] }
 0x2c5   : > { %v4468_v48 = vmax.f32 %v8729_v10, %v9265_v11  ;;  %v4466_v9 = vmax.f32 %v8549_v21, %v9272_v59  ;;  %v9302_v13 = vmax.f32 %v8939_v31, %v9276_v42  ;;  %v9310_v10 = vmax.f32 %v10507_v58, %v9284_v24 }
 0x2c6   : > { %v9306_v4 = vmax.f32 %v10506_v2, %v9280_v56  ;;  %v4469_v46 = vmax.f32 %v10508_v23, %v9288_v22  ;;  %v4467_v30 = vmax.f32 %v10509_v15, %v9293_v51  ;;  %v4438_v21 = vmax.f32 %v9010_v63, %v9269_v3  ;;  %v10513_v23 = vld [vmem:[#allocation26_spill] sm:$0xff]  ;;  %v10514_v15 = vld [vmem:[#allocation37_spill] sm:$0xff] }
 0x2c7   : > { %v4439_v31 = vmax.f32 %v9019_v18, %v9296_v33  ;;  %v9326_v60 = vmax.f32 %v10512_v17, %v9302_v13  ;;  %v4286_v41 = vmax.f32 %v9121_v43, %v9310_v10  ;;  %v4398_v2 = vmax.f32 %v4344_v52, %v10503_v36 }
 0x2c8   : > { %v4284_v27 = vmax.f32 %v9117_v1, %v9306_v4  ;;  %v4570_v63 = vpack.c.bf16 %v4469_v46, %v4468_v48  ;;  %v4569_v58 = vpack.c.bf16 %v4467_v30, %v4466_v9  ;;  %v4470_v18 = vmax.f32 %v10513_v23, %v4438_v21  ;;  %v9344_v9 = vpop.permute.xlu1 %4770  ;;  %v9346_v46 = vpop.permute.xlu0 %4665 }
 0x2c9   : > { %v4471_v8 = vmax.f32 %v10514_v15, %v4439_v31  ;;  %v4285_v14 = vmax.f32 %v9129_v55, %v9326_v60  ;;  %v4549_v38 = vpack.c.bf16 %v4286_v41, %v4286_v41  ;;  %v4399_v17 = vmax.f32 %v4345_v49, %v10504_v35  ;;  %10515 = vst [vmem:[#allocation35_spill] sm:$0xff] %v9346_v46 }
 0x2ca   : > { %v4440_v26 = vmax.f32 %v9172_v12, %v4398_v2  ;;  %4838 = vrot.lane.b32.xlu0 %v4570_v63, %s6122_s20  ;;  %4836 = vrot.lane.b32.xlu1 %v4569_v58, %s6122_s20  ;;  %v3482_v43 = vrot.slane %v10499_v16, 1  ;;  %v3484_v52 = vrot.slane %v10502_v54, 1  ;;  %v4442_v48 = vmax.f32 %v4392_v32, %v10503_v36  ;;  %v10518_v58 = vld [vmem:[#allocation106_spill] sm:$0xff] }
 0x2cb   : > { %v4571_v1 = vpack.c.bf16 %v4471_v8, %v4470_v18  ;;  %v4548_v55 = vpack.c.bf16 %v4285_v14, %v4284_v27  ;;  %v4753_v30 = vrot.slane %v4549_v38, 1  ;;  %v4441_v49 = vmax.f32 %v9160_v39, %v4399_v17  ;;  %v10517_v39 = vld [vmem:[#allocation105_spill] sm:$0xff] }
 0x2cc   : > { %v4472_v12 = vmax.f32 %v9031_v20, %v4440_v26  ;;  %v10516_v21 = vrot.slane %v9191_v44, 1  ;;  %v3485_v31 = vsel %vm1909_vm3, %v3482_v43, %v3484_v52  ;;  %v3637_v41 = vmax.f32 %v10502_v54, %v3484_v52  ;;  %v9388_v15 = vpop.permute.xlu1 %4772  ;;  %v10521_v52 = vld [vmem:[#allocation62_spill] sm:$0xff] }
 0x2cd   : > { %v4443_v32 = vmax.f32 %v4393_v61, %v10504_v35  ;;  %v4752_v2 = vrot.slane %v4548_v55, 1  ;;  %v4473_v63 = vmax.f32 %v9040_v5, %v4441_v49  ;;  %v3636_v38 = vmax.f32 %v10499_v16, %v3485_v31  ;;  %v10523_v49 = vld [vmem:[#allocation29_spill] sm:$0xff] }
 0x2ce   : > { %v3483_v8 = vsel %vm1909_vm3, %v10516_v21, %v3482_v43  ;;  %4840 = vrot.lane.b32.xlu1 %v4571_v1, %s6122_s20  ;;  %v9361_v20 = vmax.f32 %v9238_v28, %v3637_v41  ;;  %v9364_v26 = vmax.f32 %v3637_v41, %v10517_v39  ;;  %v9367_v27 = vmax.f32 %v9195_v25, %v4442_v48  ;;  %v10519_v25 = vld [vmem:[#allocation107_spill] sm:$0xff]  ;;  %v10520_v1 = vld [vmem:[#allocation96_spill] sm:$0xff]  ;;  %v10524_v21 = vld [vmem:[#allocation97_spill] sm:$0xff] }
 0x2cf   : > { %v3635_v14 = vmax.f32 %v9191_v44, %v3483_v8  ;;  %v9370_v54 = vmax.f32 %v9184_v62, %v4443_v32  ;;  %v4754_v5 = vsel %vm1909_vm3, %v4752_v2, %v4753_v30  ;;  %v4572_v61 = vpack.c.bf16 %v4473_v63, %v4472_v12  ;;  %v10525_v8 = vld [vmem:[#allocation98_spill] sm:$0xff]  ;;  %v10526_v41 = vld [vmem:[#allocation63_spill] sm:$0xff]  ;;  %v10527_v32 = vld [vmem:[#allocation49_spill] sm:$0xff] }
 0x2d0   : > { %v4126_v16 = vmax.f32 %v9250_v37, %v3636_v38  ;;  %4790 = vrot.lane.b32.xlu0 %v4754_v5, %s6121_s19  ;;  %v9378_v28 = vmax.f32 %v9085_v6, %v9361_v20  ;;  %v9384_v18 = vmax.f32 %v3636_v38, %v10519_v25  ;;  %v4193_v62 = vmax.f32 %v9258_v34, %v9364_v26  ;;  %v10528_v38 = vld [vmem:[#allocation27_spill] sm:$0xff] }
 0x2d1   : > { %v4125_v44 = vmax.f32 %v9235_v19, %v3635_v14  ;;  %v9381_v23 = vmax.f32 %v3635_v14, %v10518_v58  ;;  %v9390_v19 = vpop.permute.xlu0 %4818  ;;  %v3966_v43 = vmax.f32 %v9147_v7, %v10520_v1  ;;  %v3967_v7 = vmax.f32 %v9153_v29, %v10524_v21 }
 0x2d2   : > { %v9396_v17 = vmax.f32 %v9094_v47, %v4126_v16  ;;  %v4241_v48 = vmax.f32 %v10521_v52, %v9378_v28  ;;  %v4192_v55 = vmax.f32 %v9276_v42, %v9384_v18  ;;  %v10522_v47 = vld [vmem:[#allocation114_spill] sm:$0xff]  ;;  %v3968_v31 = vmax.f32 %v9156_v40, %v10525_v8 }
 0x2d3   : > { %v9393_v37 = vmax.f32 %v9081_v45, %v4125_v44  ;;  %v4191_v34 = vmax.f32 %v9254_v57, %v9381_v23  ;;  %v4244_v45 = vmax.f32 %v8948_v50, %v4193_v62  ;;  %v4017_v5 = vmax.f32 %v10528_v38, %v3966_v43  ;;  %v10529_v62 = vld [vmem:[#allocation22_spill] sm:$0xff] }
 0x2d4   : > { %v4240_v12 = vmax.f32 %v10523_v49, %v9396_v17  ;;  %4842 = vrot.lane.b32.xlu0 %v4572_v61, %s6122_s20  ;;  %v4289_v57 = vmax.f32 %v9310_v10, %v4241_v48  ;;  %v4243_v50 = vmax.f32 %v10527_v32, %v4192_v55  ;;  %v4018_v29 = vmax.f32 %v10529_v62, %v3967_v7  ;;  %v9425_v61 = vpop.permute.xlu1 %4667 }
 0x2d5   : > { %v4239_v30 = vmax.f32 %v10522_v47, %v9393_v37  ;;  %v4242_v42 = vmax.f32 %v10526_v41, %v4191_v34  ;;  %v4292_v2 = vmax.f32 %v4241_v48, %v4244_v45  ;;  %v9427_v10 = vpop.permute.xlu0 %4774  ;;  %v10530_v41 = vld [vmem:[#allocation51_spill] sm:$0xff]  ;;  %v10531_v48 = vld [vmem:[#allocation41_spill] sm:$0xff]  ;;  %v4194_v7 = vmax.f32 %v4125_v44, %v10518_v58 }
 0x2d6   : > { %v4288_v14 = vmax.f32 %v9326_v60, %v4240_v12  ;;  %v4551_v52 = vpack.c.bf16 %v4289_v57, %v4289_v57  ;;  %v4291_v40 = vmax.f32 %v4240_v12, %v4243_v50  ;;  %v4019_v55 = vmax.f32 %v10530_v41, %v3968_v31  ;;  %v10534_v31 = vld [vmem:[#allocation78_spill] sm:$0xff]  ;;  %v10535_v44 = vld [vmem:[#allocation79_spill] sm:$0xff] }
 0x2d7   : > { %v4287_v63 = vmax.f32 %v9306_v4, %v4239_v30  ;;  %v4290_v47 = vmax.f32 %v4239_v30, %v4242_v42  ;;  %v4553_v49 = vpack.c.bf16 %v4292_v2, %v4292_v2  ;;  %v4065_v32 = vmax.f32 %v10531_v48, %v4017_v5  ;;  %v10532_v4 = vld [vmem:[#allocation23_spill] sm:$0xff]  ;;  %v10533_v30 = vld [vmem:[#allocation40_spill] sm:$0xff] }
 0x2d8   : > { %v4066_v6 = vmax.f32 %v10532_v4, %v4018_v29  ;;  %v4756_v60 = vrot.slane %v4551_v52, 1  ;;  %v4067_v12 = vmax.f32 %v10533_v30, %v4019_v55  ;;  %v4195_v38 = vmax.f32 %v4126_v16, %v10519_v25  ;;  %v10536_v16 = vld [vmem:[#allocation80_spill] sm:$0xff]  ;;  %v9447_v48 = vpop.permute.xlu1 %4820 }
 0x2d9   : > { %v4550_v34 = vpack.c.bf16 %v4288_v14, %v4287_v63  ;;  %v4552_v46 = vpack.c.bf16 %v4291_v40, %v4290_v47  ;;  %v4759_v43 = vrot.slane %v4553_v49, 1  ;;  %v4196_v63 = vmax.f32 %v9361_v20, %v10517_v39 }
 0x2da   : > { %v4524_v2 = vpack.c.bf16 %v4066_v6, %v4065_v32  ;;  %v4245_v14 = vmax.f32 %v10534_v31, %v4194_v7  ;;  %v4197_v41 = vmax.f32 %v9381_v23, %v10518_v58  ;;  %v4525_v47 = vpack.c.bf16 %v4067_v12, %v4067_v12  ;;  %v9449_v32 = vpop.permute.xlu0 %4669 }
 0x2db   : > { %v4755_v57 = vrot.slane %v4550_v34, 1  ;;  %v4758_v62 = vrot.slane %v4552_v46, 1  ;;  %v4246_v49 = vmax.f32 %v10535_v44, %v4195_v38  ;;  %v4247_v46 = vmax.f32 %v10536_v16, %v4196_v63 }
 0x2dc   : > { %v4651_v40 = vrot.slane %v4524_v2, 2  ;;  %v4293_v34 = vmax.f32 %v4242_v42, %v4245_v14  ;;  %v4198_v20 = vmax.f32 %v9384_v18, %v10519_v25  ;;  %v4652_v23 = vrot.slane %v4525_v47, 2  ;;  %v10537_v42 = vld [vmem:[#allocation81_spill] sm:$0xff]  ;;  %v10538_v18 = vld [vmem:[#allocation82_spill] sm:$0xff] }
 0x2dd   : > { %v4757_v52 = vsel %vm1909_vm3, %v4755_v57, %v4756_v60  ;;  %v4760_v6 = vsel %vm1909_vm3, %v4758_v62, %v4759_v43  ;;  %v4294_v4 = vmax.f32 %v4243_v50, %v4246_v49  ;;  %v4199_v60 = vmax.f32 %v9364_v26, %v10517_v39 }
 0x2de   : > { %4792 = vrot.lane.b32.xlu1 %v4757_v52, %s6121_s19  ;;  %4794 = vrot.lane.b32.xlu0 %v4760_v6, %s6121_s19  ;;  %v4248_v7 = vmax.f32 %v9280_v56, %v4197_v41  ;;  %v4295_v43 = vmax.f32 %v4244_v45, %v4247_v46  ;;  %v4249_v57 = vmax.f32 %v9302_v13, %v4198_v20  ;;  %v10540_v13 = vld [vmem:[#allocation33_spill] sm:$0xff] }
 0x2df   : > { %v4020_v30 = vmax.f32 %v10537_v42, %v10520_v1  ;;  %v4021_v12 = vmax.f32 %v10538_v18, %v10524_v21  ;;  %v4653_v2 = vsel %vm1627_vm2, %v4651_v40, %v4652_v23  ;;  %v4554_v38 = vpack.c.bf16 %v4294_v4, %v4293_v34  ;;  %v4823_v40 = vpop.permute.xlu0 %4822  ;;  %v10543_v42 = vld [vmem:[#allocation3_spill] sm:$0xff] }
 0x2e0   : > { %v4250_v62 = vmax.f32 %v9284_v24, %v4199_v60  ;;  %v4296_v50 = vmax.f32 %v4245_v14, %v4248_v7  ;;  %v10539_v26 = vpack.c.bf16 %v9370_v54, %v9367_v27  ;;  %v4555_v56 = vpack.c.bf16 %v4295_v43, %v4295_v43  ;;  %v9473_v54 = vpop.permute.xlu1 %4776  ;;  %v10541_v43 = vld [vmem:[#allocation34_spill] sm:$0xff] }
 0x2e1   : > { %v4297_v45 = vmax.f32 %v4246_v49, %v4249_v57  ;;  %v4022_v63 = vmax.f32 %v10540_v13, %v10525_v8  ;;  %v4068_v1 = vmax.f32 %v4017_v5, %v4020_v30  ;;  %v4761_v21 = vrot.slane %v4554_v38, 1  ;;  %v10546_v38 = vld [vmem:[#allocation4_spill] sm:$0xff]  ;;  %v10550_v13 = vld [vmem:[#allocation14_spill] sm:$0xff] }
 0x2e2   : > { %4844 = vrot.lane.b32.xlu1 %v10539_v26, %s6122_s20  ;;  %4685 = vrot.lane.b32.xlu0 %v4653_v2, %s6120_s18  ;;  %v4298_v31 = vmax.f32 %v4247_v46, %v4250_v62  ;;  %v4069_v41 = vmax.f32 %v4018_v29, %v4021_v12  ;;  %v4444_v24 = vmax.f32 %v9242_v53, %v10503_v36  ;;  %v4762_v14 = vrot.slane %v4555_v56, 1  ;;  %v10545_v2 = vld [vmem:[#allocation73_spill] sm:$0xff] }
 0x2e3   : > { %v4556_v52 = vpack.c.bf16 %v4297_v45, %v4296_v50  ;;  %v4070_v47 = vmax.f32 %v4019_v55, %v4022_v63  ;;  %v4445_v27 = vmax.f32 %v9261_v0, %v10504_v35  ;;  %v4251_v49 = vmax.f32 %v9393_v37, %v10518_v58  ;;  %v10549_v45 = vld [vmem:[#allocation74_spill] sm:$0xff]  ;;  %v10551_v63 = vld [vmem:[#allocation7_spill] sm:$0xff] }
 0x2e4   : > { %v4557_v44 = vpack.c.bf16 %v4298_v31, %v4298_v31  ;;  %v4526_v8 = vpack.c.bf16 %v4069_v41, %v4068_v1  ;;  %v4476_v5 = vmax.f32 %v9272_v59, %v4444_v24  ;;  %v4763_v29 = vsel %vm1909_vm3, %v4761_v21, %v4762_v14  ;;  %v6094_v31 = vld [vmem:[%s9861_s5] sm:$0xf] }
 0x2e5   : > { %v4764_v6 = vrot.slane %v4556_v52, 1  ;;  %v4527_v53 = vpack.c.bf16 %v4070_v47, %v4070_v47  ;;  %v4477_v16 = vmax.f32 %v9293_v51, %v4445_v27  ;;  %v4252_v46 = vmax.f32 %v9396_v17, %v10519_v25  ;;  %v10553_v47 = vld [vmem:[#allocation75_spill] sm:$0xff]  ;;  %v10554_v27 = vld [vmem:[#allocation10_spill] sm:$0xff] }
 0x2e6   : > { %4796 = vrot.lane.b32.xlu1 %v4763_v29, %s6121_s19  ;;  %v4765_v55 = vrot.slane %v4557_v44, 1  ;;  %v4654_v0 = vrot.slane %v4526_v8, 2  ;;  %v4253_v34 = vmax.f32 %v9378_v28, %v10517_v39  ;;  %v4299_v23 = vmax.f32 %v4248_v7, %v4251_v49  ;;  %v4672_v39 = vpop.permute.xlu1 %4671  ;;  %v4779_v28 = vpop.permute.xlu0 %4778  ;;  %v10555_v44 = vld [vmem:[#allocation6_spill] sm:$0xff]  ;;  %v10557_v29 = vld [vmem:[#allocation35_spill] sm:$0xff] }
 0x2e7   : > { %v4655_v59 = vrot.slane %v4527_v53, 2  ;;  %v4574_v20 = vpack.c.bf16 %v4477_v16, %v4476_v5  ;;  %v4446_v58 = vmax.f32 %v9269_v3, %v10503_v36  ;;  %v4300_v4 = vmax.f32 %v4249_v57, %v4252_v46  ;;  %v10542_v57 = vld [vmem:[#allocation5_spill] sm:$0xff] }
 0x2e8   : > { %v4766_v37 = vsel %vm1909_vm3, %v4764_v6, %v4765_v55  ;;  %v4301_v51 = vmax.f32 %v4250_v62, %v4253_v34  ;;  %v4447_v60 = vmax.f32 %v9296_v33, %v10504_v35  ;;  %v10544_v35 = vpack.c.bf16 %v10542_v57, %v10543_v42  ;;  %v10547_v62 = vld [vmem:[#allocation2_spill] sm:$0xff]  ;;  %v10559_v6 = vld [vmem:[#allocation19_spill] sm:$0xff] }
 0x2e9   : > { %4798 = vrot.lane.b32.xlu0 %v4766_v37, %s6121_s19  ;;  %v4656_v25 = vsel %vm1627_vm2, %v4654_v0, %v4655_v59  ;;  %v4478_v17 = vmax.f32 %v9265_v11, %v4446_v58  ;;  %v4558_v7 = vpack.c.bf16 %v4300_v4, %v4299_v23  ;;  %v10548_v50 = vpack.c.bf16 %v10546_v38, %v10547_v62  ;;  %v10561_v59 = vld [vmem:[#allocation21_spill] sm:$0xff]  ;;  %v10567_v42 = vld [vmem:[#allocation38_spill] sm:$0xff]  ;;  %v10570_v38 = vld [vmem:[#allocation56_spill] sm:$0xff] }
 0x2ea   : > { %4687 = vrot.lane.b32.xlu1 %v4656_v25, %s6120_s18  ;;  %v4559_v36 = vpack.c.bf16 %v4301_v51, %v4301_v51  ;;  %v4479_v3 = vmax.f32 %v9288_v22, %v4447_v60  ;;  %v4853_v33 = vsel %vm4850_vm6, %v10544_v35, %v10541_v43  ;;  %v10552_v1 = vpack.c.bf16 %v10550_v13, %v10551_v63  ;;  %v4825_v14 = vpop.permute.xlu1 %4824  ;;  %v4674_v52 = vpop.permute.xlu0 %4673  ;;  %v10564_v25 = vld [vmem:[#allocation45_spill] sm:$0xff]  ;;  %v10568_v35 = vld [vmem:[#allocation31_spill] sm:$0xff]  ;;  %v10571_v62 = vld [vmem:[#allocation52_spill] sm:$0xff] }
 0x2eb   : > { %v4767_v30 = vrot.slane %v4558_v7, 1  ;;  %v4900_v11 = vsel %vm663_vm1, %v4853_v33, %v9344_v9  ;;  %v4856_v22 = vsel %vm4850_vm6, %v10548_v50, %v10545_v2  ;;  %v10556_v8 = vpack.c.bf16 %v10554_v27, %v10555_v44  ;;  %v10573_v63 = vld [vmem:[#allocation55_spill] sm:$0xff] }
 0x2ec   : > { %v4768_v18 = vrot.slane %v4559_v36, 1  ;;  %v4575_v12 = vpack.c.bf16 %v4479_v3, %v4478_v17  ;;  %v4933_v26 = vsel %vm4931_vm7, %v4900_v11, %v9390_v19  ;;  %v4859_v9 = vsel %vm4850_vm6, %v10552_v1, %v10549_v45  ;;  %v10565_v17 = vld [vmem:[#allocation32_spill] sm:$0xff] }
 0x2ed   : > { %4846 = vrot.lane.b32.xlu0 %v4574_v20, %s6122_s20  ;;  %v4902_v21 = vsel %vm663_vm1, %v4856_v22, %v9388_v15  ;;  %5744 = vmatprep.mubr.msk.bf16.mxu1 %vm4972_vm8, %v4933_v26  ;;  %v5006_v19 = vsel %vm2756_vm4, %v6094_v31, 0  ;;  %v4904_v41 = vsel %vm663_vm1, %v4859_v9, %v9427_v10  ;;  %v4862_v10 = vsel %vm4850_vm6, %v10556_v8, %v10553_v47  ;;  %v10562_v20 = vld [vmem:[#allocation16_spill] sm:$0xff] }
 0x2ee   : > { %v4769_v56 = vsel %vm1909_vm3, %v4767_v30, %v4768_v18  ;;  %5743 = vmatpush3.bf16.msra.mxu1 %v5006_v19  ;;  %v4935_v24 = vsel %vm4931_vm7, %v4902_v21, %v9447_v48  ;;  %v4937_v15 = vsel %vm4931_vm7, %v4904_v41, %v4823_v40  ;;  %v4781_v5 = vpop.permute.xlu1 %4780  ;;  %v4827_v49 = vpop.permute.xlu0 %4826  ;;  %v10558_v48 = vld [vmem:[#allocation24_spill] sm:$0xff]  ;;  %v4906_v16 = vsel %vm663_vm1, %v4862_v10, %v9473_v54 }
 0x2ef   : > { %4800 = vrot.lane.b32.xlu1 %v4769_v56, %s6121_s19  ;;  %v10560_v53 = vpack.c.bf16 %v10558_v48, %v10559_v6  ;;  %v4939_v0 = vsel %vm4931_vm7, %v4906_v16, %v4825_v14  ;;  %v10563_v23 = vpack.c.bf16 %v10561_v59, %v10562_v20  ;;  %v10569_v33 = vpack.c.bf16 %v10567_v42, %v10568_v35  ;;  %v10574_v1 = vld [vmem:[#allocation48_spill] sm:$0xff]  ;;  %v10576_v14 = vld [vmem:[#allocation65_spill] sm:$0xff] }
 0x2f0   : > { %v10572_v50 = vpack.c.bf16 %v10570_v38, %v10571_v62  ;;  %v10575_v9 = vpack.c.bf16 %v10573_v63, %v10574_v1  ;;  %v10579_v6 = vld [vmem:[#allocation64_spill] sm:$0xff] }
 0x2f1   : > { %5745 = vmatmul.mubr.msk.bf16.vlgmr.msra.gmra.mrb[12].mxu1 %vm4972_vm8, %v4935_v24  ;;  %v4865_v40 = vsel %vm4850_vm6, %v10560_v53, %v10557_v29  ;;  %v4868_v58 = vsel %vm4850_vm6, %v10563_v23, %v9425_v61  ;;  %v4874_v30 = vsel %vm4850_vm6, %v10569_v33, %v4672_v39  ;;  %v10580_v53 = vld [vmem:[#allocation57_spill] sm:$0xff] }
 0x2f2   : > { %5748 = vmatprep.mubr.msk.bf16.mxu1 %vm4972_vm8, %v4937_v15  ;;  %v4908_v55 = vsel %vm663_vm1, %v4865_v40, %v4779_v28  ;;  %v4676_v34 = vpop.permute.xlu1 %4675  ;;  %v4910_v37 = vsel %vm663_vm1, %v4868_v58, %v4781_v5  ;;  %v10566_v28 = vpack.c.bf16 %v10564_v25, %v10565_v17  ;;  %v4877_v22 = vsel %vm4850_vm6, %v10572_v50, %v4674_v52  ;;  %v10577_v52 = vld [vmem:[#allocation58_spill] sm:$0xff] }
 0x2f3   : > { %4848 = vrot.lane.b32.xlu1 %v4575_v12, %s6122_s20  ;;  %v4941_v46 = vsel %vm4931_vm7, %v4908_v55, %v4827_v49  ;;  %v4880_v21 = vsel %vm4850_vm6, %v10575_v9, %v4676_v34  ;;  %v10578_v15 = vpack.c.bf16 %v10576_v14, %v10577_v52  ;;  %v10581_v40 = vpack.c.bf16 %v10579_v6, %v10580_v53  ;;  %v10583_v34 = vld [vmem:[#allocation67_spill] sm:$0xff] }
 0x2f4   : > { %v4871_v7 = vsel %vm4850_vm6, %v10566_v28, %v9449_v32 }
 0x2f8   : > { %v4783_v51 = vpop.permute.xlu0 %4782 }
 0x2f9   : > { %5749 = vmatmul.mubr.msk.bf16.gmra.mrb[16].mxu1 %vm4972_vm8, %v4939_v0  ;;  %v4912_v36 = vsel %vm663_vm1, %v4871_v7, %v4783_v51 }
 0x2fa   : > { %5752 = vmatprep.mubr.msk.bf16.mxu1 %vm4972_vm8, %v4941_v46  ;;  %v10582_v46 = vld [vmem:[#allocation9_spill] sm:$0xff] }
 0x2fb   : > { %v10584_v59 = vpack.c.bf16 %v10582_v46, %v10583_v34 }
 0x2fd   : > { %v4829_v54 = vpop.permute.xlu1 %4828 }
 0x2fe   : > { %v4943_v4 = vsel %vm4931_vm7, %v4910_v37, %v4829_v54 }
 0x301   : > { %5753 = vmatmul.mubr.msk.bf16.gmra.mrb[20].mxu1 %vm4972_vm8, %v4943_v4 }
 0x302   : > { %v4678_v60 = vpop.permute.xlu0 %4677 }
 0x303   : > { %v4883_v47 = vsel %vm4850_vm6, %v10578_v15, %v4678_v60 }
 0x309   : > { %v4785_v43 = vpop.permute.xlu1 %4784 }
 0x30a   : > { %v4914_v18 = vsel %vm663_vm1, %v4874_v30, %v4785_v43 }
 0x30f   : > { %v4831_v3 = vpop.permute.xlu0 %4830 }
 0x310   : > { %v4945_v61 = vsel %vm4931_vm7, %v4912_v36, %v4831_v3  ;;  %v10585_v36 = vld [vmem:[#allocation8_spill] sm:$0xff]  ;;  %v10586_v3 = vld [vmem:[#allocation66_spill] sm:$0xff] }
 0x311   : > { %5756 = vmatprep.mubr.msk.bf16.mxu1 %vm4972_vm8, %v4945_v61  ;;  %v10587_v61 = vpack.c.bf16 %v10585_v36, %v10586_v3 }
 0x313   : > { %v4680_v57 = vpop.permute.xlu1 %4679 }
 0x314   : > { %v4886_v16 = vsel %vm4850_vm6, %v10581_v40, %v4680_v57 }
 0x31b   : > { %v4787_v32 = vpop.permute.xlu0 %4786 }
 0x31c   : > { %v4916_v26 = vsel %vm663_vm1, %v4877_v22, %v4787_v32  ;;  %v10589_v32 = vld [vmem:[#allocation84_spill] sm:$0xff] }
 0x31f   : > { %v4833_v12 = vpop.permute.xlu1 %4832 }
 0x320   : > { %v4947_v11 = vsel %vm4931_vm7, %v4914_v18, %v4833_v12 }
 0x321   : > { %5757 = vmatmul.mubr.msk.bf16.gmra.mrb[24].mxu1 %vm4972_vm8, %v4947_v11  ;;  %v10588_v11 = vld [vmem:[#allocation104_spill] sm:$0xff] }
 0x322   : > { %v4682_v2 = vpop.permute.xlu0 %4681 }
 0x323   : > { %v4889_v20 = vsel %vm4850_vm6, %v10584_v59, %v4682_v2  ;;  %v10590_v2 = vpack.c.bf16 %v10588_v11, %v10589_v32 }
 0x32d   : > { %v4789_v56 = vpop.permute.xlu1 %4788 }
 0x32e   : > { %v4918_v31 = vsel %vm663_vm1, %v4880_v21, %v4789_v56 }
 0x330   : > { %v4835_v45 = vpop.permute.xlu0 %4834 }
 0x331   : > { %v4949_v39 = vsel %vm4931_vm7, %v4916_v26, %v4835_v45 }
 0x332   : > { %5760 = vmatprep.mubr.msk.bf16.mxu1 %vm4972_vm8, %v4949_v39  ;;  %v10591_v39 = vld [vmem:[#allocation85_spill] sm:$0xff] }
 0x334   : > { %v4684_v13 = vpop.permute.xlu1 %4683 }
 0x335   : > { %v4892_v43 = vsel %vm4850_vm6, %v10587_v61, %v4684_v13  ;;  %v10592_v13 = vld [vmem:[#allocation83_spill] sm:$0xff] }
 0x336   : > { %v10593_v63 = vpack.c.bf16 %v10591_v39, %v10592_v13 }
 0x33c   : > { %v4839_v19 = vpop.permute.xlu0 %4838  ;;  %v4837_v41 = vpop.permute.xlu1 %4836 }
 0x33d   : > { %v4951_v24 = vsel %vm4931_vm7, %v4918_v31, %v4837_v41 }
 0x33e   : > { %5761 = vmatmul.mubr.msk.bf16.gmra.mrb[28].mxu1 %vm4972_vm8, %v4951_v24 }
 0x340   : > { %v4841_v10 = vpop.permute.xlu1 %4840 }
 0x342   : > { %v4791_v27 = vpop.permute.xlu0 %4790 }
 0x343   : > { %v4920_v44 = vsel %vm663_vm1, %v4883_v47, %v4791_v27 }
 0x344   : > { %v4953_v8 = vsel %vm4931_vm7, %v4920_v44, %v4839_v19  ;;  %v9631_v19 = vld [vmem:[%s9862_s6] ss:$0 sm:$0xff] }
 0x345   : > { %5764 = vmatprep.mubr.msk.bf16.mxu1 %vm4972_vm8, %v4953_v8  ;;  %v5732_v49 = vpop.f32.mrb[0].mxu1 }
 0x346   : > { %v4843_v5 = vpop.permute.xlu0 %4842  ;;  %v962_v29 = vpop.f32.mrb[1].mxu1 }
 0x347   : > { %v5733_v48 = vpop.f32.mrb[2].mxu1 }
 0x348   : > { %v965_v0 = vpop.f32.mrb[3].mxu1 }
 0x34e   : > { %v5736_v60 = vpop.f32.mrb[4].mxu1 }
 0x34f   : > { %v978_v17 = vpop.f32.mrb[5].mxu1 }
 0x350   : > { %v4793_v55 = vpop.permute.xlu1 %4792  ;;  %v4795_v58 = vpop.permute.xlu0 %4794 }
 0x351   : > { %v4922_v23 = vsel %vm663_vm1, %v4886_v16, %v4793_v55  ;;  %v4924_v37 = vsel %vm663_vm1, %v4889_v20, %v4795_v58  ;;  %v5737_v28 = vpop.f32.mrb[6].mxu1 }
 0x352   : > { %v4955_v54 = vsel %vm4931_vm7, %v4922_v23, %v4841_v10  ;;  %v4957_v4 = vsel %vm4931_vm7, %v4924_v37, %v4843_v5  ;;  %v981_v7 = vpop.f32.mrb[7].mxu1 }
 0x353   : > { %5765 = vmatmul.mubr.msk.bf16.gmra.mrb[32].mxu1 %vm4972_vm8, %v4955_v54 }
 0x354   : > { %5768 = vmatprep.mubr.msk.bf16.mxu1 %vm4972_vm8, %v4957_v4  ;;  %v4845_v51 = vpop.permute.xlu1 %4844  ;;  %v4686_v25 = vpop.permute.xlu0 %4685 }
 0x355   : > { %v4895_v38 = vsel %vm4850_vm6, %v10590_v2, %v4686_v25 }
 0x356   : > { %v5740_v18 = vpop.f32.mrb[8].mxu1 }
 0x357   : > { %v994_v12 = vpop.f32.mrb[9].mxu1 }
 0x358   : > { %v4797_v57 = vpop.permute.xlu1 %4796  ;;  %v5741_v62 = vpop.f32.mrb[10].mxu1 }
 0x359   : > { %v4926_v42 = vsel %vm663_vm1, %v4892_v43, %v4797_v57  ;;  %v997_v26 = vpop.f32.mrb[11].mxu1 }
 0x35a   : > { %v4959_v35 = vsel %vm4931_vm7, %v4926_v42, %v4845_v51 }
 0x35b   : > { %v4799_v33 = vpop.permute.xlu0 %4798  ;;  %5769 = vmatmul.mubr.msk.bf16.gmra.mrb[36].mxu1 %vm4972_vm8, %v4959_v35 }
 0x35c   : > { %v4688_v30 = vpop.permute.xlu1 %4687  ;;  %v4928_v50 = vsel %vm663_vm1, %v4895_v38, %v4799_v33 }
 0x35d   : > { %v4898_v1 = vsel %vm4850_vm6, %v10593_v63, %v4688_v30 }
 0x35f   : > { %v4847_v22 = vpop.permute.xlu0 %4846 }
 0x360   : > { %v4961_v56 = vsel %vm4931_vm7, %v4928_v50, %v4847_v22 }
 0x361   : > { %5772 = vmatprep.mubr.msk.bf16.mxu1 %vm4972_vm8, %v4961_v56  ;;  %v4801_v45 = vpop.permute.xlu1 %4800 }
 0x362   : > { %v4930_v9 = vsel %vm663_vm1, %v4898_v1, %v4801_v45 }
 0x365   : > { %v4849_v21 = vpop.permute.xlu1 %4848 }
 0x366   : > { %v4963_v31 = vsel %vm4931_vm7, %v4930_v9, %v4849_v21 }
 0x367   : > { %5773 = vmatmul.mubr.msk.bf16.gmra.mrb[40].mxu1 %vm4972_vm8, %v4963_v31 }
 0x3c4   : > { %v5746_v41 = vpop.f32.mrb[12].mxu1 }
 0x3c5   : > { %v9634_v24 = vadd.f32 %v5746_v41, %v9631_v19  ;;  %v5042_v14 = vpop.f32.mrb[13].mxu1 }
 0x3c6   : > { %v9637_v52 = vadd.f32 %v9631_v19, %v5042_v14  ;;  %v5747_v15 = vpop.f32.mrb[14].mxu1 }
 0x3c7   : > { %v5171_v47 = vsub.f32 0.0, %v9634_v24  ;;  %v9641_v27 = vadd.f32 %v5747_v15, %v9631_v19  ;;  %v5045_v44 = vpop.f32.mrb[15].mxu1 }
 0x3c8   : > { %v5169_v8 = vsub.f32 0.0, %v9637_v52  ;;  %v9645_v10 = vadd.f32 %v9631_v19, %v5045_v44 }
 0x3c9   : > { %v5205_v5 = vmul.f32 1.442695, %v5171_v47  ;;  %v5172_v49 = vsub.f32 0.0, %v9641_v27 }
 0x3ca   : > { %v5201_v29 = vmul.f32 1.442695, %v5169_v8  ;;  %v5170_v48 = vsub.f32 0.0, %v9645_v10 }
 0x3cb   : > { %5965 = vpow2.f32 %v5205_v5  ;;  %v5207_v6 = vmul.f32 1.442695, %v5172_v49 }
 0x3cc   : > { %5967 = vpow2.f32 %v5201_v29  ;;  %v5203_v53 = vmul.f32 1.442695, %v5170_v48  ;;  %v5750_v40 = vpop.f32.mrb[16].mxu1 }
 0x3cd   : > { %5969 = vpow2.f32 %v5207_v6  ;;  %v9650_v16 = vadd.f32 %v5750_v40, %v9631_v19  ;;  %v5058_v55 = vpop.f32.mrb[17].mxu1 }
 0x3ce   : > { %5971 = vpow2.f32 %v5203_v53  ;;  %v9653_v0 = vadd.f32 %v9631_v19, %v5058_v55  ;;  %v5751_v46 = vpop.f32.mrb[18].mxu1 }
 0x3cf   : > { %v5175_v34 = vsub.f32 0.0, %v9650_v16  ;;  %v9657_v59 = vadd.f32 %v5751_v46, %v9631_v19  ;;  %v5061_v20 = vpop.f32.mrb[19].mxu1 }
 0x3d0   : > { %v5173_v23 = vsub.f32 0.0, %v9653_v0  ;;  %v9661_v58 = vadd.f32 %v9631_v19, %v5061_v20 }
 0x3d1   : > { %v5213_v37 = vmul.f32 1.442695, %v5175_v34  ;;  %v5176_v54 = vsub.f32 0.0, %v9657_v59 }
 0x3d2   : > { %v5209_v4 = vmul.f32 1.442695, %v5173_v23  ;;  %v5174_v51 = vsub.f32 0.0, %v9661_v58 }
 0x3d3   : > { %5973 = vpow2.f32 %v5213_v37  ;;  %v5215_v60 = vmul.f32 1.442695, %v5176_v54 }
 0x3d4   : > { %5975 = vpow2.f32 %v5209_v4  ;;  %v5211_v25 = vmul.f32 1.442695, %v5174_v51  ;;  %v5754_v28 = vpop.f32.mrb[20].mxu1 }
 0x3d5   : > { %v5966_v17 = vpop.eup %5965  ;;  %5977 = vpow2.f32 %v5215_v60  ;;  %v9666_v3 = vadd.f32 %v5754_v28, %v9631_v19  ;;  %v5074_v61 = vpop.f32.mrb[21].mxu1 }
 0x3d6   : > { %v5968_v7 = vpop.eup %5967  ;;  %v5267_v36 = vadd.f32 1.0, %v5966_v17  ;;  %5979 = vpow2.f32 %v5211_v25  ;;  %v9669_v42 = vadd.f32 %v9631_v19, %v5074_v61  ;;  %v5755_v35 = vpop.f32.mrb[22].mxu1 }
 0x3d7   : > { %v5970_v43 = vpop.eup %5969  ;;  %v5265_v57 = vadd.f32 1.0, %v5968_v7  ;;  %v5179_v18 = vsub.f32 0.0, %v9666_v3  ;;  %v9673_v12 = vadd.f32 %v5755_v35, %v9631_v19  ;;  %v5077_v11 = vpop.f32.mrb[23].mxu1 }
 0x3d8   : > { %v5972_v33 = vpop.eup %5971  ;;  %5981 = vrcp.f32 %v5267_v36  ;;  %v5268_v30 = vadd.f32 1.0, %v5970_v43  ;;  %v5177_v2 = vsub.f32 0.0, %v9669_v42  ;;  %v9677_v38 = vadd.f32 %v9631_v19, %v5077_v11 }
 0x3d9   : > { %5983 = vrcp.f32 %v5265_v57  ;;  %v5266_v32 = vadd.f32 1.0, %v5972_v33  ;;  %v5221_v62 = vmul.f32 1.442695, %v5179_v18  ;;  %v5180_v50 = vsub.f32 0.0, %v9673_v12 }
 0x3da   : > { %5985 = vrcp.f32 %v5268_v30  ;;  %v5217_v22 = vmul.f32 1.442695, %v5177_v2  ;;  %v5178_v26 = vsub.f32 0.0, %v9677_v38 }
 0x3db   : > { %5987 = vrcp.f32 %v5266_v32  ;;  %v5223_v56 = vmul.f32 1.442695, %v5180_v50 }
 0x3dc   : > { %5989 = vpow2.f32 %v5221_v62  ;;  %v5219_v39 = vmul.f32 1.442695, %v5178_v26 }
 0x3dd   : > { %v5974_v45 = vpop.eup %5973  ;;  %5991 = vpow2.f32 %v5217_v22 }
 0x3de   : > { %v5976_v13 = vpop.eup %5975  ;;  %v5271_v63 = vadd.f32 1.0, %v5974_v45  ;;  %5993 = vpow2.f32 %v5223_v56 }
 0x3df   : > { %v5978_v1 = vpop.eup %5977  ;;  %v5269_v9 = vadd.f32 1.0, %v5976_v13  ;;  %5995 = vpow2.f32 %v5219_v39 }
 0x3e0   : > { %v5980_v21 = vpop.eup %5979  ;;  %5997 = vrcp.f32 %v5271_v63  ;;  %v5272_v31 = vadd.f32 1.0, %v5978_v1 }
 0x3e1   : > { %5999 = vrcp.f32 %v5269_v9  ;;  %v5270_v41 = vadd.f32 1.0, %v5980_v21 }
 0x3e2   : > { %v5982_v14 = vpop.eup %5981  ;;  %6001 = vrcp.f32 %v5272_v31 }
 0x3e3   : > { %v5984_v15 = vpop.eup %5983  ;;  %v5331_v47 = vmul.f32 %v5982_v14, %v9634_v24  ;;  %6003 = vrcp.f32 %v5270_v41 }
 0x3e4   : > { %v5986_v44 = vpop.eup %5985  ;;  %v5329_v8 = vmul.f32 %v5984_v15, %v9637_v52 }
 0x3e5   : > { %v5988_v5 = vpop.eup %5987  ;;  %5363 = vst.msk [vmem:[%s9685_s15 + $0x10] sm:$0xff] %vm4972_vm8, %v5331_v47  ;;  %v5332_v49 = vmul.f32 %v5986_v44, %v9641_v27 }
 0x3e6   : > { %v5990_v29 = vpop.eup %5989  ;;  %5361 = vst.msk [vmem:[%s9685_s15] sm:$0xff] %vm4972_vm8, %v5329_v8  ;;  %v5330_v48 = vmul.f32 %v5988_v5, %v9645_v10 }
 0x3e7   : > { %v5992_v6 = vpop.eup %5991  ;;  %5364 = vst.msk [vmem:[%s9685_s15 + $0x18] sm:$0xff] %vm4972_vm8, %v5332_v49  ;;  %v5275_v53 = vadd.f32 1.0, %v5990_v29 }
 0x3e8   : > { %v5994_v40 = vpop.eup %5993  ;;  %5362 = vst.msk [vmem:[%s9685_s15 + $0x8] sm:$0xff] %vm4972_vm8, %v5330_v48  ;;  %v5273_v24 = vadd.f32 1.0, %v5992_v6 }
 0x3e9   : > { %v5996_v52 = vpop.eup %5995  ;;  %6005 = vrcp.f32 %v5275_v53  ;;  %v5276_v55 = vadd.f32 1.0, %v5994_v40 }
 0x3ea   : > { %v5998_v27 = vpop.eup %5997  ;;  %6007 = vrcp.f32 %v5273_v24  ;;  %v5274_v46 = vadd.f32 1.0, %v5996_v52 }
 0x3eb   : > { %v6000_v34 = vpop.eup %5999  ;;  %v5335_v10 = vmul.f32 %v5998_v27, %v9650_v16  ;;  %6009 = vrcp.f32 %v5276_v55 }
 0x3ec   : > { %v6002_v20 = vpop.eup %6001  ;;  %v5333_v23 = vmul.f32 %v6000_v34, %v9653_v0  ;;  %6011 = vrcp.f32 %v5274_v46 }
 0x3ed   : > { %v6004_v37 = vpop.eup %6003  ;;  %5367 = vst.msk [vmem:[%s9685_s15 + $0x30] sm:$0xff] %vm4972_vm8, %v5335_v10  ;;  %v5336_v54 = vmul.f32 %v6002_v20, %v9657_v59 }
 0x3ee   : > { %5365 = vst.msk [vmem:[%s9685_s15 + $0x20] sm:$0xff] %vm4972_vm8, %v5333_v23  ;;  %v5334_v4 = vmul.f32 %v6004_v37, %v9661_v58 }
 0x3ef   : > { %5368 = vst.msk [vmem:[%s9685_s15 + $0x38] sm:$0xff] %vm4972_vm8, %v5336_v54 }
 0x3f0   : > { %5366 = vst.msk [vmem:[%s9685_s15 + $0x28] sm:$0xff] %vm4972_vm8, %v5334_v4 }
 0x3f3   : > { %v6006_v16 = vpop.eup %6005 }
 0x3f4   : > { %v6008_v51 = vpop.eup %6007  ;;  %v5339_v0 = vmul.f32 %v6006_v16, %v9666_v3  ;;  %v5758_v17 = vpop.f32.mrb[24].mxu1 }
 0x3f5   : > { %v6010_v60 = vpop.eup %6009  ;;  %v5337_v25 = vmul.f32 %v6008_v51, %v9669_v42  ;;  %v5099_v58 = vadd.f32 %v5758_v17, %v9631_v19  ;;  %v5090_v7 = vpop.f32.mrb[25].mxu1 }
 0x3f6   : > { %v6012_v59 = vpop.eup %6011  ;;  %5371 = vst.msk [vmem:[%s9685_s15 + $0x50] sm:$0xff] %vm4972_vm8, %v5339_v0  ;;  %v5340_v28 = vmul.f32 %v6010_v60, %v9673_v12  ;;  %v5091_v61 = vadd.f32 %v9631_v19, %v5090_v7  ;;  %v5759_v3 = vpop.f32.mrb[26].mxu1 }
 0x3f7   : > { %5369 = vst.msk [vmem:[%s9685_s15 + $0x40] sm:$0xff] %vm4972_vm8, %v5337_v25  ;;  %v5338_v36 = vmul.f32 %v6012_v59, %v9677_v38  ;;  %v5183_v43 = vsub.f32 0.0, %v5099_v58  ;;  %v5102_v57 = vadd.f32 %v5759_v3, %v9631_v19  ;;  %v5093_v42 = vpop.f32.mrb[27].mxu1 }
 0x3f8   : > { %5372 = vst.msk [vmem:[%s9685_s15 + $0x58] sm:$0xff] %vm4972_vm8, %v5340_v28  ;;  %v5181_v35 = vsub.f32 0.0, %v5091_v61  ;;  %v5094_v33 = vadd.f32 %v9631_v19, %v5093_v42 }
 0x3f9   : > { %5370 = vst.msk [vmem:[%s9685_s15 + $0x48] sm:$0xff] %vm4972_vm8, %v5338_v36  ;;  %v5229_v30 = vmul.f32 1.442695, %v5183_v43  ;;  %v5184_v18 = vsub.f32 0.0, %v5102_v57 }
 0x3fa   : > { %v5225_v12 = vmul.f32 1.442695, %v5181_v35  ;;  %v5182_v11 = vsub.f32 0.0, %v5094_v33 }
 0x3fb   : > { %6013 = vpow2.f32 %v5229_v30  ;;  %v5231_v32 = vmul.f32 1.442695, %v5184_v18 }
 0x3fc   : > { %6015 = vpow2.f32 %v5225_v12  ;;  %v5227_v2 = vmul.f32 1.442695, %v5182_v11 }
 0x3fd   : > { %6017 = vpow2.f32 %v5231_v32 }
 0x3fe   : > { %6019 = vpow2.f32 %v5227_v2 }
 0x405   : > { %v6014_v38 = vpop.eup %6013 }
 0x406   : > { %v6016_v62 = vpop.eup %6015  ;;  %v5279_v50 = vadd.f32 1.0, %v6014_v38 }
 0x407   : > { %v6018_v22 = vpop.eup %6017  ;;  %v5277_v26 = vadd.f32 1.0, %v6016_v62 }
 0x408   : > { %v6020_v56 = vpop.eup %6019  ;;  %6021 = vrcp.f32 %v5279_v50  ;;  %v5280_v45 = vadd.f32 1.0, %v6018_v22 }
 0x409   : > { %6023 = vrcp.f32 %v5277_v26  ;;  %v5278_v39 = vadd.f32 1.0, %v6020_v56 }
 0x40a   : > { %6025 = vrcp.f32 %v5280_v45 }
 0x40b   : > { %6027 = vrcp.f32 %v5278_v39 }
 0x411   : > { %v5762_v13 = vpop.f32.mrb[28].mxu1 }
 0x412   : > { %v9728_v63 = vadd.f32 %v5762_v13, %v9631_v19  ;;  %v5106_v1 = vpop.f32.mrb[29].mxu1  ;;  %v6022_v9 = vpop.eup %6021 }
 0x413   : > { %v9731_v21 = vadd.f32 %v9631_v19, %v5106_v1  ;;  %v5763_v31 = vpop.f32.mrb[30].mxu1  ;;  %v6024_v41 = vpop.eup %6023  ;;  %v5343_v14 = vmul.f32 %v6022_v9, %v5099_v58 }
 0x414   : > { %v5187_v15 = vsub.f32 0.0, %v9728_v63  ;;  %v9735_v47 = vadd.f32 %v5763_v31, %v9631_v19  ;;  %v5109_v44 = vpop.f32.mrb[31].mxu1  ;;  %v6026_v8 = vpop.eup %6025  ;;  %v5341_v5 = vmul.f32 %v6024_v41, %v5091_v61 }
 0x415   : > { %v5185_v49 = vsub.f32 0.0, %v9731_v21  ;;  %v9739_v29 = vadd.f32 %v9631_v19, %v5109_v44  ;;  %v6028_v48 = vpop.eup %6027  ;;  %5375 = vst.msk [vmem:[%s9685_s15 + $0x70] sm:$0xff] %vm4972_vm8, %v5343_v14  ;;  %v5344_v6 = vmul.f32 %v6026_v8, %v5102_v57 }
 0x416   : > { %v5237_v53 = vmul.f32 1.442695, %v5187_v15  ;;  %v5188_v40 = vsub.f32 0.0, %v9735_v47  ;;  %5373 = vst.msk [vmem:[%s9685_s15 + $0x60] sm:$0xff] %vm4972_vm8, %v5341_v5  ;;  %v5342_v24 = vmul.f32 %v6028_v48, %v5094_v33 }
 0x417   : > { %v5233_v52 = vmul.f32 1.442695, %v5185_v49  ;;  %v5186_v55 = vsub.f32 0.0, %v9739_v29  ;;  %5376 = vst.msk [vmem:[%s9685_s15 + $0x78] sm:$0xff] %vm4972_vm8, %v5344_v6 }
 0x418   : > { %6029 = vpow2.f32 %v5237_v53  ;;  %v5239_v27 = vmul.f32 1.442695, %v5188_v40  ;;  %5374 = vst.msk [vmem:[%s9685_s15 + $0x68] sm:$0xff] %vm4972_vm8, %v5342_v24 }
 0x419   : > { %6031 = vpow2.f32 %v5233_v52  ;;  %v5235_v46 = vmul.f32 1.442695, %v5186_v55 }
 0x41a   : > { %6033 = vpow2.f32 %v5239_v27 }
 0x41b   : > { %6035 = vpow2.f32 %v5235_v46 }
 0x422   : > { %v6030_v34 = vpop.eup %6029 }
 0x423   : > { %v6032_v10 = vpop.eup %6031  ;;  %v5283_v20 = vadd.f32 1.0, %v6030_v34 }
 0x424   : > { %v6034_v23 = vpop.eup %6033  ;;  %v5281_v37 = vadd.f32 1.0, %v6032_v10 }
 0x425   : > { %v6036_v4 = vpop.eup %6035  ;;  %6037 = vrcp.f32 %v5283_v20  ;;  %v5284_v16 = vadd.f32 1.0, %v6034_v23 }
 0x426   : > { %v5766_v54 = vpop.f32.mrb[32].mxu1  ;;  %6039 = vrcp.f32 %v5281_v37  ;;  %v5282_v60 = vadd.f32 1.0, %v6036_v4 }
 0x427   : > { %v9752_v51 = vadd.f32 %v5766_v54, %v9631_v19  ;;  %v5122_v0 = vpop.f32.mrb[33].mxu1  ;;  %6041 = vrcp.f32 %v5284_v16 }
 0x428   : > { %v9755_v25 = vadd.f32 %v9631_v19, %v5122_v0  ;;  %v5767_v17 = vpop.f32.mrb[34].mxu1  ;;  %6043 = vrcp.f32 %v5282_v60 }
 0x429   : > { %v5191_v59 = vsub.f32 0.0, %v9752_v51  ;;  %v9759_v28 = vadd.f32 %v5767_v17, %v9631_v19  ;;  %v5125_v58 = vpop.f32.mrb[35].mxu1 }
 0x42a   : > { %v5189_v7 = vsub.f32 0.0, %v9755_v25  ;;  %v9763_v36 = vadd.f32 %v9631_v19, %v5125_v58 }
 0x42b   : > { %v5245_v61 = vmul.f32 1.442695, %v5191_v59  ;;  %v5192_v3 = vsub.f32 0.0, %v9759_v28 }
 0x42c   : > { %v5241_v43 = vmul.f32 1.442695, %v5189_v7  ;;  %v5190_v57 = vsub.f32 0.0, %v9763_v36 }
 0x42d   : > { %6045 = vpow2.f32 %v5245_v61  ;;  %v5247_v42 = vmul.f32 1.442695, %v5192_v3 }
 0x42e   : > { %6047 = vpow2.f32 %v5241_v43  ;;  %v5243_v35 = vmul.f32 1.442695, %v5190_v57  ;;  %v5770_v33 = vpop.f32.mrb[36].mxu1 }
 0x42f   : > { %6049 = vpow2.f32 %v5247_v42  ;;  %v9768_v30 = vadd.f32 %v5770_v33, %v9631_v19  ;;  %v5138_v18 = vpop.f32.mrb[37].mxu1  ;;  %v6038_v12 = vpop.eup %6037 }
 0x430   : > { %6051 = vpow2.f32 %v5243_v35  ;;  %v9771_v11 = vadd.f32 %v9631_v19, %v5138_v18  ;;  %v5771_v32 = vpop.f32.mrb[38].mxu1  ;;  %v6040_v2 = vpop.eup %6039  ;;  %v5347_v38 = vmul.f32 %v6038_v12, %v9728_v63 }
 0x431   : > { %v5195_v62 = vsub.f32 0.0, %v9768_v30  ;;  %v9776_v50 = vadd.f32 %v5771_v32, %v9631_v19  ;;  %v5141_v22 = vpop.f32.mrb[39].mxu1  ;;  %v6042_v26 = vpop.eup %6041  ;;  %v5345_v56 = vmul.f32 %v6040_v2, %v9731_v21 }
 0x432   : > { %v5193_v45 = vsub.f32 0.0, %v9771_v11  ;;  %v9781_v39 = vadd.f32 %v9631_v19, %v5141_v22  ;;  %v6044_v13 = vpop.eup %6043  ;;  %5379 = vst.msk [vmem:[%s9685_s15 + $0x90] sm:$0xff] %vm4972_vm8, %v5347_v38  ;;  %v5348_v63 = vmul.f32 %v6042_v26, %v9735_v47 }
 0x433   : > { %v5253_v1 = vmul.f32 1.442695, %v5195_v62  ;;  %v5196_v9 = vsub.f32 0.0, %v9776_v50  ;;  %5377 = vst.msk [vmem:[%s9685_s15 + $0x80] sm:$0xff] %vm4972_vm8, %v5345_v56  ;;  %v5346_v31 = vmul.f32 %v6044_v13, %v9739_v29 }
 0x434   : > { %v5249_v41 = vmul.f32 1.442695, %v5193_v45  ;;  %v5194_v21 = vsub.f32 0.0, %v9781_v39  ;;  %5380 = vst.msk [vmem:[%s9685_s15 + $0x98] sm:$0xff] %vm4972_vm8, %v5348_v63 }
 0x435   : > { %6053 = vpow2.f32 %v5253_v1  ;;  %v5255_v14 = vmul.f32 1.442695, %v5196_v9  ;;  %5378 = vst.msk [vmem:[%s9685_s15 + $0x88] sm:$0xff] %vm4972_vm8, %v5346_v31 }
 0x436   : > { %6055 = vpow2.f32 %v5249_v41  ;;  %v5251_v44 = vmul.f32 1.442695, %v5194_v21 }
 0x437   : > { %v6046_v15 = vpop.eup %6045  ;;  %6057 = vpow2.f32 %v5255_v14 }
 0x438   : > { %v6048_v47 = vpop.eup %6047  ;;  %v5287_v8 = vadd.f32 1.0, %v6046_v15  ;;  %6059 = vpow2.f32 %v5251_v44 }
 0x439   : > { %v6050_v5 = vpop.eup %6049  ;;  %v5285_v49 = vadd.f32 1.0, %v6048_v47 }
 0x43a   : > { %v6052_v48 = vpop.eup %6051  ;;  %6061 = vrcp.f32 %v5287_v8  ;;  %v5288_v29 = vadd.f32 1.0, %v6050_v5  ;;  %v5774_v53 = vpop.f32.mrb[40].mxu1 }
 0x43b   : > { %6063 = vrcp.f32 %v5285_v49  ;;  %v5286_v6 = vadd.f32 1.0, %v6052_v48  ;;  %v9796_v40 = vadd.f32 %v5774_v53, %v9631_v19  ;;  %v5154_v24 = vpop.f32.mrb[41].mxu1 }
 0x43c   : > { %6065 = vrcp.f32 %v5288_v29  ;;  %v9799_v52 = vadd.f32 %v9631_v19, %v5154_v24  ;;  %v5775_v55 = vpop.f32.mrb[42].mxu1 }
 0x43d   : > { %6067 = vrcp.f32 %v5286_v6  ;;  %v5199_v27 = vsub.f32 0.0, %v9796_v40  ;;  %v9803_v46 = vadd.f32 %v5775_v55, %v9631_v19  ;;  %v5157_v34 = vpop.f32.mrb[43].mxu1 }
 0x43e   : > { %v5197_v10 = vsub.f32 0.0, %v9799_v52  ;;  %v9807_v20 = vadd.f32 %v9631_v19, %v5157_v34 }
 0x43f   : > { %v6054_v23 = vpop.eup %6053  ;;  %v5261_v37 = vmul.f32 1.442695, %v5199_v27  ;;  %v5200_v54 = vsub.f32 0.0, %v9803_v46 }
 0x440   : > { %v6056_v4 = vpop.eup %6055  ;;  %v5291_v16 = vadd.f32 1.0, %v6054_v23  ;;  %v5198_v0 = vsub.f32 0.0, %v9807_v20  ;;  %v5257_v7 = vmul.f32 1.442695, %v5197_v10 }
 0x441   : > { %v6058_v60 = vpop.eup %6057  ;;  %v5289_v17 = vadd.f32 1.0, %v6056_v4  ;;  %6069 = vpow2.f32 %v5261_v37  ;;  %v5263_v3 = vmul.f32 1.442695, %v5200_v54 }
 0x442   : > { %v6060_v59 = vpop.eup %6059  ;;  %6071 = vrcp.f32 %v5291_v16  ;;  %v5292_v58 = vadd.f32 1.0, %v6058_v60  ;;  %v5259_v42 = vmul.f32 1.442695, %v5198_v0 }
 0x443   : > { %6073 = vrcp.f32 %v5289_v17  ;;  %v5290_v19 = vadd.f32 1.0, %v6060_v59 }
 0x444   : > { %v6062_v61 = vpop.eup %6061  ;;  %6075 = vrcp.f32 %v5292_v58 }
 0x445   : > { %v6064_v43 = vpop.eup %6063  ;;  %v5351_v57 = vmul.f32 %v6062_v61, %v9752_v51  ;;  %6077 = vrcp.f32 %v5290_v19 }
 0x446   : > { %v6066_v35 = vpop.eup %6065  ;;  %v5349_v33 = vmul.f32 %v6064_v43, %v9755_v25  ;;  %6079 = vpow2.f32 %v5257_v7 }
 0x447   : > { %v6068_v18 = vpop.eup %6067  ;;  %5383 = vst.msk [vmem:[%s9685_s15 + $0xb0] sm:$0xff] %vm4972_vm8, %v5351_v57  ;;  %v5352_v12 = vmul.f32 %v6066_v35, %v9759_v28  ;;  %6081 = vpow2.f32 %v5263_v3 }
 0x448   : > { %5381 = vst.msk [vmem:[%s9685_s15 + $0xa0] sm:$0xff] %vm4972_vm8, %v5349_v33  ;;  %v5350_v32 = vmul.f32 %v6068_v18, %v9763_v36  ;;  %6083 = vpow2.f32 %v5259_v42 }
 0x449   : > { %5384 = vst.msk [vmem:[%s9685_s15 + $0xb8] sm:$0xff] %vm4972_vm8, %v5352_v12 }
 0x44a   : > { %5382 = vst.msk [vmem:[%s9685_s15 + $0xa8] sm:$0xff] %vm4972_vm8, %v5350_v32 }
 0x44b   : > { %v6070_v51 = vpop.eup %6069 }
 0x44c   : > { %v6072_v25 = vpop.eup %6071  ;;  %v5295_v2 = vadd.f32 1.0, %v6070_v51 }
 0x44d   : > { %v6074_v38 = vpop.eup %6073  ;;  %v5355_v28 = vmul.f32 %v6072_v25, %v9768_v30 }
 0x44e   : > { %v6076_v62 = vpop.eup %6075  ;;  %v5353_v22 = vmul.f32 %v6074_v38, %v9771_v11  ;;  %6085 = vrcp.f32 %v5295_v2 }
 0x44f   : > { %v6078_v36 = vpop.eup %6077  ;;  %5387 = vst.msk [vmem:[%s9685_s15 + $0xd0] sm:$0xff] %vm4972_vm8, %v5355_v28  ;;  %v5356_v26 = vmul.f32 %v6076_v62, %v9776_v50 }
 0x450   : > { %v6080_v56 = vpop.eup %6079  ;;  %5385 = vst.msk [vmem:[%s9685_s15 + $0xc0] sm:$0xff] %vm4972_vm8, %v5353_v22  ;;  %v5354_v45 = vmul.f32 %v6078_v36, %v9781_v39 }
 0x451   : > { %v6082_v13 = vpop.eup %6081  ;;  %5388 = vst.msk [vmem:[%s9685_s15 + $0xd8] sm:$0xff] %vm4972_vm8, %v5356_v26  ;;  %v5293_v63 = vadd.f32 1.0, %v6080_v56 }
 0x452   : > { %v6084_v30 = vpop.eup %6083  ;;  %5386 = vst.msk [vmem:[%s9685_s15 + $0xc8] sm:$0xff] %vm4972_vm8, %v5354_v45  ;;  %v5296_v11 = vadd.f32 1.0, %v6082_v13 }
 0x453   : > { %6087 = vrcp.f32 %v5293_v63  ;;  %v5294_v1 = vadd.f32 1.0, %v6084_v30 }
 0x454   : > { %6089 = vrcp.f32 %v5296_v11 }
 0x455   : > { %6091 = vrcp.f32 %v5294_v1 }
 0x458   : > { %v6086_v50 = vpop.eup %6085 }
 0x459   : > { %v5359_v9 = vmul.f32 %v6086_v50, %v9796_v40 }
 0x45b   : > { %5391 = vst.msk [vmem:[%s9685_s15 + $0xf0] sm:$0xff] %vm4972_vm8, %v5359_v9 }
 0x45d   : > { %v6088_v39 = vpop.eup %6087 }
 0x45e   : > { %v6090_v31 = vpop.eup %6089  ;;  %v5357_v41 = vmul.f32 %v6088_v39, %v9799_v52 }
 0x45f   : > { %v6092_v21 = vpop.eup %6091  ;;  %v5360_v14 = vmul.f32 %v6090_v31, %v9803_v46 }
 0x460   : > { %5389 = vst.msk [vmem:[%s9685_s15 + $0xe0] sm:$0xff] %vm4972_vm8, %v5357_v41  ;;  %v5358_v15 = vmul.f32 %v6092_v21, %v9807_v20 }
 0x461   : > { %5392 = vst.msk [vmem:[%s9685_s15 + $0xf8] sm:$0xff] %vm4972_vm8, %v5360_v14 }
 0x462   : > { %5390 = vst.msk [vmem:[%s9685_s15 + $0xe8] sm:$0xff] %vm4972_vm8, %v5358_v15 }
 0x463 PF: > { %s17_s26 = sadd.s32 1, %s6117_s26   ;;  %s10594_s24 = smov %s6113_s25 }
 0x464   : > { %p14_p5 = scmp.ge.s32.totalorder %s17_s26, 4   ;;  %s10595_s25 = smov %s10597_s27 }
 0x466   :  { %16 = sbr.rel (!%p14_p5) target bundleno = 2 (0x2), region = 85 }

</bundles_post_ra>
